<compile_context>
chip_gen: v7x
topology: tpu7x:2x2x1
jax: 0.10.0
libtpu: 0.0.40
codegen_flags: <defaults>
</compile_context>

<pallas_src>
import functools

import jax
import jax.numpy as jnp
from jax.experimental import pallas as pl
from jax.experimental.pallas import tpu as pltpu


MATMUL_DTYPE = jnp.bfloat16      # MXU operand dtype; accumulation stays f32
LANE = 128                       # lane-dense head output width
DEFAULT_BATCH_BLOCK = 64         # batch elements per grid step (raise for big PPO batches)

ACTOR_CFG = [(16, 3, 2), (16, 3, 1), (32, 3, 2)]     # (out_ch, kernel, stride)
CRITIC_CFG = [(8, 3, 4), (16, 3, 2), (32, 3, 2)]


def _conv_out(n, k, s):
    return (n - k) // s + 1


def _round_up(n, m):
    return -(-n // m) * m


def _const_map(ndim):
    zeros = (0,) * ndim
    return lambda b: zeros


# ------------------------------- kernel body -------------------------------- #

def _read_tap(src4, i, oh_out):
    """Rows {i, i+s, ..., i+(oh_out-1)s} of a stride-factored activation.

    src4 is a Ref or value of shape (ceil(rows/s), s, TB, K); a tap is a static
    rectangular slice on the two leading dims (no gather, no strided access).
    Returns a (oh_out*TB, K) bf16 value.
    """
    s = src4.shape[1]
    q0, r = i // s, i % s
    tap = src4[q0:q0 + oh_out, r:r + 1]                  # (oh_out, 1, TB, K)
    return tap.reshape(oh_out * tap.shape[2], tap.shape[3])


def _conv_layer(src4, m_ref, b_ref, oh_out):
    """One conv layer: sum_i tap_i @ M_i + bias, ReLU.  Returns (oh_out*TB, ow*cout) f32."""
    kh = m_ref.shape[0]
    acc = None
    for i in range(kh):
        d = jnp.dot(_read_tap(src4, i, oh_out), m_ref[i],
                    preferred_element_type=jnp.float32)
        acc = d if acc is None else acc + d
    return jnp.maximum(acc + b_ref[...], 0.0)


def _factor_rows(act_f32, oh, stride, tb):
    """(oh*TB, N) f32 -> bf16 (ceil(oh/stride), stride, TB, N) for the next conv's taps."""
    n = act_f32.shape[-1]
    v = act_f32.astype(MATMUL_DTYPE).reshape(oh, tb, n)
    hq = -(-oh // stride)
    pad = hq * stride - oh
    if pad:
        v = jnp.concatenate([v, jnp.zeros((pad, tb, n), v.dtype)], axis=0)
    return v.reshape(hq, stride, tb, n)


def _trunk(x4_ref, refs, meta, tb):
    m1, c1, m2, c2, m3, c3, w1, b1, w2, b2 = refs
    oh1, oh2, oh3 = meta["ohs"]
    _, s2, s3 = meta["strides"]

    # --- conv stack (bf16 matmuls, f32 accumulate, ReLU) --------------------
    a = _conv_layer(x4_ref, m1, c1, oh1)
    a = _conv_layer(_factor_rows(a, oh1, s2, tb), m2, c2, oh2)
    a = _conv_layer(_factor_rows(a, oh2, s3, tb), m3, c3, oh3)    # (oh3*TB, n3) f32

    n3 = a.shape[-1]
    a = a.astype(MATMUL_DTYPE).reshape(oh3, tb, n3)

    # --- fc1 (torch NCHW Flatten folded into w1 at prep), contract over rows -
    h = jnp.dot(a[0], w1[0], preferred_element_type=jnp.float32)
    for p in range(1, oh3):
        h = h + jnp.dot(a[p], w1[p], preferred_element_type=jnp.float32)
    h = h + b1[...]

    # --- LayerNorm(elementwise_affine=False, eps=1e-5) -> ReLU (f32) --------
    mean = jnp.mean(h, axis=-1, keepdims=True)
    var = jnp.mean(jnp.square(h - mean), axis=-1, keepdims=True)
    h = jnp.maximum((h - mean) * jax.lax.rsqrt(var + 1e-5), 0.0)

    # --- fc2 (zero-padded to 128 lanes for a full-lane store) ---------------
    out = jnp.dot(h.astype(MATMUL_DTYPE), w2[...], preferred_element_type=jnp.float32)
    return out + b2[...]                                          # (TB, LANE) f32


def _fused_kernel(meta_a, meta_c, n_actor, tb, xa_ref, xc_ref, *refs):
    a_refs = refs[:n_actor]
    c_refs = refs[n_actor:-2]
    out_a_ref, out_c_ref = refs[-2], refs[-1]
    out_a_ref[...] = _trunk(xa_ref, a_refs, meta_a, tb)
    out_c_ref[...] = _trunk(xc_ref, c_refs, meta_c, tb)


# ------------------------- one-time weight preparation ---------------------- #

def _col_weight(conv_w_hwio, w_in, ow, stride):
    """Fold the conv's column (W) gather + weights into one (kh, w_in*cin, ow*cout) matrix."""
    kh, kw, cin, cout = conv_w_hwio.shape
    j = jnp.arange(kw)[:, None, None]
    q = jnp.arange(ow)[None, :, None]
    w = jnp.arange(w_in)[None, None, :]
    sel = (w == stride * q + j).astype(jnp.float32)               # (kw, ow, w_in)
    m = jnp.einsum('jqw,ijco->iwcqo', sel, conv_w_hwio)           # (kh, w_in, cin, ow, cout)
    return m.reshape(kh, w_in * cin, ow * cout).astype(MATMUL_DTYPE)


def prepare_trunk(convs, fc, obs_space):
    C, H, W = obs_space
    hh, ww, cc = H, W, C
    operands, ohs, strides = [], [], []
    for conv_w, conv_b, stride in convs:
        kh, kw, _, cout = conv_w.shape
        oh, ow = _conv_out(hh, kh, stride), _conv_out(ww, kw, stride)
        operands.append(_col_weight(conv_w, ww, ow, stride))
        operands.append(jnp.tile(conv_b, (ow,)).reshape(1, ow * cout).astype(jnp.float32))
        ohs.append(oh)
        strides.append(stride)
        hh, ww, cc = oh, ow, cout

    w1, b1, w2, b2 = fc
    hidden, out_dim = w1.shape[1], w2.shape[1]
    # fold the torch NCHW-flatten (c, h, w) order into fc1 rows -> (h, w*c) kernel order
    w1r = (w1.reshape(cc, hh, ww, hidden).transpose(1, 2, 0, 3)
             .reshape(hh, ww * cc, hidden).astype(MATMUL_DTYPE))
    operands += [
        w1r,
        b1.reshape(1, hidden).astype(jnp.float32),
        jnp.pad(w2, ((0, 0), (0, LANE - out_dim))).astype(MATMUL_DTYPE),
        jnp.pad(b2, (0, LANE - out_dim)).reshape(1, LANE).astype(jnp.float32),
    ]
    return {
        "operands": tuple(operands),
        "out_dim": out_dim,
        "meta": {"ohs": tuple(ohs), "strides": tuple(strides)},
    }


def _prep_input(x_nchw, stride1, b_pad):
    """NCHW -> bf16 (H/stride1, stride1, B_pad, W*C), stride-factored for conv1 taps."""
    B, C, H, W = x_nchw.shape
    x = jnp.transpose(x_nchw, (2, 0, 3, 1)).reshape(H, B, W * C)
    h_pad = _round_up(H, stride1)
    x = jnp.pad(x, ((0, h_pad - H), (0, b_pad - B), (0, 0)))
    return x.reshape(h_pad // stride1, stride1, b_pad, W * C).astype(MATMUL_DTYPE)


# -------------------------------- forward pass ------------------------------ #

def actor_critic_forward(prepped, x_nchw, batch_block=DEFAULT_BATCH_BLOCK):
    # Heavy compute of ActorCriticNet.evaluate: actor logits + critic state value.
    # TODO(synk): Categorical sample / log_prob / entropy and argmax act() are left
    # to plain JAX consumers of the returned logits (no Pallas hot path needed).
    B = x_nchw.shape[0]
    tb = min(_round_up(B, 8), _round_up(batch_block, 8))
    b_pad = _round_up(B, tb)

    meta_a, meta_c = prepped["actor"]["meta"], prepped["critic"]["meta"]
    a_ops, c_ops = prepped["actor"]["operands"], prepped["critic"]["operands"]
    xa = _prep_input(x_nchw, meta_a["strides"][0], b_pad)
    xc = _prep_input(x_nchw, meta_c["strides"][0], b_pad)

    def x_spec(x):
        return pl.BlockSpec((x.shape[0], x.shape[1], tb, x.shape[3]),
                            lambda b: (0, 0, b, 0))

    in_specs = [x_spec(xa), x_spec(xc)]
    in_specs += [pl.BlockSpec(a.shape, _const_map(a.ndim)) for a in a_ops + c_ops]

    kernel = functools.partial(_fused_kernel, meta_a, meta_c, len(a_ops), tb)
    out_a, out_c = pl.pallas_call(
        kernel,
        grid=(b_pad // tb,),
        out_shape=(jax.ShapeDtypeStruct((b_pad, LANE), jnp.float32),
                   jax.ShapeDtypeStruct((b_pad, LANE), jnp.float32)),
        in_specs=in_specs,
        out_specs=(pl.BlockSpec((tb, LANE), lambda b: (b, 0)),
                   pl.BlockSpec((tb, LANE), lambda b: (b, 0))),
        compiler_params=pltpu.CompilerParams(
            dimension_semantics=("parallel",)),
    )(xa, xc, *a_ops, *c_ops)

    logits = out_a[:B, :prepped["actor"]["out_dim"]]
    value = out_c[:B, :prepped["critic"]["out_dim"]]
    return logits, value


# --------------------------------- parameters ------------------------------- #

def init_params(key, obs_space, action_space, hidden_size):
    C, H, W = obs_space
    keys = iter(jax.random.split(key, 32))

    def w_init(k, shape, fan_in):
        return jax.random.normal(k, shape, jnp.float32) / jnp.sqrt(jnp.float32(fan_in))

    def b_init(k, shape, fan_in):
        bound = 1.0 / jnp.sqrt(jnp.float32(fan_in))
        return jax.random.uniform(k, shape, jnp.float32, -bound, bound)

    def make_convs(cfg):
        convs, cin = [], C
        for out_c, ksz, stride in cfg:
            w = w_init(next(keys), (ksz, ksz, cin, out_c), ksz * ksz * cin)
            b = b_init(next(keys), (out_c,), ksz * ksz * cin)
            convs.append((w, b, stride))
            cin = out_c
        return convs

    def feat_dim(cfg):
        h, w, c = H, W, C
        for out_c, k_, s in cfg:
            h, w, c = _conv_out(h, k_, s), _conv_out(w, k_, s), out_c
        return c * h * w

    def make_fc(fd, out_dim):
        w1 = w_init(next(keys), (fd, hidden_size), fd)
        b1 = b_init(next(keys), (hidden_size,), fd)
        w2 = w_init(next(keys), (hidden_size, out_dim), hidden_size)
        b2 = b_init(next(keys), (out_dim,), hidden_size)
        return (w1, b1, w2, b2)

    return {
        "actor_convs": make_convs(ACTOR_CFG),
        "actor_fc": make_fc(feat_dim(ACTOR_CFG), action_space),
        "critic_convs": make_convs(CRITIC_CFG),
        "critic_fc": make_fc(feat_dim(CRITIC_CFG), 1),
    }


# ------------------------------ plain-JAX reference ------------------------- #

def reference_forward(params, x_nchw):
    def trunk(convs, fc, x):
        y = jnp.transpose(x.astype(jnp.float32), (0, 2, 3, 1))
        for w, b, s in convs:
            y = jax.lax.conv_general_dilated(
                y, w, (s, s), "VALID",
                dimension_numbers=("NHWC", "HWIO", "NHWC")) + b
            y = jnp.maximum(y, 0.0)
        feat = jnp.transpose(y, (0, 3, 1, 2)).reshape(y.shape[0], -1)   # torch Flatten (NCHW)
        w1, b1, w2, b2 = fc
        h = feat @ w1 + b1
        mean = h.mean(-1, keepdims=True)
        var = jnp.mean(jnp.square(h - mean), -1, keepdims=True)
        h = jnp.maximum((h - mean) * jax.lax.rsqrt(var + 1e-5), 0.0)
        return h @ w2 + b2

    return (trunk(params["actor_convs"], params["actor_fc"], x_nchw),
            trunk(params["critic_convs"], params["critic_fc"], x_nchw))


# ------------------------------------ main ----------------------------------- #

if __name__ == "__main__":
    obs_space = (4, 32, 32)   # C, H, W  (spatial >= 27 keeps the critic stride-4/2/2 convs valid)
    action_space = 6
    hidden_size = 32
    batch = 2

    key = jax.random.PRNGKey(0)
    pkey, xkey = jax.random.split(key)
    params = init_params(pkey, obs_space, action_space, hidden_size)
    prepped = {
        "actor": prepare_trunk(params["actor_convs"], params["actor_fc"], obs_space),
        "critic": prepare_trunk(params["critic_convs"], params["critic_fc"], obs_space),
    }
    x = jax.random.uniform(xkey, (batch,) + obs_space, jnp.float32)

    fwd = jax.jit(functools.partial(actor_critic_forward, prepped))
    logits, value = fwd(x)
    jax.block_until_ready((logits, value))

    assert logits.shape == (batch, action_space) and logits.dtype == jnp.float32
    assert value.shape == (batch, 1) and value.dtype == jnp.float32

    ref_logits, ref_value = reference_forward(params, x)
    # bf16 matmul operands / inter-layer activations -> loose tolerance vs f32 reference
    assert jnp.allclose(logits, ref_logits, rtol=1e-1, atol=1e-1)
    assert jnp.allclose(value, ref_value, rtol=1e-1, atol=1e-1)

    print("KERNEL_OK")
</pallas_src>

<mosaic_0001>
module attributes {stable_mosaic.version = 11 : i64} {
  func.func @_fused_kernel(%arg0: i32, %arg1: memref<16x2x8x128xbf16, #tpu.memory_space<vmem>>, %arg2: memref<8x4x8x128xbf16, #tpu.memory_space<vmem>>, %arg3: memref<3x128x240xbf16, #tpu.memory_space<vmem>>, %arg4: memref<1x240xf32, #tpu.memory_space<vmem>>, %arg5: memref<3x240x208xbf16, #tpu.memory_space<vmem>>, %arg6: memref<1x208xf32, #tpu.memory_space<vmem>>, %arg7: memref<3x208x192xbf16, #tpu.memory_space<vmem>>, %arg8: memref<1x192xf32, #tpu.memory_space<vmem>>, %arg9: memref<6x192x32xbf16, #tpu.memory_space<vmem>>, %arg10: memref<1x32xf32, #tpu.memory_space<vmem>>, %arg11: memref<32x128xbf16, #tpu.memory_space<vmem>>, %arg12: memref<1x128xf32, #tpu.memory_space<vmem>>, %arg13: memref<3x128x64xbf16, #tpu.memory_space<vmem>>, %arg14: memref<1x64xf32, #tpu.memory_space<vmem>>, %arg15: memref<3x64x48xbf16, #tpu.memory_space<vmem>>, %arg16: memref<1x48xf32, #tpu.memory_space<vmem>>, %arg17: memref<3x48x32xbf16, #tpu.memory_space<vmem>>, %arg18: memref<1x32xf32, #tpu.memory_space<vmem>>, %arg19: memref<1x32x32xbf16, #tpu.memory_space<vmem>>, %arg20: memref<1x32xf32, #tpu.memory_space<vmem>>, %arg21: memref<32x128xbf16, #tpu.memory_space<vmem>>, %arg22: memref<1x128xf32, #tpu.memory_space<vmem>>, %arg23: memref<8x128xf32, #tpu.memory_space<vmem>>, %arg24: memref<8x128xf32, #tpu.memory_space<vmem>>) attributes {dimension_semantics = [#tpu.dimension_semantics<parallel>], iteration_bounds = array<i64: 1>, scalar_prefetch = 0 : i64, scratch_operands = 0 : i64, tpu.core_type = #tpu.core_type<tc>, window_params = [{transform_indices = @transform_0, window_bounds = array<i64: 16, 2, 8, 128>}, {transform_indices = @transform_1, window_bounds = array<i64: 8, 4, 8, 128>}, {pipeline_mode = #tpu.pipeline_mode<synchronous>, transform_indices = @transform_2, window_bounds = array<i64: 3, 128, 240>}, {pipeline_mode = #tpu.pipeline_mode<synchronous>, transform_indices = @transform_3, window_bounds = array<i64: 1, 240>}, {pipeline_mode = #tpu.pipeline_mode<synchronous>, transform_indices = @transform_4, window_bounds = array<i64: 3, 240, 208>}, {pipeline_mode = #tpu.pipeline_mode<synchronous>, transform_indices = @transform_5, window_bounds = array<i64: 1, 208>}, {pipeline_mode = #tpu.pipeline_mode<synchronous>, transform_indices = @transform_6, window_bounds = array<i64: 3, 208, 192>}, {pipeline_mode = #tpu.pipeline_mode<synchronous>, transform_indices = @transform_7, window_bounds = array<i64: 1, 192>}, {pipeline_mode = #tpu.pipeline_mode<synchronous>, transform_indices = @transform_8, window_bounds = array<i64: 6, 192, 32>}, {pipeline_mode = #tpu.pipeline_mode<synchronous>, transform_indices = @transform_9, window_bounds = array<i64: 1, 32>}, {pipeline_mode = #tpu.pipeline_mode<synchronous>, transform_indices = @transform_10, window_bounds = array<i64: 32, 128>}, {pipeline_mode = #tpu.pipeline_mode<synchronous>, transform_indices = @transform_11, window_bounds = array<i64: 1, 128>}, {pipeline_mode = #tpu.pipeline_mode<synchronous>, transform_indices = @transform_12, window_bounds = array<i64: 3, 128, 64>}, {pipeline_mode = #tpu.pipeline_mode<synchronous>, transform_indices = @transform_13, window_bounds = array<i64: 1, 64>}, {pipeline_mode = #tpu.pipeline_mode<synchronous>, transform_indices = @transform_14, window_bounds = array<i64: 3, 64, 48>}, {pipeline_mode = #tpu.pipeline_mode<synchronous>, transform_indices = @transform_15, window_bounds = array<i64: 1, 48>}, {pipeline_mode = #tpu.pipeline_mode<synchronous>, transform_indices = @transform_16, window_bounds = array<i64: 3, 48, 32>}, {pipeline_mode = #tpu.pipeline_mode<synchronous>, transform_indices = @transform_17, window_bounds = array<i64: 1, 32>}, {pipeline_mode = #tpu.pipeline_mode<synchronous>, transform_indices = @transform_18, window_bounds = array<i64: 1, 32, 32>}, {pipeline_mode = #tpu.pipeline_mode<synchronous>, transform_indices = @transform_19, window_bounds = array<i64: 1, 32>}, {pipeline_mode = #tpu.pipeline_mode<synchronous>, transform_indices = @transform_20, window_bounds = array<i64: 32, 128>}, {pipeline_mode = #tpu.pipeline_mode<synchronous>, transform_indices = @transform_21, window_bounds = array<i64: 1, 128>}, {transform_indices = @transform_22, window_bounds = array<i64: 8, 128>}, {transform_indices = @transform_23, window_bounds = array<i64: 8, 128>}]} {
    %c0 = arith.constant 0 : index
    %c0_0 = arith.constant 0 : index
    %c0_1 = arith.constant 0 : index
    %c0_2 = arith.constant 0 : index
    %0 = vector.load %arg1[%c0, %c0_0, %c0_1, %c0_2] : memref<16x2x8x128xbf16, #tpu.memory_space<vmem>>, vector<15x1x8x128xbf16>
    %1 = vector.shape_cast %0 : vector<15x1x8x128xbf16> to vector<120x128xbf16>
    %c0_3 = arith.constant 0 : index
    %c0_4 = arith.constant 0 : index
    %c0_5 = arith.constant 0 : index
    %2 = vector.load %arg3[%c0_3, %c0_4, %c0_5] : memref<3x128x240xbf16, #tpu.memory_space<vmem>>, vector<1x128x240xbf16>
    %3 = vector.shape_cast %2 : vector<1x128x240xbf16> to vector<128x240xbf16>
    %cst = arith.constant dense<0.000000e+00> : vector<120x240xf32>
    %4 = tpu.matmul %1, %3, %cst {dimension_numbers = #tpu.dot_dimension_numbers<[1], [0], [0], [1], [0, 0, 1, 1], [], []>} : vector<120x128xbf16>, vector<128x240xbf16>, vector<120x240xf32> -> vector<120x240xf32>
    %c0_6 = arith.constant 0 : index
    %c1 = arith.constant 1 : index
    %c0_7 = arith.constant 0 : index
    %c0_8 = arith.constant 0 : index
    %5 = vector.load %arg1[%c0_6, %c1, %c0_7, %c0_8] : memref<16x2x8x128xbf16, #tpu.memory_space<vmem>>, vector<15x1x8x128xbf16>
    %6 = vector.shape_cast %5 : vector<15x1x8x128xbf16> to vector<120x128xbf16>
    %c1_9 = arith.constant 1 : index
    %c0_10 = arith.constant 0 : index
    %c0_11 = arith.constant 0 : index
    %7 = vector.load %arg3[%c1_9, %c0_10, %c0_11] : memref<3x128x240xbf16, #tpu.memory_space<vmem>>, vector<1x128x240xbf16>
    %8 = vector.shape_cast %7 : vector<1x128x240xbf16> to vector<128x240xbf16>
    %cst_12 = arith.constant dense<0.000000e+00> : vector<120x240xf32>
    %9 = tpu.matmul %6, %8, %cst_12 {dimension_numbers = #tpu.dot_dimension_numbers<[1], [0], [0], [1], [0, 0, 1, 1], [], []>} : vector<120x128xbf16>, vector<128x240xbf16>, vector<120x240xf32> -> vector<120x240xf32>
    %10 = arith.addf %4, %9 : vector<120x240xf32>
    %c1_13 = arith.constant 1 : index
    %c0_14 = arith.constant 0 : index
    %c0_15 = arith.constant 0 : index
    %c0_16 = arith.constant 0 : index
    %11 = vector.load %arg1[%c1_13, %c0_14, %c0_15, %c0_16] : memref<16x2x8x128xbf16, #tpu.memory_space<vmem>>, vector<15x1x8x128xbf16>
    %12 = vector.shape_cast %11 : vector<15x1x8x128xbf16> to vector<120x128xbf16>
    %c2 = arith.constant 2 : index
    %c0_17 = arith.constant 0 : index
    %c0_18 = arith.constant 0 : index
    %13 = vector.load %arg3[%c2, %c0_17, %c0_18] : memref<3x128x240xbf16, #tpu.memory_space<vmem>>, vector<1x128x240xbf16>
    %14 = vector.shape_cast %13 : vector<1x128x240xbf16> to vector<128x240xbf16>
    %cst_19 = arith.constant dense<0.000000e+00> : vector<120x240xf32>
    %15 = tpu.matmul %12, %14, %cst_19 {dimension_numbers = #tpu.dot_dimension_numbers<[1], [0], [0], [1], [0, 0, 1, 1], [], []>} : vector<120x128xbf16>, vector<128x240xbf16>, vector<120x240xf32> -> vector<120x240xf32>
    %16 = arith.addf %10, %15 : vector<120x240xf32>
    %c0_20 = arith.constant 0 : index
    %c0_21 = arith.constant 0 : index
    %17 = vector.load %arg4[%c0_20, %c0_21] : memref<1x240xf32, #tpu.memory_space<vmem>>, vector<1x240xf32>
    %18 = vector.broadcast %17 : vector<1x240xf32> to vector<120x240xf32>
    %19 = arith.addf %16, %18 : vector<120x240xf32>
    %cst_22 = arith.constant 0.000000e+00 : f32
    %20 = vector.broadcast %cst_22 : f32 to vector<120x240xf32>
    %21 = arith.maximumf %19, %20 : vector<120x240xf32>
    %22 = arith.truncf %21 : vector<120x240xf32> to vector<120x240xbf16>
    %23 = vector.shape_cast %22 : vector<120x240xbf16> to vector<15x8x240xbf16>
    %24 = vector.shape_cast %23 : vector<15x8x240xbf16> to vector<15x1x8x240xbf16>
    %25 = vector.extract_strided_slice %24 {offsets = [0, 0, 0, 0], sizes = [13, 1, 8, 240], strides = [1, 1, 1, 1]} : vector<15x1x8x240xbf16> to vector<13x1x8x240xbf16>
    %26 = vector.shape_cast %25 : vector<13x1x8x240xbf16> to vector<104x240xbf16>
    %c0_23 = arith.constant 0 : index
    %c0_24 = arith.constant 0 : index
    %c0_25 = arith.constant 0 : index
    %27 = vector.load %arg5[%c0_23, %c0_24, %c0_25] : memref<3x240x208xbf16, #tpu.memory_space<vmem>>, vector<1x240x208xbf16>
    %28 = vector.shape_cast %27 : vector<1x240x208xbf16> to vector<240x208xbf16>
    %cst_26 = arith.constant dense<0.000000e+00> : vector<104x208xf32>
    %29 = tpu.matmul %26, %28, %cst_26 {dimension_numbers = #tpu.dot_dimension_numbers<[1], [0], [0], [1], [0, 0, 1, 1], [], []>} : vector<104x240xbf16>, vector<240x208xbf16>, vector<104x208xf32> -> vector<104x208xf32>
    %30 = vector.extract_strided_slice %24 {offsets = [1, 0, 0, 0], sizes = [13, 1, 8, 240], strides = [1, 1, 1, 1]} : vector<15x1x8x240xbf16> to vector<13x1x8x240xbf16>
    %31 = vector.shape_cast %30 : vector<13x1x8x240xbf16> to vector<104x240xbf16>
    %c1_27 = arith.constant 1 : index
    %c0_28 = arith.constant 0 : index
    %c0_29 = arith.constant 0 : index
    %32 = vector.load %arg5[%c1_27, %c0_28, %c0_29] : memref<3x240x208xbf16, #tpu.memory_space<vmem>>, vector<1x240x208xbf16>
    %33 = vector.shape_cast %32 : vector<1x240x208xbf16> to vector<240x208xbf16>
    %cst_30 = arith.constant dense<0.000000e+00> : vector<104x208xf32>
    %34 = tpu.matmul %31, %33, %cst_30 {dimension_numbers = #tpu.dot_dimension_numbers<[1], [0], [0], [1], [0, 0, 1, 1], [], []>} : vector<104x240xbf16>, vector<240x208xbf16>, vector<104x208xf32> -> vector<104x208xf32>
    %35 = arith.addf %29, %34 : vector<104x208xf32>
    %36 = vector.extract_strided_slice %24 {offsets = [2, 0, 0, 0], sizes = [13, 1, 8, 240], strides = [1, 1, 1, 1]} : vector<15x1x8x240xbf16> to vector<13x1x8x240xbf16>
    %37 = vector.shape_cast %36 : vector<13x1x8x240xbf16> to vector<104x240xbf16>
    %c2_31 = arith.constant 2 : index
    %c0_32 = arith.constant 0 : index
    %c0_33 = arith.constant 0 : index
    %38 = vector.load %arg5[%c2_31, %c0_32, %c0_33] : memref<3x240x208xbf16, #tpu.memory_space<vmem>>, vector<1x240x208xbf16>
    %39 = vector.shape_cast %38 : vector<1x240x208xbf16> to vector<240x208xbf16>
    %cst_34 = arith.constant dense<0.000000e+00> : vector<104x208xf32>
    %40 = tpu.matmul %37, %39, %cst_34 {dimension_numbers = #tpu.dot_dimension_numbers<[1], [0], [0], [1], [0, 0, 1, 1], [], []>} : vector<104x240xbf16>, vector<240x208xbf16>, vector<104x208xf32> -> vector<104x208xf32>
    %41 = arith.addf %35, %40 : vector<104x208xf32>
    %c0_35 = arith.constant 0 : index
    %c0_36 = arith.constant 0 : index
    %42 = vector.load %arg6[%c0_35, %c0_36] : memref<1x208xf32, #tpu.memory_space<vmem>>, vector<1x208xf32>
    %43 = vector.broadcast %42 : vector<1x208xf32> to vector<104x208xf32>
    %44 = arith.addf %41, %43 : vector<104x208xf32>
    %cst_37 = arith.constant 0.000000e+00 : f32
    %45 = vector.broadcast %cst_37 : f32 to vector<104x208xf32>
    %46 = arith.maximumf %44, %45 : vector<104x208xf32>
    %47 = arith.truncf %46 : vector<104x208xf32> to vector<104x208xbf16>
    %48 = vector.shape_cast %47 : vector<104x208xbf16> to vector<13x8x208xbf16>
    %cst_38 = arith.constant 0.000000e+00 : bf16
    %49 = vector.broadcast %cst_38 : bf16 to vector<1x8x208xbf16>
    %50 = tpu.concatenate %48, %49 in 0 : vector<13x8x208xbf16>, vector<1x8x208xbf16> -> vector<14x8x208xbf16>
    %51 = vector.shape_cast %50 : vector<14x8x208xbf16> to vector<7x2x8x208xbf16>
    %52 = vector.extract_strided_slice %51 {offsets = [0, 0, 0, 0], sizes = [6, 1, 8, 208], strides = [1, 1, 1, 1]} : vector<7x2x8x208xbf16> to vector<6x1x8x208xbf16>
    %53 = vector.shape_cast %52 : vector<6x1x8x208xbf16> to vector<48x208xbf16>
    %c0_39 = arith.constant 0 : index
    %c0_40 = arith.constant 0 : index
    %c0_41 = arith.constant 0 : index
    %54 = vector.load %arg7[%c0_39, %c0_40, %c0_41] : memref<3x208x192xbf16, #tpu.memory_space<vmem>>, vector<1x208x192xbf16>
    %55 = vector.shape_cast %54 : vector<1x208x192xbf16> to vector<208x192xbf16>
    %cst_42 = arith.constant dense<0.000000e+00> : vector<48x192xf32>
    %56 = tpu.matmul %53, %55, %cst_42 {dimension_numbers = #tpu.dot_dimension_numbers<[1], [0], [0], [1], [0, 0, 1, 1], [], []>} : vector<48x208xbf16>, vector<208x192xbf16>, vector<48x192xf32> -> vector<48x192xf32>
    %57 = vector.extract_strided_slice %51 {offsets = [0, 1, 0, 0], sizes = [6, 1, 8, 208], strides = [1, 1, 1, 1]} : vector<7x2x8x208xbf16> to vector<6x1x8x208xbf16>
    %58 = vector.shape_cast %57 : vector<6x1x8x208xbf16> to vector<48x208xbf16>
    %c1_43 = arith.constant 1 : index
    %c0_44 = arith.constant 0 : index
    %c0_45 = arith.constant 0 : index
    %59 = vector.load %arg7[%c1_43, %c0_44, %c0_45] : memref<3x208x192xbf16, #tpu.memory_space<vmem>>, vector<1x208x192xbf16>
    %60 = vector.shape_cast %59 : vector<1x208x192xbf16> to vector<208x192xbf16>
    %cst_46 = arith.constant dense<0.000000e+00> : vector<48x192xf32>
    %61 = tpu.matmul %58, %60, %cst_46 {dimension_numbers = #tpu.dot_dimension_numbers<[1], [0], [0], [1], [0, 0, 1, 1], [], []>} : vector<48x208xbf16>, vector<208x192xbf16>, vector<48x192xf32> -> vector<48x192xf32>
    %62 = arith.addf %56, %61 : vector<48x192xf32>
    %63 = vector.extract_strided_slice %51 {offsets = [1, 0, 0, 0], sizes = [6, 1, 8, 208], strides = [1, 1, 1, 1]} : vector<7x2x8x208xbf16> to vector<6x1x8x208xbf16>
    %64 = vector.shape_cast %63 : vector<6x1x8x208xbf16> to vector<48x208xbf16>
    %c2_47 = arith.constant 2 : index
    %c0_48 = arith.constant 0 : index
    %c0_49 = arith.constant 0 : index
    %65 = vector.load %arg7[%c2_47, %c0_48, %c0_49] : memref<3x208x192xbf16, #tpu.memory_space<vmem>>, vector<1x208x192xbf16>
    %66 = vector.shape_cast %65 : vector<1x208x192xbf16> to vector<208x192xbf16>
    %cst_50 = arith.constant dense<0.000000e+00> : vector<48x192xf32>
    %67 = tpu.matmul %64, %66, %cst_50 {dimension_numbers = #tpu.dot_dimension_numbers<[1], [0], [0], [1], [0, 0, 1, 1], [], []>} : vector<48x208xbf16>, vector<208x192xbf16>, vector<48x192xf32> -> vector<48x192xf32>
    %68 = arith.addf %62, %67 : vector<48x192xf32>
    %c0_51 = arith.constant 0 : index
    %c0_52 = arith.constant 0 : index
    %69 = vector.load %arg8[%c0_51, %c0_52] : memref<1x192xf32, #tpu.memory_space<vmem>>, vector<1x192xf32>
    %70 = vector.broadcast %69 : vector<1x192xf32> to vector<48x192xf32>
    %71 = arith.addf %68, %70 : vector<48x192xf32>
    %cst_53 = arith.constant 0.000000e+00 : f32
    %72 = vector.broadcast %cst_53 : f32 to vector<48x192xf32>
    %73 = arith.maximumf %71, %72 : vector<48x192xf32>
    %74 = arith.truncf %73 : vector<48x192xf32> to vector<48x192xbf16>
    %75 = vector.shape_cast %74 : vector<48x192xbf16> to vector<6x8x192xbf16>
    %76 = vector.extract_strided_slice %75 {offsets = [0, 0, 0], sizes = [1, 8, 192], strides = [1, 1, 1]} : vector<6x8x192xbf16> to vector<1x8x192xbf16>
    %77 = vector.shape_cast %76 : vector<1x8x192xbf16> to vector<8x192xbf16>
    %c0_54 = arith.constant 0 : index
    %c0_55 = arith.constant 0 : index
    %c0_56 = arith.constant 0 : index
    %78 = vector.load %arg9[%c0_54, %c0_55, %c0_56] : memref<6x192x32xbf16, #tpu.memory_space<vmem>>, vector<1x192x32xbf16>
    %79 = vector.shape_cast %78 : vector<1x192x32xbf16> to vector<192x32xbf16>
    %cst_57 = arith.constant dense<0.000000e+00> : vector<8x32xf32>
    %80 = tpu.matmul %77, %79, %cst_57 {dimension_numbers = #tpu.dot_dimension_numbers<[1], [0], [0], [1], [0, 0, 1, 1], [], []>} : vector<8x192xbf16>, vector<192x32xbf16>, vector<8x32xf32> -> vector<8x32xf32>
    %81 = vector.extract_strided_slice %75 {offsets = [1, 0, 0], sizes = [1, 8, 192], strides = [1, 1, 1]} : vector<6x8x192xbf16> to vector<1x8x192xbf16>
    %82 = vector.shape_cast %81 : vector<1x8x192xbf16> to vector<8x192xbf16>
    %c1_58 = arith.constant 1 : index
    %c0_59 = arith.constant 0 : index
    %c0_60 = arith.constant 0 : index
    %83 = vector.load %arg9[%c1_58, %c0_59, %c0_60] : memref<6x192x32xbf16, #tpu.memory_space<vmem>>, vector<1x192x32xbf16>
    %84 = vector.shape_cast %83 : vector<1x192x32xbf16> to vector<192x32xbf16>
    %cst_61 = arith.constant dense<0.000000e+00> : vector<8x32xf32>
    %85 = tpu.matmul %82, %84, %cst_61 {dimension_numbers = #tpu.dot_dimension_numbers<[1], [0], [0], [1], [0, 0, 1, 1], [], []>} : vector<8x192xbf16>, vector<192x32xbf16>, vector<8x32xf32> -> vector<8x32xf32>
    %86 = arith.addf %80, %85 : vector<8x32xf32>
    %87 = vector.extract_strided_slice %75 {offsets = [2, 0, 0], sizes = [1, 8, 192], strides = [1, 1, 1]} : vector<6x8x192xbf16> to vector<1x8x192xbf16>
    %88 = vector.shape_cast %87 : vector<1x8x192xbf16> to vector<8x192xbf16>
    %c2_62 = arith.constant 2 : index
    %c0_63 = arith.constant 0 : index
    %c0_64 = arith.constant 0 : index
    %89 = vector.load %arg9[%c2_62, %c0_63, %c0_64] : memref<6x192x32xbf16, #tpu.memory_space<vmem>>, vector<1x192x32xbf16>
    %90 = vector.shape_cast %89 : vector<1x192x32xbf16> to vector<192x32xbf16>
    %cst_65 = arith.constant dense<0.000000e+00> : vector<8x32xf32>
    %91 = tpu.matmul %88, %90, %cst_65 {dimension_numbers = #tpu.dot_dimension_numbers<[1], [0], [0], [1], [0, 0, 1, 1], [], []>} : vector<8x192xbf16>, vector<192x32xbf16>, vector<8x32xf32> -> vector<8x32xf32>
    %92 = arith.addf %86, %91 : vector<8x32xf32>
    %93 = vector.extract_strided_slice %75 {offsets = [3, 0, 0], sizes = [1, 8, 192], strides = [1, 1, 1]} : vector<6x8x192xbf16> to vector<1x8x192xbf16>
    %94 = vector.shape_cast %93 : vector<1x8x192xbf16> to vector<8x192xbf16>
    %c3 = arith.constant 3 : index
    %c0_66 = arith.constant 0 : index
    %c0_67 = arith.constant 0 : index
    %95 = vector.load %arg9[%c3, %c0_66, %c0_67] : memref<6x192x32xbf16, #tpu.memory_space<vmem>>, vector<1x192x32xbf16>
    %96 = vector.shape_cast %95 : vector<1x192x32xbf16> to vector<192x32xbf16>
    %cst_68 = arith.constant dense<0.000000e+00> : vector<8x32xf32>
    %97 = tpu.matmul %94, %96, %cst_68 {dimension_numbers = #tpu.dot_dimension_numbers<[1], [0], [0], [1], [0, 0, 1, 1], [], []>} : vector<8x192xbf16>, vector<192x32xbf16>, vector<8x32xf32> -> vector<8x32xf32>
    %98 = arith.addf %92, %97 : vector<8x32xf32>
    %99 = vector.extract_strided_slice %75 {offsets = [4, 0, 0], sizes = [1, 8, 192], strides = [1, 1, 1]} : vector<6x8x192xbf16> to vector<1x8x192xbf16>
    %100 = vector.shape_cast %99 : vector<1x8x192xbf16> to vector<8x192xbf16>
    %c4 = arith.constant 4 : index
    %c0_69 = arith.constant 0 : index
    %c0_70 = arith.constant 0 : index
    %101 = vector.load %arg9[%c4, %c0_69, %c0_70] : memref<6x192x32xbf16, #tpu.memory_space<vmem>>, vector<1x192x32xbf16>
    %102 = vector.shape_cast %101 : vector<1x192x32xbf16> to vector<192x32xbf16>
    %cst_71 = arith.constant dense<0.000000e+00> : vector<8x32xf32>
    %103 = tpu.matmul %100, %102, %cst_71 {dimension_numbers = #tpu.dot_dimension_numbers<[1], [0], [0], [1], [0, 0, 1, 1], [], []>} : vector<8x192xbf16>, vector<192x32xbf16>, vector<8x32xf32> -> vector<8x32xf32>
    %104 = arith.addf %98, %103 : vector<8x32xf32>
    %105 = vector.extract_strided_slice %75 {offsets = [5, 0, 0], sizes = [1, 8, 192], strides = [1, 1, 1]} : vector<6x8x192xbf16> to vector<1x8x192xbf16>
    %106 = vector.shape_cast %105 : vector<1x8x192xbf16> to vector<8x192xbf16>
    %c5 = arith.constant 5 : index
    %c0_72 = arith.constant 0 : index
    %c0_73 = arith.constant 0 : index
    %107 = vector.load %arg9[%c5, %c0_72, %c0_73] : memref<6x192x32xbf16, #tpu.memory_space<vmem>>, vector<1x192x32xbf16>
    %108 = vector.shape_cast %107 : vector<1x192x32xbf16> to vector<192x32xbf16>
    %cst_74 = arith.constant dense<0.000000e+00> : vector<8x32xf32>
    %109 = tpu.matmul %106, %108, %cst_74 {dimension_numbers = #tpu.dot_dimension_numbers<[1], [0], [0], [1], [0, 0, 1, 1], [], []>} : vector<8x192xbf16>, vector<192x32xbf16>, vector<8x32xf32> -> vector<8x32xf32>
    %110 = arith.addf %104, %109 : vector<8x32xf32>
    %c0_75 = arith.constant 0 : index
    %c0_76 = arith.constant 0 : index
    %111 = vector.load %arg10[%c0_75, %c0_76] : memref<1x32xf32, #tpu.memory_space<vmem>>, vector<1x32xf32>
    %112 = vector.broadcast %111 : vector<1x32xf32> to vector<8x32xf32>
    %113 = arith.addf %110, %112 : vector<8x32xf32>
    %cst_77 = arith.constant dense<0.000000e+00> : vector<8xf32>
    %114 = vector.multi_reduction <add>, %113, %cst_77 [1] : vector<8x32xf32> to vector<8xf32>
    %115 = vector.shape_cast %114 : vector<8xf32> to vector<8x1xf32>
    %cst_78 = arith.constant 3.200000e+01 : f32
    %116 = vector.broadcast %cst_78 : f32 to vector<8x1xf32>
    %117 = arith.divf %115, %116 : vector<8x1xf32>
    %118 = vector.broadcast %117 : vector<8x1xf32> to vector<8x32xf32>
    %119 = arith.subf %113, %118 : vector<8x32xf32>
    %120 = arith.mulf %119, %119 : vector<8x32xf32>
    %cst_79 = arith.constant dense<0.000000e+00> : vector<8xf32>
    %121 = vector.multi_reduction <add>, %120, %cst_79 [1] : vector<8x32xf32> to vector<8xf32>
    %122 = vector.shape_cast %121 : vector<8xf32> to vector<8x1xf32>
    %cst_80 = arith.constant 3.200000e+01 : f32
    %123 = vector.broadcast %cst_80 : f32 to vector<8x1xf32>
    %124 = arith.divf %122, %123 : vector<8x1xf32>
    %125 = vector.broadcast %117 : vector<8x1xf32> to vector<8x32xf32>
    %126 = arith.subf %113, %125 : vector<8x32xf32>
    %cst_81 = arith.constant 9.99999974E-6 : f32
    %127 = vector.broadcast %cst_81 : f32 to vector<8x1xf32>
    %128 = arith.addf %124, %127 : vector<8x1xf32>
    %129 = math.rsqrt %128 : vector<8x1xf32>
    %130 = vector.broadcast %129 : vector<8x1xf32> to vector<8x32xf32>
    %131 = arith.mulf %126, %130 : vector<8x32xf32>
    %cst_82 = arith.constant 0.000000e+00 : f32
    %132 = vector.broadcast %cst_82 : f32 to vector<8x32xf32>
    %133 = arith.maximumf %131, %132 : vector<8x32xf32>
    %134 = arith.truncf %133 : vector<8x32xf32> to vector<8x32xbf16>
    %c0_83 = arith.constant 0 : index
    %c0_84 = arith.constant 0 : index
    %135 = vector.load %arg11[%c0_83, %c0_84] : memref<32x128xbf16, #tpu.memory_space<vmem>>, vector<32x128xbf16>
    %cst_85 = arith.constant dense<0.000000e+00> : vector<8x128xf32>
    %136 = tpu.matmul %134, %135, %cst_85 {dimension_numbers = #tpu.dot_dimension_numbers<[1], [0], [0], [1], [0, 0, 1, 1], [], []>} : vector<8x32xbf16>, vector<32x128xbf16>, vector<8x128xf32> -> vector<8x128xf32>
    %c0_86 = arith.constant 0 : index
    %c0_87 = arith.constant 0 : index
    %137 = vector.load %arg12[%c0_86, %c0_87] : memref<1x128xf32, #tpu.memory_space<vmem>>, vector<1x128xf32>
    %138 = vector.broadcast %137 : vector<1x128xf32> to vector<8x128xf32>
    %139 = arith.addf %136, %138 : vector<8x128xf32>
    %c0_88 = arith.constant 0 : index
    %c0_89 = arith.constant 0 : index
    %140 = vector.load %arg23[%c0_88, %c0_89] : memref<8x128xf32, #tpu.memory_space<vmem>>, vector<8x128xf32>
    tpu.vector_store %arg23[%c0_88, %c0_89], %139 {strides = array<i32>} : memref<8x128xf32, #tpu.memory_space<vmem>>, vector<8x128xf32>,
    %c0_90 = arith.constant 0 : index
    %c0_91 = arith.constant 0 : index
    %c0_92 = arith.constant 0 : index
    %c0_93 = arith.constant 0 : index
    %141 = vector.load %arg2[%c0_90, %c0_91, %c0_92, %c0_93] : memref<8x4x8x128xbf16, #tpu.memory_space<vmem>>, vector<8x1x8x128xbf16>
    %142 = vector.shape_cast %141 : vector<8x1x8x128xbf16> to vector<64x128xbf16>
    %c0_94 = arith.constant 0 : index
    %c0_95 = arith.constant 0 : index
    %c0_96 = arith.constant 0 : index
    %143 = vector.load %arg13[%c0_94, %c0_95, %c0_96] : memref<3x128x64xbf16, #tpu.memory_space<vmem>>, vector<1x128x64xbf16>
    %144 = vector.shape_cast %143 : vector<1x128x64xbf16> to vector<128x64xbf16>
    %cst_97 = arith.constant dense<0.000000e+00> : vector<64x64xf32>
    %145 = tpu.matmul %142, %144, %cst_97 {dimension_numbers = #tpu.dot_dimension_numbers<[1], [0], [0], [1], [0, 0, 1, 1], [], []>} : vector<64x128xbf16>, vector<128x64xbf16>, vector<64x64xf32> -> vector<64x64xf32>
    %c0_98 = arith.constant 0 : index
    %c1_99 = arith.constant 1 : index
    %c0_100 = arith.constant 0 : index
    %c0_101 = arith.constant 0 : index
    %146 = vector.load %arg2[%c0_98, %c1_99, %c0_100, %c0_101] : memref<8x4x8x128xbf16, #tpu.memory_space<vmem>>, vector<8x1x8x128xbf16>
    %147 = vector.shape_cast %146 : vector<8x1x8x128xbf16> to vector<64x128xbf16>
    %c1_102 = arith.constant 1 : index
    %c0_103 = arith.constant 0 : index
    %c0_104 = arith.constant 0 : index
    %148 = vector.load %arg13[%c1_102, %c0_103, %c0_104] : memref<3x128x64xbf16, #tpu.memory_space<vmem>>, vector<1x128x64xbf16>
    %149 = vector.shape_cast %148 : vector<1x128x64xbf16> to vector<128x64xbf16>
    %cst_105 = arith.constant dense<0.000000e+00> : vector<64x64xf32>
    %150 = tpu.matmul %147, %149, %cst_105 {dimension_numbers = #tpu.dot_dimension_numbers<[1], [0], [0], [1], [0, 0, 1, 1], [], []>} : vector<64x128xbf16>, vector<128x64xbf16>, vector<64x64xf32> -> vector<64x64xf32>
    %151 = arith.addf %145, %150 : vector<64x64xf32>
    %c0_106 = arith.constant 0 : index
    %c2_107 = arith.constant 2 : index
    %c0_108 = arith.constant 0 : index
    %c0_109 = arith.constant 0 : index
    %152 = vector.load %arg2[%c0_106, %c2_107, %c0_108, %c0_109] : memref<8x4x8x128xbf16, #tpu.memory_space<vmem>>, vector<8x1x8x128xbf16>
    %153 = vector.shape_cast %152 : vector<8x1x8x128xbf16> to vector<64x128xbf16>
    %c2_110 = arith.constant 2 : index
    %c0_111 = arith.constant 0 : index
    %c0_112 = arith.constant 0 : index
    %154 = vector.load %arg13[%c2_110, %c0_111, %c0_112] : memref<3x128x64xbf16, #tpu.memory_space<vmem>>, vector<1x128x64xbf16>
    %155 = vector.shape_cast %154 : vector<1x128x64xbf16> to vector<128x64xbf16>
    %cst_113 = arith.constant dense<0.000000e+00> : vector<64x64xf32>
    %156 = tpu.matmul %153, %155, %cst_113 {dimension_numbers = #tpu.dot_dimension_numbers<[1], [0], [0], [1], [0, 0, 1, 1], [], []>} : vector<64x128xbf16>, vector<128x64xbf16>, vector<64x64xf32> -> vector<64x64xf32>
    %157 = arith.addf %151, %156 : vector<64x64xf32>
    %c0_114 = arith.constant 0 : index
    %c0_115 = arith.constant 0 : index
    %158 = vector.load %arg14[%c0_114, %c0_115] : memref<1x64xf32, #tpu.memory_space<vmem>>, vector<1x64xf32>
    %159 = vector.broadcast %158 : vector<1x64xf32> to vector<64x64xf32>
    %160 = arith.addf %157, %159 : vector<64x64xf32>
    %cst_116 = arith.constant 0.000000e+00 : f32
    %161 = vector.broadcast %cst_116 : f32 to vector<64x64xf32>
    %162 = arith.maximumf %160, %161 : vector<64x64xf32>
    %163 = arith.truncf %162 : vector<64x64xf32> to vector<64x64xbf16>
    %164 = vector.shape_cast %163 : vector<64x64xbf16> to vector<8x8x64xbf16>
    %165 = vector.shape_cast %164 : vector<8x8x64xbf16> to vector<4x2x8x64xbf16>
    %166 = vector.extract_strided_slice %165 {offsets = [0, 0, 0, 0], sizes = [3, 1, 8, 64], strides = [1, 1, 1, 1]} : vector<4x2x8x64xbf16> to vector<3x1x8x64xbf16>
    %167 = vector.shape_cast %166 : vector<3x1x8x64xbf16> to vector<24x64xbf16>
    %c0_117 = arith.constant 0 : index
    %c0_118 = arith.constant 0 : index
    %c0_119 = arith.constant 0 : index
    %168 = vector.load %arg15[%c0_117, %c0_118, %c0_119] : memref<3x64x48xbf16, #tpu.memory_space<vmem>>, vector<1x64x48xbf16>
    %169 = vector.shape_cast %168 : vector<1x64x48xbf16> to vector<64x48xbf16>
    %cst_120 = arith.constant dense<0.000000e+00> : vector<24x48xf32>
    %170 = tpu.matmul %167, %169, %cst_120 {dimension_numbers = #tpu.dot_dimension_numbers<[1], [0], [0], [1], [0, 0, 1, 1], [], []>} : vector<24x64xbf16>, vector<64x48xbf16>, vector<24x48xf32> -> vector<24x48xf32>
    %171 = vector.extract_strided_slice %165 {offsets = [0, 1, 0, 0], sizes = [3, 1, 8, 64], strides = [1, 1, 1, 1]} : vector<4x2x8x64xbf16> to vector<3x1x8x64xbf16>
    %172 = vector.shape_cast %171 : vector<3x1x8x64xbf16> to vector<24x64xbf16>
    %c1_121 = arith.constant 1 : index
    %c0_122 = arith.constant 0 : index
    %c0_123 = arith.constant 0 : index
    %173 = vector.load %arg15[%c1_121, %c0_122, %c0_123] : memref<3x64x48xbf16, #tpu.memory_space<vmem>>, vector<1x64x48xbf16>
    %174 = vector.shape_cast %173 : vector<1x64x48xbf16> to vector<64x48xbf16>
    %cst_124 = arith.constant dense<0.000000e+00> : vector<24x48xf32>
    %175 = tpu.matmul %172, %174, %cst_124 {dimension_numbers = #tpu.dot_dimension_numbers<[1], [0], [0], [1], [0, 0, 1, 1], [], []>} : vector<24x64xbf16>, vector<64x48xbf16>, vector<24x48xf32> -> vector<24x48xf32>
    %176 = arith.addf %170, %175 : vector<24x48xf32>
    %177 = vector.extract_strided_slice %165 {offsets = [1, 0, 0, 0], sizes = [3, 1, 8, 64], strides = [1, 1, 1, 1]} : vector<4x2x8x64xbf16> to vector<3x1x8x64xbf16>
    %178 = vector.shape_cast %177 : vector<3x1x8x64xbf16> to vector<24x64xbf16>
    %c2_125 = arith.constant 2 : index
    %c0_126 = arith.constant 0 : index
    %c0_127 = arith.constant 0 : index
    %179 = vector.load %arg15[%c2_125, %c0_126, %c0_127] : memref<3x64x48xbf16, #tpu.memory_space<vmem>>, vector<1x64x48xbf16>
    %180 = vector.shape_cast %179 : vector<1x64x48xbf16> to vector<64x48xbf16>
    %cst_128 = arith.constant dense<0.000000e+00> : vector<24x48xf32>
    %181 = tpu.matmul %178, %180, %cst_128 {dimension_numbers = #tpu.dot_dimension_numbers<[1], [0], [0], [1], [0, 0, 1, 1], [], []>} : vector<24x64xbf16>, vector<64x48xbf16>, vector<24x48xf32> -> vector<24x48xf32>
    %182 = arith.addf %176, %181 : vector<24x48xf32>
    %c0_129 = arith.constant 0 : index
    %c0_130 = arith.constant 0 : index
    %183 = vector.load %arg16[%c0_129, %c0_130] : memref<1x48xf32, #tpu.memory_space<vmem>>, vector<1x48xf32>
    %184 = vector.broadcast %183 : vector<1x48xf32> to vector<24x48xf32>
    %185 = arith.addf %182, %184 : vector<24x48xf32>
    %cst_131 = arith.constant 0.000000e+00 : f32
    %186 = vector.broadcast %cst_131 : f32 to vector<24x48xf32>
    %187 = arith.maximumf %185, %186 : vector<24x48xf32>
    %188 = arith.truncf %187 : vector<24x48xf32> to vector<24x48xbf16>
    %189 = vector.shape_cast %188 : vector<24x48xbf16> to vector<3x8x48xbf16>
    %cst_132 = arith.constant 0.000000e+00 : bf16
    %190 = vector.broadcast %cst_132 : bf16 to vector<1x8x48xbf16>
    %191 = tpu.concatenate %189, %190 in 0 : vector<3x8x48xbf16>, vector<1x8x48xbf16> -> vector<4x8x48xbf16>
    %192 = vector.shape_cast %191 : vector<4x8x48xbf16> to vector<2x2x8x48xbf16>
    %193 = vector.extract_strided_slice %192 {offsets = [0, 0, 0, 0], sizes = [1, 1, 8, 48], strides = [1, 1, 1, 1]} : vector<2x2x8x48xbf16> to vector<1x1x8x48xbf16>
    %194 = vector.shape_cast %193 : vector<1x1x8x48xbf16> to vector<8x48xbf16>
    %c0_133 = arith.constant 0 : index
    %c0_134 = arith.constant 0 : index
    %c0_135 = arith.constant 0 : index
    %195 = vector.load %arg17[%c0_133, %c0_134, %c0_135] : memref<3x48x32xbf16, #tpu.memory_space<vmem>>, vector<1x48x32xbf16>
    %196 = vector.shape_cast %195 : vector<1x48x32xbf16> to vector<48x32xbf16>
    %cst_136 = arith.constant dense<0.000000e+00> : vector<8x32xf32>
    %197 = tpu.matmul %194, %196, %cst_136 {dimension_numbers = #tpu.dot_dimension_numbers<[1], [0], [0], [1], [0, 0, 1, 1], [], []>} : vector<8x48xbf16>, vector<48x32xbf16>, vector<8x32xf32> -> vector<8x32xf32>
    %198 = vector.extract_strided_slice %192 {offsets = [0, 1, 0, 0], sizes = [1, 1, 8, 48], strides = [1, 1, 1, 1]} : vector<2x2x8x48xbf16> to vector<1x1x8x48xbf16>
    %199 = vector.shape_cast %198 : vector<1x1x8x48xbf16> to vector<8x48xbf16>
    %c1_137 = arith.constant 1 : index
    %c0_138 = arith.constant 0 : index
    %c0_139 = arith.constant 0 : index
    %200 = vector.load %arg17[%c1_137, %c0_138, %c0_139] : memref<3x48x32xbf16, #tpu.memory_space<vmem>>, vector<1x48x32xbf16>
    %201 = vector.shape_cast %200 : vector<1x48x32xbf16> to vector<48x32xbf16>
    %cst_140 = arith.constant dense<0.000000e+00> : vector<8x32xf32>
    %202 = tpu.matmul %199, %201, %cst_140 {dimension_numbers = #tpu.dot_dimension_numbers<[1], [0], [0], [1], [0, 0, 1, 1], [], []>} : vector<8x48xbf16>, vector<48x32xbf16>, vector<8x32xf32> -> vector<8x32xf32>
    %203 = arith.addf %197, %202 : vector<8x32xf32>
    %204 = vector.extract_strided_slice %192 {offsets = [1, 0, 0, 0], sizes = [1, 1, 8, 48], strides = [1, 1, 1, 1]} : vector<2x2x8x48xbf16> to vector<1x1x8x48xbf16>
    %205 = vector.shape_cast %204 : vector<1x1x8x48xbf16> to vector<8x48xbf16>
    %c2_141 = arith.constant 2 : index
    %c0_142 = arith.constant 0 : index
    %c0_143 = arith.constant 0 : index
    %206 = vector.load %arg17[%c2_141, %c0_142, %c0_143] : memref<3x48x32xbf16, #tpu.memory_space<vmem>>, vector<1x48x32xbf16>
    %207 = vector.shape_cast %206 : vector<1x48x32xbf16> to vector<48x32xbf16>
    %cst_144 = arith.constant dense<0.000000e+00> : vector<8x32xf32>
    %208 = tpu.matmul %205, %207, %cst_144 {dimension_numbers = #tpu.dot_dimension_numbers<[1], [0], [0], [1], [0, 0, 1, 1], [], []>} : vector<8x48xbf16>, vector<48x32xbf16>, vector<8x32xf32> -> vector<8x32xf32>
    %209 = arith.addf %203, %208 : vector<8x32xf32>
    %c0_145 = arith.constant 0 : index
    %c0_146 = arith.constant 0 : index
    %210 = vector.load %arg18[%c0_145, %c0_146] : memref<1x32xf32, #tpu.memory_space<vmem>>, vector<1x32xf32>
    %211 = vector.broadcast %210 : vector<1x32xf32> to vector<8x32xf32>
    %212 = arith.addf %209, %211 : vector<8x32xf32>
    %cst_147 = arith.constant 0.000000e+00 : f32
    %213 = vector.broadcast %cst_147 : f32 to vector<8x32xf32>
    %214 = arith.maximumf %212, %213 : vector<8x32xf32>
    %215 = arith.truncf %214 : vector<8x32xf32> to vector<8x32xbf16>
    %216 = vector.shape_cast %215 : vector<8x32xbf16> to vector<1x8x32xbf16>
    %217 = vector.shape_cast %216 : vector<1x8x32xbf16> to vector<8x32xbf16>
    %c0_148 = arith.constant 0 : index
    %c0_149 = arith.constant 0 : index
    %c0_150 = arith.constant 0 : index
    %218 = vector.load %arg19[%c0_148, %c0_149, %c0_150] : memref<1x32x32xbf16, #tpu.memory_space<vmem>>, vector<1x32x32xbf16>
    %219 = vector.shape_cast %218 : vector<1x32x32xbf16> to vector<32x32xbf16>
    %cst_151 = arith.constant dense<0.000000e+00> : vector<8x32xf32>
    %220 = tpu.matmul %217, %219, %cst_151 {dimension_numbers = #tpu.dot_dimension_numbers<[1], [0], [0], [1], [0, 0, 1, 1], [], []>} : vector<8x32xbf16>, vector<32x32xbf16>, vector<8x32xf32> -> vector<8x32xf32>
    %c0_152 = arith.constant 0 : index
    %c0_153 = arith.constant 0 : index
    %221 = vector.load %arg20[%c0_152, %c0_153] : memref<1x32xf32, #tpu.memory_space<vmem>>, vector<1x32xf32>
    %222 = vector.broadcast %221 : vector<1x32xf32> to vector<8x32xf32>
    %223 = arith.addf %220, %222 : vector<8x32xf32>
    %cst_154 = arith.constant dense<0.000000e+00> : vector<8xf32>
    %224 = vector.multi_reduction <add>, %223, %cst_154 [1] : vector<8x32xf32> to vector<8xf32>
    %225 = vector.shape_cast %224 : vector<8xf32> to vector<8x1xf32>
    %cst_155 = arith.constant 3.200000e+01 : f32
    %226 = vector.broadcast %cst_155 : f32 to vector<8x1xf32>
    %227 = arith.divf %225, %226 : vector<8x1xf32>
    %228 = vector.broadcast %227 : vector<8x1xf32> to vector<8x32xf32>
    %229 = arith.subf %223, %228 : vector<8x32xf32>
    %230 = arith.mulf %229, %229 : vector<8x32xf32>
    %cst_156 = arith.constant dense<0.000000e+00> : vector<8xf32>
    %231 = vector.multi_reduction <add>, %230, %cst_156 [1] : vector<8x32xf32> to vector<8xf32>
    %232 = vector.shape_cast %231 : vector<8xf32> to vector<8x1xf32>
    %cst_157 = arith.constant 3.200000e+01 : f32
    %233 = vector.broadcast %cst_157 : f32 to vector<8x1xf32>
    %234 = arith.divf %232, %233 : vector<8x1xf32>
    %235 = vector.broadcast %227 : vector<8x1xf32> to vector<8x32xf32>
    %236 = arith.subf %223, %235 : vector<8x32xf32>
    %cst_158 = arith.constant 9.99999974E-6 : f32
    %237 = vector.broadcast %cst_158 : f32 to vector<8x1xf32>
    %238 = arith.addf %234, %237 : vector<8x1xf32>
    %239 = math.rsqrt %238 : vector<8x1xf32>
    %240 = vector.broadcast %239 : vector<8x1xf32> to vector<8x32xf32>
    %241 = arith.mulf %236, %240 : vector<8x32xf32>
    %cst_159 = arith.constant 0.000000e+00 : f32
    %242 = vector.broadcast %cst_159 : f32 to vector<8x32xf32>
    %243 = arith.maximumf %241, %242 : vector<8x32xf32>
    %244 = arith.truncf %243 : vector<8x32xf32> to vector<8x32xbf16>
    %c0_160 = arith.constant 0 : index
    %c0_161 = arith.constant 0 : index
    %245 = vector.load %arg21[%c0_160, %c0_161] : memref<32x128xbf16, #tpu.memory_space<vmem>>, vector<32x128xbf16>
    %cst_162 = arith.constant dense<0.000000e+00> : vector<8x128xf32>
    %246 = tpu.matmul %244, %245, %cst_162 {dimension_numbers = #tpu.dot_dimension_numbers<[1], [0], [0], [1], [0, 0, 1, 1], [], []>} : vector<8x32xbf16>, vector<32x128xbf16>, vector<8x128xf32> -> vector<8x128xf32>
    %c0_163 = arith.constant 0 : index
    %c0_164 = arith.constant 0 : index
    %247 = vector.load %arg22[%c0_163, %c0_164] : memref<1x128xf32, #tpu.memory_space<vmem>>, vector<1x128xf32>
    %248 = vector.broadcast %247 : vector<1x128xf32> to vector<8x128xf32>
    %249 = arith.addf %246, %248 : vector<8x128xf32>
    %c0_165 = arith.constant 0 : index
    %c0_166 = arith.constant 0 : index
    %250 = vector.load %arg24[%c0_165, %c0_166] : memref<8x128xf32, #tpu.memory_space<vmem>>, vector<8x128xf32>
    tpu.vector_store %arg24[%c0_165, %c0_166], %249 {strides = array<i32>} : memref<8x128xf32, #tpu.memory_space<vmem>>, vector<8x128xf32>,
    return
  }
  func.func @transform_0(%arg0: i32) -> (i32, i32, i32, i32) {
    %c0_i32 = arith.constant 0 : i32
    %c0_i32_0 = arith.constant 0 : i32
    %c0_i32_1 = arith.constant 0 : i32
    %c0_i32_2 = arith.constant 0 : i32
    return %c0_i32, %c0_i32_0, %arg0, %c0_i32_1 : i32, i32, i32, i32
  }
  func.func @transform_1(%arg0: i32) -> (i32, i32, i32, i32) {
    %c0_i32 = arith.constant 0 : i32
    %c0_i32_0 = arith.constant 0 : i32
    %c0_i32_1 = arith.constant 0 : i32
    %c0_i32_2 = arith.constant 0 : i32
    return %c0_i32, %c0_i32_0, %arg0, %c0_i32_1 : i32, i32, i32, i32
  }
  func.func @transform_2(%arg0: i32) -> (i32, i32, i32) {
    %c0_i32 = arith.constant 0 : i32
    %c0_i32_0 = arith.constant 0 : i32
    %c0_i32_1 = arith.constant 0 : i32
    %c0_i32_2 = arith.constant 0 : i32
    return %c0_i32, %c0_i32_0, %c0_i32_1 : i32, i32, i32
  }
  func.func @transform_3(%arg0: i32) -> (i32, i32) {
    %c0_i32 = arith.constant 0 : i32
    %c0_i32_0 = arith.constant 0 : i32
    %c0_i32_1 = arith.constant 0 : i32
    return %c0_i32, %c0_i32_0 : i32, i32
  }
  func.func @transform_4(%arg0: i32) -> (i32, i32, i32) {
    %c0_i32 = arith.constant 0 : i32
    %c0_i32_0 = arith.constant 0 : i32
    %c0_i32_1 = arith.constant 0 : i32
    %c0_i32_2 = arith.constant 0 : i32
    return %c0_i32, %c0_i32_0, %c0_i32_1 : i32, i32, i32
  }
  func.func @transform_5(%arg0: i32) -> (i32, i32) {
    %c0_i32 = arith.constant 0 : i32
    %c0_i32_0 = arith.constant 0 : i32
    %c0_i32_1 = arith.constant 0 : i32
    return %c0_i32, %c0_i32_0 : i32, i32
  }
  func.func @transform_6(%arg0: i32) -> (i32, i32, i32) {
    %c0_i32 = arith.constant 0 : i32
    %c0_i32_0 = arith.constant 0 : i32
    %c0_i32_1 = arith.constant 0 : i32
    %c0_i32_2 = arith.constant 0 : i32
    return %c0_i32, %c0_i32_0, %c0_i32_1 : i32, i32, i32
  }
  func.func @transform_7(%arg0: i32) -> (i32, i32) {
    %c0_i32 = arith.constant 0 : i32
    %c0_i32_0 = arith.constant 0 : i32
    %c0_i32_1 = arith.constant 0 : i32
    return %c0_i32, %c0_i32_0 : i32, i32
  }
  func.func @transform_8(%arg0: i32) -> (i32, i32, i32) {
    %c0_i32 = arith.constant 0 : i32
    %c0_i32_0 = arith.constant 0 : i32
    %c0_i32_1 = arith.constant 0 : i32
    %c0_i32_2 = arith.constant 0 : i32
    return %c0_i32, %c0_i32_0, %c0_i32_1 : i32, i32, i32
  }
  func.func @transform_9(%arg0: i32) -> (i32, i32) {
    %c0_i32 = arith.constant 0 : i32
    %c0_i32_0 = arith.constant 0 : i32
    %c0_i32_1 = arith.constant 0 : i32
    return %c0_i32, %c0_i32_0 : i32, i32
  }
  func.func @transform_10(%arg0: i32) -> (i32, i32) {
    %c0_i32 = arith.constant 0 : i32
    %c0_i32_0 = arith.constant 0 : i32
    %c0_i32_1 = arith.constant 0 : i32
    return %c0_i32, %c0_i32_0 : i32, i32
  }
  func.func @transform_11(%arg0: i32) -> (i32, i32) {
    %c0_i32 = arith.constant 0 : i32
    %c0_i32_0 = arith.constant 0 : i32
    %c0_i32_1 = arith.constant 0 : i32
    return %c0_i32, %c0_i32_0 : i32, i32
  }
  func.func @transform_12(%arg0: i32) -> (i32, i32, i32) {
    %c0_i32 = arith.constant 0 : i32
    %c0_i32_0 = arith.constant 0 : i32
    %c0_i32_1 = arith.constant 0 : i32
    %c0_i32_2 = arith.constant 0 : i32
    return %c0_i32, %c0_i32_0, %c0_i32_1 : i32, i32, i32
  }
  func.func @transform_13(%arg0: i32) -> (i32, i32) {
    %c0_i32 = arith.constant 0 : i32
    %c0_i32_0 = arith.constant 0 : i32
    %c0_i32_1 = arith.constant 0 : i32
    return %c0_i32, %c0_i32_0 : i32, i32
  }
  func.func @transform_14(%arg0: i32) -> (i32, i32, i32) {
    %c0_i32 = arith.constant 0 : i32
    %c0_i32_0 = arith.constant 0 : i32
    %c0_i32_1 = arith.constant 0 : i32
    %c0_i32_2 = arith.constant 0 : i32
    return %c0_i32, %c0_i32_0, %c0_i32_1 : i32, i32, i32
  }
  func.func @transform_15(%arg0: i32) -> (i32, i32) {
    %c0_i32 = arith.constant 0 : i32
    %c0_i32_0 = arith.constant 0 : i32
    %c0_i32_1 = arith.constant 0 : i32
    return %c0_i32, %c0_i32_0 : i32, i32
  }
  func.func @transform_16(%arg0: i32) -> (i32, i32, i32) {
    %c0_i32 = arith.constant 0 : i32
    %c0_i32_0 = arith.constant 0 : i32
    %c0_i32_1 = arith.constant 0 : i32
    %c0_i32_2 = arith.constant 0 : i32
    return %c0_i32, %c0_i32_0, %c0_i32_1 : i32, i32, i32
  }
  func.func @transform_17(%arg0: i32) -> (i32, i32) {
    %c0_i32 = arith.constant 0 : i32
    %c0_i32_0 = arith.constant 0 : i32
    %c0_i32_1 = arith.constant 0 : i32
    return %c0_i32, %c0_i32_0 : i32, i32
  }
  func.func @transform_18(%arg0: i32) -> (i32, i32, i32) {
    %c0_i32 = arith.constant 0 : i32
    %c0_i32_0 = arith.constant 0 : i32
    %c0_i32_1 = arith.constant 0 : i32
    %c0_i32_2 = arith.constant 0 : i32
    return %c0_i32, %c0_i32_0, %c0_i32_1 : i32, i32, i32
  }
  func.func @transform_19(%arg0: i32) -> (i32, i32) {
    %c0_i32 = arith.constant 0 : i32
    %c0_i32_0 = arith.constant 0 : i32
    %c0_i32_1 = arith.constant 0 : i32
    return %c0_i32, %c0_i32_0 : i32, i32
  }
  func.func @transform_20(%arg0: i32) -> (i32, i32) {
    %c0_i32 = arith.constant 0 : i32
    %c0_i32_0 = arith.constant 0 : i32
    %c0_i32_1 = arith.constant 0 : i32
    return %c0_i32, %c0_i32_0 : i32, i32
  }
  func.func @transform_21(%arg0: i32) -> (i32, i32) {
    %c0_i32 = arith.constant 0 : i32
    %c0_i32_0 = arith.constant 0 : i32
    %c0_i32_1 = arith.constant 0 : i32
    return %c0_i32, %c0_i32_0 : i32, i32
  }
  func.func @transform_22(%arg0: i32) -> (i32, i32) {
    %c0_i32 = arith.constant 0 : i32
    %c0_i32_0 = arith.constant 0 : i32
    return %arg0, %c0_i32 : i32, i32
  }
  func.func @transform_23(%arg0: i32) -> (i32, i32) {
    %c0_i32 = arith.constant 0 : i32
    %c0_i32_0 = arith.constant 0 : i32
    return %arg0, %c0_i32 : i32, i32
  }
}

</mosaic_0001>

<bundles_post_ra>
// kernel: actor_critic_forward.1
= control target key start
LH: loop header
LB: loop body
LE: loop exit
PB: predicated region body
PF: predicated region fallthrough
CT: control target
= control target key end

     0   :  { %v6821_v1 = vmov 0   ;;  %vm1278_vm0 = vcmask 916480   ;;  %vm2324_vm1 = vcmask 654336   ;;  %vm3042_vm2 = vcmask 523264   ;;  %s8525_s2 = inlined_call_operand.vmem [shape: bf16[3,128,240], index: 2, kind: input, shape index: {}]   ;;  %s8526_s0 = inlined_call_operand.vmem [shape: bf16[16,2,8,128], index: 0, kind: input, shape index: {}, may-alias: {0,1}]   ;;  %s8527_s4 = inlined_call_operand.vmem [shape: bf16[3,240,208], index: 4, kind: input, shape index: {}]   ;;  %s8528_s3 = inlined_call_operand.vmem [shape: f32[1,240], index: 3, kind: input, shape index: {}]   ;;  %s8529_s6 = inlined_call_operand.vmem [shape: bf16[3,208,192], index: 6, kind: input, shape index: {}]   ;;  %s8530_s5 = inlined_call_operand.vmem [shape: f32[1,208], index: 5, kind: input, shape index: {}]   ;;  %s8531_s8 = inlined_call_operand.vmem [shape: bf16[6,192,32], index: 8, kind: input, shape index: {}]   ;;  %s8532_s7 = inlined_call_operand.vmem [shape: f32[1,192], index: 7, kind: input, shape index: {}]   ;;  %s8533_s9 = inlined_call_operand.vmem [shape: f32[1,32], index: 9, kind: input, shape index: {}]   ;;  %s8534_s10 = inlined_call_operand.vmem [shape: bf16[32,128], index: 10, kind: input, shape index: {}]   ;;  %s8535_s12 = inlined_call_operand.vmem [shape: bf16[3,128,64], index: 12, kind: input, shape index: {}]   ;;  %s8536_s1 = inlined_call_operand.vmem [shape: bf16[8,4,8,128], index: 1, kind: input, shape index: {}, may-alias: {0,1}]   ;;  %s8537_s14 = inlined_call_operand.vmem [shape: bf16[3,64,48], index: 14, kind: input, shape index: {}]   ;;  %s8538_s11 = inlined_call_operand.vmem [shape: f32[1,128], index: 11, kind: input, shape index: {}]   ;;  %s8539_s22 = inlined_call_operand.vmem [shape: f32[8,128], index: 22, kind: output, shape index: {0}]   ;;  %s8540_s13 = inlined_call_operand.vmem [shape: f32[1,64], index: 13, kind: input, shape index: {}]   ;;  %s8541_s16 = inlined_call_operand.vmem [shape: bf16[3,48,32], index: 16, kind: input, shape index: {}]   ;;  %s8542_s15 = inlined_call_operand.vmem [shape: f32[1,48], index: 15, kind: input, shape index: {}]   ;;  %s8543_s18 = inlined_call_operand.vmem [shape: bf16[1,32,32], index: 18, kind: input, shape index: {}]   ;;  %s8544_s17 = inlined_call_operand.vmem [shape: f32[1,32], index: 17, kind: input, shape index: {}]   ;;  %s8545_s19 = inlined_call_operand.vmem [shape: f32[1,32], index: 19, kind: input, shape index: {}]   ;;  %s8546_s20 = inlined_call_operand.vmem [shape: bf16[32,128], index: 20, kind: input, shape index: {}]   ;;  %s8547_s21 = inlined_call_operand.vmem [shape: f32[1,128], index: 21, kind: input, shape index: {}]   ;;  %s8548_s23 = inlined_call_operand.vmem [shape: f32[8,128], index: 23, kind: output, shape index: {1}]  }
   0x1   :  { %8554 = sst [smem:[#allocation2_spill]] %s8525_s2  ;;  %296 = vmatprep.mubr.bf16.mxu0 %v6821_v1  ;;  %vm3788_vm3 = vcmask 261120   ;;  %vm6823_vm4 = vmmov 0   ;;  %vm4728_vm5 = vcmask 392192  }
   0x2   :  { %8555 = sst [smem:[#allocation3_spill]] %s8526_s0  ;;  %s8562_s24 = sld [smem:[#allocation2_spill]] }
   0x3   :  { %8556 = sst [smem:[#allocation4_spill]] %s8527_s4  ;;  %s8563_s27 = sld [smem:[#allocation3_spill]] }
   0x4   :  { %8557 = sst [smem:[#allocation5_spill]] %s8528_s3 }
   0x5   :  { %8558 = sst [smem:[#allocation6_spill]] %s8529_s6 }
   0x6   :  { %8559 = sst [smem:[#allocation7_spill]] %s8530_s5  ;;  %s8564_s5 = sld [smem:[#allocation4_spill]] }
   0x7   :  { %8560 = sst [smem:[#allocation8_spill]] %s8531_s8  ;;  %s8566_s0 = sld [smem:[#allocation6_spill]] }
   0x8   :  { %8561 = sst [smem:[#allocation9_spill]] %s8532_s7  ;;  %v6334_v0 = vld [vmem:[%s8562_s24 + $0x84] ss:$8 sps:$4 sm:$0xff]   ;;  %v6336_v2 = vld [vmem:[%s8562_s24 + $0x80] ss:$8 sps:$4 sm:$0xff]   ;;  %s8565_s7 = sld [smem:[#allocation5_spill]] }
   0x9   :  { %264 = vmatprep.subr.bf16.mxu0 %v6334_v0  ;;  %v6337_v3 = vld [vmem:[%s8562_s24 + $0x94] ss:$8 sps:$4 sm:$0xff]   ;;  %v6339_v4 = vld [vmem:[%s8562_s24 + $0x90] ss:$8 sps:$4 sm:$0xff]   ;;  %v6340_v5 = vld [vmem:[%s8562_s24 + $0xa4] ss:$8 sps:$4 sm:$0xff]  }
   0xa   :  { %265 = vmatpush1.bf16.msra.mxu0 %v6336_v2  ;;  %v6342_v6 = vld [vmem:[%s8562_s24 + $0xa0] ss:$8 sps:$4 sm:$0xff]   ;;  %v6343_v7 = vld [vmem:[%s8562_s24 + $0xb4] ss:$8 sps:$4 sm:$0xff]   ;;  %v6345_v8 = vld [vmem:[%s8562_s24 + $0xb0] ss:$8 sps:$4 sm:$0xff]  }
   0xb   :  { %266 = vmatprep.subr.bf16.mxu0 %v6337_v3  ;;  %v6346_v9 = vld [vmem:[%s8562_s24 + $0xc4] ss:$8 sps:$4 sm:$0xff]   ;;  %v6348_v10 = vld [vmem:[%s8562_s24 + $0xc0] ss:$8 sps:$4 sm:$0xff]   ;;  %v6349_v11 = vld [vmem:[%s8562_s24 + $0xd4] ss:$8 sps:$4 sm:$0xff]  }
   0xc   :  { %v6351_v12 = vld [vmem:[%s8562_s24 + $0xd0] ss:$8 sps:$4 sm:$0xff]   ;;  %v6352_v13 = vld [vmem:[%s8562_s24 + $0xe4] ss:$8 sps:$4 sm:$0xff]   ;;  %v6354_v14 = vld [vmem:[%s8562_s24 + $0xe0] ss:$8 sps:$4 sm:$0xff]  }
   0xd   :  { %v6355_v15 = vld [vmem:[%s8562_s24 + $0xf4] ss:$8 sps:$4 sm:$0xff]   ;;  %v6357_v16 = vld [vmem:[%s8562_s24 + $0xf0] ss:$8 sps:$4 sm:$0xff]   ;;  %v6361_v17 = vld [vmem:[%s8562_s24 + $0x4] ss:$8 sps:$4 sm:$0xff]  }
   0xe   :  { %267 = vmatpush1.bf16.msra.mxu0 %v6339_v4  ;;  %v6358_v18 = vld [vmem:[%s8563_s27 + $0x4] ss:$8 sps:$4 sm:$0xff]   ;;  %v6359_v19 = vld [vmem:[%s8562_s24] ss:$8 sps:$4 sm:$0xff]   ;;  %v6365_v20 = vld [vmem:[%s8562_s24 + $0x14] ss:$8 sps:$4 sm:$0xff]  }
   0xf   :  { %268 = vmatprep.subr.bf16.mxu0 %v6340_v5  ;;  %v6363_v21 = vld [vmem:[%s8562_s24 + $0x10] ss:$8 sps:$4 sm:$0xff]   ;;  %v6369_v22 = vld [vmem:[%s8562_s24 + $0x24] ss:$8 sps:$4 sm:$0xff]   ;;  %v6362_v23 = vld [vmem:[%s8563_s27 + $0x14] ss:$8 sps:$4 sm:$0xff]  }
  0x10   :  { %v6367_v24 = vld [vmem:[%s8562_s24 + $0x20] ss:$8 sps:$4 sm:$0xff]   ;;  %v6373_v25 = vld [vmem:[%s8562_s24 + $0x34] ss:$8 sps:$4 sm:$0xff]   ;;  %v6371_v26 = vld [vmem:[%s8562_s24 + $0x30] ss:$8 sps:$4 sm:$0xff]  }
  0x11   :  { %v6377_v27 = vld [vmem:[%s8562_s24 + $0x44] ss:$8 sps:$4 sm:$0xff]   ;;  %v6375_v29 = vld [vmem:[%s8562_s24 + $0x40] ss:$8 sps:$4 sm:$0xff]   ;;  %v6381_v30 = vld [vmem:[%s8562_s24 + $0x54] ss:$8 sps:$4 sm:$0xff]  }
  0x12   :  { %269 = vmatpush1.bf16.msra.mxu0 %v6342_v6  ;;  %v6366_v28 = vld [vmem:[%s8563_s27 + $0x24] ss:$8 sps:$4 sm:$0xff]   ;;  %v6379_v31 = vld [vmem:[%s8562_s24 + $0x50] ss:$8 sps:$4 sm:$0xff]   ;;  %v6370_v33 = vld [vmem:[%s8563_s27 + $0x34] ss:$8 sps:$4 sm:$0xff]  }
  0x13   :  { %270 = vmatprep.subr.bf16.mxu0 %v6343_v7  ;;  %v6385_v32 = vld [vmem:[%s8562_s24 + $0x64] ss:$8 sps:$4 sm:$0xff]   ;;  %v6383_v34 = vld [vmem:[%s8562_s24 + $0x60] ss:$8 sps:$4 sm:$0xff]   ;;  %v6389_v35 = vld [vmem:[%s8562_s24 + $0x74] ss:$8 sps:$4 sm:$0xff]  }
  0x14   :  { %v6387_v36 = vld [vmem:[%s8562_s24 + $0x70] ss:$8 sps:$4 sm:$0xff]   ;;  %v6393_v37 = vld [vmem:[%s8562_s24 + $0x104] ss:$8 sps:$4 sm:$0xff]   ;;  %v6378_v39 = vld [vmem:[%s8563_s27 + $0x54] ss:$8 sps:$4 sm:$0xff]  }
  0x15   :  { %v6374_v38 = vld [vmem:[%s8563_s27 + $0x44] ss:$8 sps:$4 sm:$0xff]   ;;  %v6386_v41 = vld [vmem:[%s8563_s27 + $0x74] ss:$0 sps:$4 sm:$0xff]   ;;  %v6390_v42 = vld [vmem:[%s8563_s27] ss:$8 sps:$4 sm:$0xff]  }
  0x16   :  { %271 = vmatpush1.bf16.msra.mxu0 %v6345_v8  ;;  %v6382_v40 = vld [vmem:[%s8563_s27 + $0x64] ss:$8 sps:$4 sm:$0xff]   ;;  %v6391_v43 = vld [vmem:[%s8562_s24 + $0x100] ss:$8 sps:$4 sm:$0xff]   ;;  %v6397_v44 = vld [vmem:[%s8562_s24 + $0x114] ss:$8 sps:$4 sm:$0xff]  }
  0x17   :  { %272 = vmatprep.subr.bf16.mxu0 %v6346_v9  ;;  %v6395_v45 = vld [vmem:[%s8562_s24 + $0x110] ss:$8 sps:$4 sm:$0xff]   ;;  %v6401_v46 = vld [vmem:[%s8562_s24 + $0x124] ss:$8 sps:$4 sm:$0xff]   ;;  %v6399_v48 = vld [vmem:[%s8562_s24 + $0x120] ss:$8 sps:$4 sm:$0xff]  }
  0x18   :  { %v6394_v47 = vld [vmem:[%s8563_s27 + $0x10] ss:$8 sps:$4 sm:$0xff]   ;;  %v6405_v49 = vld [vmem:[%s8562_s24 + $0x134] ss:$8 sps:$4 sm:$0xff]   ;;  %v6409_v51 = vld [vmem:[%s8562_s24 + $0x144] ss:$8 sps:$4 sm:$0xff]  }
  0x19   :  { %v6403_v50 = vld [vmem:[%s8562_s24 + $0x130] ss:$8 sps:$4 sm:$0xff]   ;;  %v6398_v52 = vld [vmem:[%s8563_s27 + $0x20] ss:$8 sps:$4 sm:$0xff]   ;;  %v6413_v54 = vld [vmem:[%s8562_s24 + $0x154] ss:$8 sps:$4 sm:$0xff]  }
  0x1a   :  { %273 = vmatpush1.bf16.msra.mxu0 %v6348_v10  ;;  %v6407_v53 = vld [vmem:[%s8562_s24 + $0x140] ss:$8 sps:$4 sm:$0xff]   ;;  %v6411_v55 = vld [vmem:[%s8562_s24 + $0x150] ss:$8 sps:$4 sm:$0xff]   ;;  %v6417_v56 = vld [vmem:[%s8562_s24 + $0x164] ss:$8 sps:$4 sm:$0xff]  }
  0x1b   :  { %274 = vmatprep.subr.bf16.mxu0 %v6349_v11  ;;  %v6402_v57 = vld [vmem:[%s8563_s27 + $0x30] ss:$8 sps:$4 sm:$0xff]   ;;  %v6415_v58 = vld [vmem:[%s8562_s24 + $0x160] ss:$8 sps:$4 sm:$0xff]   ;;  %v6421_v59 = vld [vmem:[%s8562_s24 + $0x174] ss:$8 sps:$4 sm:$0xff]  }
  0x1c   :  { %v6419_v60 = vld [vmem:[%s8562_s24 + $0x170] ss:$8 sps:$4 sm:$0xff]   ;;  %v6406_v61 = vld [vmem:[%s8563_s27 + $0x40] ss:$8 sps:$4 sm:$0xff]   ;;  %v6430_v5 = vld [vmem:[%s8564_s5 + $0xf4] ss:$8 sps:$4 sm:$0xff]  }
  0x1d   :  { %v6410_v62 = vld [vmem:[%s8563_s27 + $0x50] ss:$8 sps:$4 sm:$0xff]   ;;  %v6414_v63 = vld [vmem:[%s8563_s27 + $0x60] ss:$8 sps:$4 sm:$0xff]   ;;  %1300 = vmatprep.subr.bf16.mxu1 %v6430_v5  ;;  %v6433_v7 = vld [vmem:[%s8564_s5 + $0x104] ss:$8 sps:$4 sm:$0xff]  }
  0x1e   :  { %275 = vmatpush1.bf16.msra.mxu0 %v6351_v12  ;;  %v6418_v0 = vld [vmem:[%s8563_s27 + $0x70] ss:$0 sps:$4 sm:$0xff]   ;;  %v6423_v3 = vld [vmem:[%s8563_s27 + $0x18] ss:$8 sps:$4 sm:$0xff]   ;;  %v6436_v9 = vld [vmem:[%s8564_s5 + $0x114] ss:$8 sps:$4 sm:$0xff]  }
  0x1f   :  { %276 = vmatprep.subr.bf16.mxu0 %v6352_v13  ;;  %v6422_v2 = vld [vmem:[%s8563_s27 + $0x8] ss:$8 sps:$4 sm:$0xff]   ;;  %v6425_v10 = vld [vmem:[%s8563_s27 + $0x38] ss:$8 sps:$4 sm:$0xff]   ;;  %v6439_v12 = vld [vmem:[%s8564_s5 + $0x124] ss:$8 sps:$4 sm:$0xff]  }
  0x20   :  { %v6424_v4 = vld [vmem:[%s8563_s27 + $0x28] ss:$8 sps:$4 sm:$0xff]   ;;  %s8567_s30 = sld [smem:[#allocation7_spill]]  ;;  %s8568_s26 = sld [smem:[#allocation8_spill]] }
  0x21   :  { %v6432_v6 = vld [vmem:[%s8564_s5 + $0xf0] ss:$8 sps:$4 sm:$0xff]   ;;  %v6435_v8 = vld [vmem:[%s8564_s5 + $0x100] ss:$8 sps:$4 sm:$0xff]   ;;  %s8569_s29 = sld [smem:[#allocation9_spill]] }
  0x22   :  { %277 = vmatpush1.bf16.msra.mxu0 %v6354_v14  ;;  %1301 = vmatpush1.bf16.msra.mxu1 %v6432_v6  ;;  %v6438_v11 = vld [vmem:[%s8564_s5 + $0x110] ss:$8 sps:$4 sm:$0xff]   ;;  %v6441_v13 = vld [vmem:[%s8564_s5 + $0x120] ss:$8 sps:$4 sm:$0xff]   ;;  %v6442_v14 = vld [vmem:[%s8564_s5 + $0x134] ss:$8 sps:$4 sm:$0xff]  }
  0x23   :  { %278 = vmatprep.subr.bf16.mxu0 %v6355_v15  ;;  %1302 = vmatprep.subr.bf16.mxu1 %v6433_v7  ;;  %v6426_v15 = vld [vmem:[%s8563_s27 + $0x48] ss:$8 sps:$4 sm:$0xff]  }
  0x26   :  { %279 = vmatpush1.bf16.msra.mxu0 %v6357_v16  ;;  %1303 = vmatpush1.bf16.msra.mxu1 %v6435_v8  ;;  %v6444_v16 = vld [vmem:[%s8564_s5 + $0x130] ss:$8 sps:$4 sm:$0xff]  }
  0x27   :  { %501 = vmatprep.subr.bf16.mxu0 %v6361_v17  ;;  %1304 = vmatprep.subr.bf16.mxu1 %v6436_v9  ;;  %v6445_v17 = vld [vmem:[%s8564_s5 + $0x144] ss:$8 sps:$4 sm:$0xff]  }
  0x29   :  { %297 = vmatmul.mubr.bf16.vlgmr.msra.gmra.mrb[0].mxu0 %v6358_v18  ;;  %v6447_v18 = vld [vmem:[%s8564_s5 + $0x140] ss:$8 sps:$4 sm:$0xff]  }
  0x2a   :  { %502 = vmatpush1.bf16.msra.mxu0 %v6359_v19  ;;  %306 = vmatprep.mubr.bf16.mxu0 %v6821_v1  ;;  %v6448_v19 = vld [vmem:[%s8564_s5 + $0x154] ss:$8 sps:$4 sm:$0xff]  }
  0x2b   :  { %503 = vmatprep.subr.bf16.mxu0 %v6365_v20  ;;  %1305 = vmatpush1.bf16.msra.mxu1 %v6438_v11  ;;  %v6427_v20 = vld [vmem:[%s8563_s27 + $0x58] ss:$8 sps:$4 sm:$0xff]  }
  0x2c   :  { %1306 = vmatprep.subr.bf16.mxu1 %v6439_v12 }
  0x2e   :  { %504 = vmatpush1.bf16.msra.mxu0 %v6363_v21  ;;  %v6450_v21 = vld [vmem:[%s8564_s5 + $0x150] ss:$8 sps:$4 sm:$0xff]  }
  0x2f   :  { %505 = vmatprep.subr.bf16.mxu0 %v6369_v22  ;;  %1307 = vmatpush1.bf16.msra.mxu1 %v6441_v13  ;;  %v6451_v22 = vld [vmem:[%s8564_s5 + $0x164] ss:$8 sps:$4 sm:$0xff]  }
  0x30   :  { %1308 = vmatprep.subr.bf16.mxu1 %v6442_v14 }
  0x31   :  { %307 = vmatmul.mubr.bf16.gmra.mrb[4].mxu0 %v6362_v23  ;;  %v6453_v23 = vld [vmem:[%s8564_s5 + $0x160] ss:$8 sps:$4 sm:$0xff]  }
  0x32   :  { %316 = vmatprep.mubr.bf16.mxu0 %v6821_v1  ;;  %506 = vmatpush1.bf16.msra.mxu0 %v6367_v24  ;;  %v6428_v24 = vld [vmem:[%s8563_s27 + $0x68] ss:$8 sps:$4 sm:$0xff]  }
  0x33   :  { %507 = vmatprep.subr.bf16.mxu0 %v6373_v25  ;;  %1309 = vmatpush1.bf16.msra.mxu1 %v6444_v16  ;;  %v6429_v25 = vld [vmem:[%s8563_s27 + $0x78] ss:$0 sps:$4 sm:$0xff]  }
  0x34   :  { %1310 = vmatprep.subr.bf16.mxu1 %v6445_v17 }
  0x36   :  { %508 = vmatpush1.bf16.msra.mxu0 %v6371_v26  ;;  %v6454_v26 = vld [vmem:[%s8564_s5 + $0x174] ss:$8 sps:$4 sm:$0xff]  }
  0x37   :  { %509 = vmatprep.subr.bf16.mxu0 %v6377_v27  ;;  %1311 = vmatpush1.bf16.msra.mxu1 %v6447_v18  ;;  %v6456_v27 = vld [vmem:[%s8564_s5 + $0x170] ss:$8 sps:$4 sm:$0xff]  }
  0x38   :  { %1312 = vmatprep.subr.bf16.mxu1 %v6448_v19 }
  0x39   :  { %317 = vmatmul.mubr.bf16.gmra.mrb[8].mxu0 %v6366_v28  ;;  %v6457_v28 = vld [vmem:[%s8564_s5 + $0x184] ss:$8 sps:$4 sm:$0xff]  }
  0x3a   :  { %326 = vmatprep.mubr.bf16.mxu0 %v6821_v1  ;;  %510 = vmatpush1.bf16.msra.mxu0 %v6375_v29  ;;  %v6459_v29 = vld [vmem:[%s8564_s5 + $0x180] ss:$8 sps:$4 sm:$0xff]  }
  0x3b   :  { %511 = vmatprep.subr.bf16.mxu0 %v6381_v30  ;;  %1313 = vmatpush1.bf16.msra.mxu1 %v6450_v21  ;;  %v6460_v30 = vld [vmem:[%s8564_s5 + $0x194] ss:$8 sps:$4 sm:$0xff]  }
  0x3c   :  { %1314 = vmatprep.subr.bf16.mxu1 %v6451_v22 }
  0x3e   :  { %512 = vmatpush1.bf16.msra.mxu0 %v6379_v31  ;;  %v6462_v31 = vld [vmem:[%s8564_s5 + $0x190] ss:$8 sps:$4 sm:$0xff]  }
  0x3f   :  { %513 = vmatprep.subr.bf16.mxu0 %v6385_v32  ;;  %1315 = vmatpush1.bf16.msra.mxu1 %v6453_v23  ;;  %v6463_v32 = vld [vmem:[%s8564_s5 + $0x1a4] ss:$8 sps:$4 sm:$0xff]  }
  0x40   :  { %1316 = vmatprep.subr.bf16.mxu1 %v6454_v26 }
  0x41   :  { %327 = vmatmul.mubr.bf16.gmra.mrb[12].mxu0 %v6370_v33  ;;  %v6465_v33 = vld [vmem:[%s8564_s5 + $0x1a0] ss:$8 sps:$4 sm:$0xff]  }
  0x42   :  { %336 = vmatprep.mubr.bf16.mxu0 %v6821_v1  ;;  %514 = vmatpush1.bf16.msra.mxu0 %v6383_v34  ;;  %v6466_v34 = vld [vmem:[%s8564_s5 + $0x1b4] ss:$8 sps:$4 sm:$0xff]  }
  0x43   :  { %515 = vmatprep.subr.bf16.mxu0 %v6389_v35  ;;  %1317 = vmatpush1.bf16.msra.mxu1 %v6456_v27  ;;  %v6468_v35 = vld [vmem:[%s8564_s5 + $0x1b0] ss:$8 sps:$4 sm:$0xff]  }
  0x44   :  { %1318 = vmatprep.subr.bf16.mxu1 %v6457_v28 }
  0x46   :  { %516 = vmatpush1.bf16.msra.mxu0 %v6387_v36  ;;  %v6469_v36 = vld [vmem:[%s8564_s5 + $0x1c4] ss:$8 sps:$4 sm:$0xff]  }
  0x47   :  { %771 = vmatprep.subr.bf16.mxu0 %v6393_v37  ;;  %1319 = vmatpush1.bf16.msra.mxu1 %v6459_v29  ;;  %v6471_v37 = vld [vmem:[%s8564_s5 + $0x1c0] ss:$8 sps:$4 sm:$0xff]  }
  0x48   :  { %1320 = vmatprep.subr.bf16.mxu1 %v6460_v30 }
  0x49   :  { %337 = vmatmul.mubr.bf16.gmra.mrb[16].mxu0 %v6374_v38  ;;  %v6472_v38 = vld [vmem:[%s8564_s5 + $0x1d4] ss:$8 sps:$4 sm:$0xff]  }
  0x4a   :  { %346 = vmatprep.mubr.bf16.mxu0 %v6821_v1 }
  0x4b   :  { %1321 = vmatpush1.bf16.msra.mxu1 %v6462_v31 }
  0x4c   :  { %1322 = vmatprep.subr.bf16.mxu1 %v6463_v32 }
  0x4f   :  { %1323 = vmatpush1.bf16.msra.mxu1 %v6465_v33 }
  0x50   :  { %1324 = vmatprep.subr.bf16.mxu1 %v6466_v34 }
  0x51   :  { %347 = vmatmul.mubr.bf16.gmra.mrb[20].mxu0 %v6378_v39  ;;  %v6474_v39 = vld [vmem:[%s8564_s5 + $0x1d0] ss:$8 sps:$4 sm:$0xff]  }
  0x52   :  { %356 = vmatprep.mubr.bf16.mxu0 %v6821_v1 }
  0x53   :  { %1325 = vmatpush1.bf16.msra.mxu1 %v6468_v35 }
  0x54   :  { %1326 = vmatprep.subr.bf16.mxu1 %v6469_v36  ;;  %v6475_v36 = vld [vmem:[%s8564_s5] ss:$8 sps:$4 sm:$0xff]  }
  0x57   :  { %1327 = vmatpush1.bf16.msra.mxu1 %v6471_v37 }
  0x58   :  { %1328 = vmatprep.subr.bf16.mxu1 %v6472_v38 }
  0x59   :  { %357 = vmatmul.mubr.bf16.gmra.mrb[24].mxu0 %v6382_v40  ;;  %v6477_v40 = vld [vmem:[%s8564_s5 + $0x4] ss:$8 sps:$4 sm:$0xff]  }
  0x5a   :  { %366 = vmatprep.mubr.bf16.mxu0 %v6821_v1 }
  0x5b   :  { %1329 = vmatpush1.bf16.msra.mxu1 %v6474_v39 }
  0x5c   :  { %1593 = vmatprep.subr.bf16.mxu1 %v6477_v40  ;;  %v6480_v40 = vld [vmem:[%s8564_s5 + $0x14] ss:$8 sps:$4 sm:$0xff]  }
  0x61   :  { %367 = vmatmul.mubr.bf16.gmra.mrb[28].mxu0 %v6386_v41 }
  0x62   :  { %533 = vmatprep.mubr.bf16.mxu0 %v6821_v1 }
  0x69   :  { %534 = vmatmul.mubr.bf16.vlgmr.msra.gmra.mrb[0].mxu0 %v6390_v42 }
  0x6a   :  { %772 = vmatpush1.bf16.msra.mxu0 %v6391_v43  ;;  %543 = vmatprep.mubr.bf16.mxu0 %v6821_v1 }
  0x6b   :  { %773 = vmatprep.subr.bf16.mxu0 %v6397_v44 }
  0x6e   :  { %774 = vmatpush1.bf16.msra.mxu0 %v6395_v45  ;;  %v914_v45 = vlaneseq }
  0x6f   :  { %775 = vmatprep.subr.bf16.mxu0 %v6401_v46 }
  0x70   :  { %v915_v46 = vshrl.u32 %v914_v45, 7 }
  0x71   :  { %544 = vmatmul.mubr.bf16.gmra.mrb[4].mxu0 %v6394_v47 }
  0x72   :  { %553 = vmatprep.mubr.bf16.mxu0 %v6821_v1  ;;  %776 = vmatpush1.bf16.msra.mxu0 %v6399_v48 }
  0x73   :  { %777 = vmatprep.subr.bf16.mxu0 %v6405_v49 }
  0x76   :  { %778 = vmatpush1.bf16.msra.mxu0 %v6403_v50  ;;  %v7279_v50 = vsub.s32 0, %v915_v46 }
  0x77   :  { %779 = vmatprep.subr.bf16.mxu0 %v6409_v51 }
  0x79   :  { %554 = vmatmul.mubr.bf16.gmra.mrb[8].mxu0 %v6398_v52 }
  0x7a   :  { %563 = vmatprep.mubr.bf16.mxu0 %v6821_v1  ;;  %780 = vmatpush1.bf16.msra.mxu0 %v6407_v53  ;;  %v912_v53 = vld [vmem:[%s8565_s7] sm:$0x3] }
  0x7b   :  { %781 = vmatprep.subr.bf16.mxu0 %v6413_v54  ;;  %v7286_v54 = vsub.s32 1, %v915_v46  ;;  %v6478_v46 = vld [vmem:[%s8564_s5 + $0x10] ss:$8 sps:$4 sm:$0xff]  }
  0x7e   :  { %782 = vmatpush1.bf16.msra.mxu0 %v6411_v55 }
  0x7f   :  { %783 = vmatprep.subr.bf16.mxu0 %v6417_v56  ;;  %v7289_v56 = vrot.slane %v912_v53, %v7279_v50 }
  0x81   :  { %564 = vmatmul.mubr.bf16.gmra.mrb[12].mxu0 %v6402_v57  ;;  %v7292_v57 = vrot.slane %v912_v53, %v7286_v54 }
  0x82   :  { %573 = vmatprep.mubr.bf16.mxu0 %v6821_v1  ;;  %784 = vmatpush1.bf16.msra.mxu0 %v6415_v58 }
  0x83   :  { %785 = vmatprep.subr.bf16.mxu0 %v6421_v59 }
  0x86   :  { %786 = vmatpush1.bf16.msra.mxu0 %v6419_v60 }
  0x89   :  { %574 = vmatmul.mubr.bf16.gmra.mrb[16].mxu0 %v6406_v61 }
  0x8a   :  { %583 = vmatprep.mubr.bf16.mxu0 %v6821_v1 }
  0x91   :  { %584 = vmatmul.mubr.bf16.gmra.mrb[20].mxu0 %v6410_v62 }
  0x92   :  { %593 = vmatprep.mubr.bf16.mxu0 %v6821_v1 }
  0x99   :  { %594 = vmatmul.mubr.bf16.gmra.mrb[24].mxu0 %v6414_v63 }
  0x9a   :  { %603 = vmatprep.mubr.bf16.mxu0 %v6821_v1 }
  0xa1   :  { %604 = vmatmul.mubr.bf16.gmra.mrb[32].mxu0 %v6418_v0 }
  0xa2   :  { %803 = vmatprep.mubr.bf16.mxu0 %v6821_v1 }
  0xa9   :  { %804 = vmatmul.mubr.bf16.vlgmr.msra.gmra.mrb[0].mxu0 %v6422_v2 }
  0xaa   :  { %813 = vmatprep.mubr.bf16.mxu0 %v6821_v1 }
  0xb1   :  { %814 = vmatmul.mubr.bf16.gmra.mrb[4].mxu0 %v6423_v3 }
  0xb2   :  { %823 = vmatprep.mubr.bf16.mxu0 %v6821_v1 }
  0xb9   :  { %824 = vmatmul.mubr.bf16.gmra.mrb[8].mxu0 %v6424_v4 }
  0xba   :  { %833 = vmatprep.mubr.bf16.mxu0 %v6821_v1 }
  0xc1   :  { %834 = vmatmul.mubr.bf16.gmra.mrb[12].mxu0 %v6425_v10 }
  0xc2   :  { %843 = vmatprep.mubr.bf16.mxu0 %v6821_v1 }
  0xc9   :  { %844 = vmatmul.mubr.bf16.gmra.mrb[16].mxu0 %v6426_v15 }
  0xca   :  { %853 = vmatprep.mubr.bf16.mxu0 %v6821_v1 }
  0xd1   :  { %854 = vmatmul.mubr.bf16.gmra.mrb[20].mxu0 %v6427_v20 }
  0xd2   :  { %863 = vmatprep.mubr.bf16.mxu0 %v6821_v1 }
  0xd9   :  { %864 = vmatmul.mubr.bf16.gmra.mrb[24].mxu0 %v6428_v24 }
  0xda   :  { %873 = vmatprep.mubr.bf16.mxu0 %v6821_v1 }
  0xe1   :  { %874 = vmatmul.mubr.bf16.gmra.mrb[36].mxu0 %v6429_v25 }
 0x134   :  { %v368_v41 = vpop.f32.mrb[28].mxu0 }
 0x135   :  { %v370_v42 = vpop.f32.mrb[29].mxu0 }
 0x136   :  { %v372_v43 = vpop.f32.mrb[30].mxu0 }
 0x137   :  { %v373_v44 = vpop.f32.mrb[31].mxu0 }
 0x174   :  { %v605_v47 = vpop.f32.mrb[32].mxu0 }
 0x175   :  { %v7277_v48 = vadd.f32 %v605_v47, %v368_v41  ;;  %v607_v49 = vpop.f32.mrb[33].mxu0 }
 0x176   :  { %v7281_v51 = vadd.f32 %v607_v49, %v370_v42  ;;  %v609_v52 = vpop.f32.mrb[34].mxu0 }
 0x177   :  { %v610_v55 = vpop.f32.mrb[35].mxu0  ;;  %v6483_v52 = vld [vmem:[%s8564_s5 + $0x24] ss:$8 sps:$4 sm:$0xff]  }
 0x17c   :  { %v805_v58 = vpop.f32.mrb[0].mxu0 }
 0x17d   :  { %v924_v59 = vadd.f32 %v7289_v56, %v805_v58  ;;  %v807_v60 = vpop.f32.mrb[1].mxu0 }
 0x17e   :  { %v925_v61 = vadd.f32 %v7292_v57, %v807_v60  ;;  %v809_v62 = vpop.f32.mrb[2].mxu0 }
 0x17f   :  { %v926_v63 = vadd.f32 %v7289_v56, %v809_v62  ;;  %v811_v0 = vpop.f32.mrb[3].mxu0  ;;  %v954_v3 = vmax.f32 %v924_v59, 0.0 }
 0x180   :  { %v927_v2 = vadd.f32 %v7292_v57, %v811_v0  ;;  %v955_v5 = vmax.f32 %v925_v61, 0.0 }
 0x181   :  { %v956_v4 = vmax.f32 %v926_v63, 0.0 }
 0x182   :  { %v957_v6 = vmax.f32 %v927_v2, 0.0 }
 0x183   :  { %v7298_v7 = vpack.c.bf16 %v956_v4, %v954_v3  ;;  %v6481_v3 = vld [vmem:[%s8564_s5 + $0x20] ss:$8 sps:$4 sm:$0xff]  }
 0x184   :  { %v7300_v8 = vpack.c.bf16 %v957_v6, %v955_v5  ;;  %v815_v9 = vpop.f32.mrb[4].mxu0 }
 0x185   :  { %v928_v10 = vadd.f32 %v7289_v56, %v815_v9  ;;  %v817_v11 = vpop.f32.mrb[5].mxu0  ;;  %v1018_v31 = vunpack.c.h.b16 %v7298_v7  ;;  %v6486_v9 = vld [vmem:[%s8564_s5 + $0x34] ss:$8 sps:$4 sm:$0xff]  }
 0x186   :  { %v929_v12 = vadd.f32 %v7292_v57, %v817_v11  ;;  %v819_v13 = vpop.f32.mrb[6].mxu0  ;;  %v1019_v29 = vunpack.c.h.b16 %v7300_v8 }
 0x187   :  { %v930_v14 = vadd.f32 %v7289_v56, %v819_v13  ;;  %v821_v15 = vpop.f32.mrb[7].mxu0  ;;  %v958_v17 = vmax.f32 %v928_v10, 0.0 }
 0x188   :  { %v931_v16 = vadd.f32 %v7292_v57, %v821_v15  ;;  %v959_v19 = vmax.f32 %v929_v12, 0.0  ;;  %v6484_v15 = vld [vmem:[%s8564_s5 + $0x30] ss:$8 sps:$4 sm:$0xff]  }
 0x189   :  { %v960_v18 = vmax.f32 %v930_v14, 0.0 }
 0x18a   :  { %v961_v20 = vmax.f32 %v931_v16, 0.0 }
 0x18b   :  { %v7306_v21 = vpack.c.bf16 %v960_v18, %v958_v17  ;;  %v6489_v18 = vld [vmem:[%s8564_s5 + $0x44] ss:$8 sps:$4 sm:$0xff]  }
 0x18c   :  { %v7308_v22 = vpack.c.bf16 %v961_v20, %v959_v19  ;;  %v825_v23 = vpop.f32.mrb[8].mxu0 }
 0x18d   :  { %v932_v24 = vadd.f32 %v7289_v56, %v825_v23  ;;  %v827_v25 = vpop.f32.mrb[9].mxu0  ;;  %v1020_v26 = vunpack.c.l.b16 %v7306_v21  ;;  %v1022_v63 = vunpack.c.h.b16 %v7306_v21 }
 0x18e   :  { %v933_v27 = vadd.f32 %v7292_v57, %v827_v25  ;;  %v829_v28 = vpop.f32.mrb[10].mxu0  ;;  %v1021_v30 = vunpack.c.l.b16 %v7308_v22  ;;  %v1023_v59 = vunpack.c.h.b16 %v7308_v22 }
 0x18f   :  { %v934_v32 = vadd.f32 %v7289_v56, %v829_v28  ;;  %v831_v33 = vpop.f32.mrb[11].mxu0  ;;  %v962_v37 = vmax.f32 %v932_v24, 0.0  ;;  %v1107_v39 = vpack.c.b16 %v1020_v26, %v1018_v31  ;;  %v6487_v31 = vld [vmem:[%s8564_s5 + $0x40] ss:$8 sps:$4 sm:$0xff]  }
 0x190   :  { %v935_v34 = vadd.f32 %v7292_v57, %v831_v33  ;;  %v1108_v35 = vpack.c.b16 %v1021_v30, %v1019_v29  ;;  %v963_v41 = vmax.f32 %v933_v27, 0.0 }
 0x191   :  { %v964_v38 = vmax.f32 %v934_v32, 0.0 }
 0x192   :  { %v965_v42 = vmax.f32 %v935_v34, 0.0  ;;  %5264 = vmatprep.mubr.msk.bf16.mxu1 %vm1278_vm0, %v1108_v35  ;;  %v6492_v35 = vld [vmem:[%s8564_s5 + $0x54] ss:$8 sps:$4 sm:$0xff]  }
 0x193   :  { %v7325_v43 = vpack.c.bf16 %v964_v38, %v962_v37  ;;  %1333 = vmatmul.mubr.bf16.vlgmr.msra.gmra.mrb[0].mxu1 %v1107_v39 }
 0x194   :  { %v7327_v44 = vpack.c.bf16 %v965_v42, %v963_v41  ;;  %1594 = vmatpush1.bf16.msra.mxu1 %v6475_v36  ;;  %v835_v45 = vpop.f32.mrb[12].mxu0  ;;  %v6490_v41 = vld [vmem:[%s8564_s5 + $0x50] ss:$8 sps:$4 sm:$0xff]  }
 0x195   :  { %v936_v47 = vadd.f32 %v7289_v56, %v835_v45  ;;  %v837_v49 = vpop.f32.mrb[13].mxu0  ;;  %1595 = vmatprep.subr.bf16.mxu1 %v6480_v40  ;;  %v1024_v53 = vunpack.c.l.b16 %v7325_v43  ;;  %v1026_v28 = vunpack.c.h.b16 %v7325_v43 }
 0x196   :  { %v937_v55 = vadd.f32 %v7292_v57, %v837_v49  ;;  %v839_v58 = vpop.f32.mrb[14].mxu0  ;;  %v1025_v60 = vunpack.c.l.b16 %v7327_v44  ;;  %v1027_v24 = vunpack.c.h.b16 %v7327_v44 }
 0x197   :  { %v938_v61 = vadd.f32 %v7289_v56, %v839_v58  ;;  %v841_v62 = vpop.f32.mrb[15].mxu0  ;;  %v966_v4 = vmax.f32 %v936_v47, 0.0  ;;  %v1109_v6 = vpack.c.b16 %v1024_v53, %v1022_v63  ;;  %v6493_v63 = vld [vmem:[%s8564_s5 + $0x60] ss:$8 sps:$4 sm:$0xff]  }
 0x198   :  { %v939_v0 = vadd.f32 %v7292_v57, %v841_v62  ;;  %1596 = vmatpush1.bf16.msra.mxu1 %v6478_v46  ;;  %v1110_v2 = vpack.c.b16 %v1025_v60, %v1023_v59  ;;  %v967_v10 = vmax.f32 %v937_v55, 0.0  ;;  %v6495_v46 = vld [vmem:[%s8564_s5 + $0x64] ss:$8 sps:$4 sm:$0xff]  }
 0x199   :  { %v968_v5 = vmax.f32 %v938_v61, 0.0  ;;  %1597 = vmatprep.subr.bf16.mxu1 %v6483_v52 }
 0x19a   :  { %v969_v11 = vmax.f32 %v939_v0, 0.0  ;;  %5265 = vmatprep.mubr.msk.bf16.mxu1 %vm1278_vm0, %v1110_v2 }
 0x19b   :  { %v7350_v12 = vpack.c.bf16 %v968_v5, %v966_v4  ;;  %1343 = vmatmul.mubr.bf16.gmra.mrb[4].mxu1 %v1109_v6  ;;  %v6498_v4 = vld [vmem:[%s8564_s5 + $0x74] ss:$8 sps:$4 sm:$0xff]  }
 0x19c   :  { %v7352_v13 = vpack.c.bf16 %v969_v11, %v967_v10  ;;  %1598 = vmatpush1.bf16.msra.mxu1 %v6481_v3  ;;  %v845_v14 = vpop.f32.mrb[16].mxu0 }
 0x19d   :  { %v940_v16 = vadd.f32 %v7289_v56, %v845_v14  ;;  %v847_v17 = vpop.f32.mrb[17].mxu0  ;;  %1599 = vmatprep.subr.bf16.mxu1 %v6486_v9  ;;  %v1028_v19 = vunpack.c.l.b16 %v7350_v12  ;;  %v1030_v60 = vunpack.c.h.b16 %v7350_v12  ;;  %v6496_v14 = vld [vmem:[%s8564_s5 + $0x70] ss:$8 sps:$4 sm:$0xff]  }
 0x19e   :  { %v941_v20 = vadd.f32 %v7292_v57, %v847_v17  ;;  %v849_v23 = vpop.f32.mrb[18].mxu0  ;;  %v1029_v25 = vunpack.c.l.b16 %v7352_v13  ;;  %v1031_v53 = vunpack.c.h.b16 %v7352_v13  ;;  %v6501_v17 = vld [vmem:[%s8564_s5 + $0x84] ss:$8 sps:$4 sm:$0xff]  }
 0x19f   :  { %v942_v26 = vadd.f32 %v7289_v56, %v849_v23  ;;  %v851_v27 = vpop.f32.mrb[19].mxu0  ;;  %v970_v32 = vmax.f32 %v940_v16, 0.0  ;;  %v1111_v34 = vpack.c.b16 %v1028_v19, %v1026_v28 }
 0x1a0   :  { %v943_v29 = vadd.f32 %v7292_v57, %v851_v27  ;;  %1600 = vmatpush1.bf16.msra.mxu1 %v6484_v15  ;;  %v1112_v30 = vpack.c.b16 %v1029_v25, %v1027_v24  ;;  %v971_v36 = vmax.f32 %v941_v20, 0.0 }
 0x1a1   :  { %v972_v33 = vmax.f32 %v942_v26, 0.0  ;;  %1601 = vmatprep.subr.bf16.mxu1 %v6489_v18 }
 0x1a2   :  { %v973_v37 = vmax.f32 %v943_v29, 0.0  ;;  %5266 = vmatprep.mubr.msk.bf16.mxu1 %vm1278_vm0, %v1112_v30  ;;  %v6499_v30 = vld [vmem:[%s8564_s5 + $0x80] ss:$8 sps:$4 sm:$0xff]  }
 0x1a3   :  { %v7375_v38 = vpack.c.bf16 %v972_v33, %v970_v32  ;;  %1353 = vmatmul.mubr.bf16.gmra.mrb[8].mxu1 %v1111_v34  ;;  %v6504_v34 = vld [vmem:[%s8564_s5 + $0x94] ss:$8 sps:$4 sm:$0xff]  }
 0x1a4   :  { %v7377_v39 = vpack.c.bf16 %v973_v37, %v971_v36  ;;  %1602 = vmatpush1.bf16.msra.mxu1 %v6487_v31  ;;  %v855_v40 = vpop.f32.mrb[20].mxu0 }
 0x1a5   :  { %v944_v42 = vadd.f32 %v7289_v56, %v855_v40  ;;  %v857_v45 = vpop.f32.mrb[21].mxu0  ;;  %1603 = vmatprep.subr.bf16.mxu1 %v6492_v35  ;;  %v1032_v47 = vunpack.c.l.b16 %v7375_v38  ;;  %v1034_v27 = vunpack.c.h.b16 %v7375_v38 }
 0x1a6   :  { %v945_v49 = vadd.f32 %v7292_v57, %v857_v45  ;;  %v859_v52 = vpop.f32.mrb[22].mxu0  ;;  %v1033_v55 = vunpack.c.l.b16 %v7377_v39  ;;  %v1035_v23 = vunpack.c.h.b16 %v7377_v39 }
 0x1a7   :  { %v946_v58 = vadd.f32 %v7289_v56, %v859_v52  ;;  %v861_v59 = vpop.f32.mrb[23].mxu0  ;;  %v974_v0 = vmax.f32 %v944_v42, 0.0  ;;  %v1113_v3 = vpack.c.b16 %v1032_v47, %v1030_v60  ;;  %v6502_v42 = vld [vmem:[%s8564_s5 + $0x90] ss:$8 sps:$4 sm:$0xff]  }
 0x1a8   :  { %v947_v61 = vadd.f32 %v7292_v57, %v861_v59  ;;  %1604 = vmatpush1.bf16.msra.mxu1 %v6490_v41  ;;  %v1114_v62 = vpack.c.b16 %v1033_v55, %v1031_v53  ;;  %v975_v5 = vmax.f32 %v945_v49, 0.0  ;;  %v6507_v49 = vld [vmem:[%s8564_s5 + $0xa4] ss:$8 sps:$4 sm:$0xff]  }
 0x1a9   :  { %v976_v2 = vmax.f32 %v946_v58, 0.0  ;;  %1605 = vmatprep.subr.bf16.mxu1 %v6495_v46 }
 0x1aa   :  { %v977_v6 = vmax.f32 %v947_v61, 0.0  ;;  %5267 = vmatprep.mubr.msk.bf16.mxu1 %vm1278_vm0, %v1114_v62 }
 0x1ab   :  { %v7400_v9 = vpack.c.bf16 %v976_v2, %v974_v0  ;;  %1363 = vmatmul.mubr.bf16.gmra.mrb[12].mxu1 %v1113_v3  ;;  %v6513_v2 = vld [vmem:[%s8564_s5 + $0xc4] ss:$8 sps:$4 sm:$0xff]   ;;  %v6511_v3 = vld [vmem:[%s8564_s5 + $0xc0] ss:$8 sps:$4 sm:$0xff]  }
 0x1ac   :  { %v7402_v10 = vpack.c.bf16 %v977_v6, %v975_v5  ;;  %1606 = vmatpush1.bf16.msra.mxu1 %v6493_v63  ;;  %v865_v11 = vpop.f32.mrb[24].mxu0  ;;  %v6505_v63 = vld [vmem:[%s8564_s5 + $0xa0] ss:$8 sps:$4 sm:$0xff]   ;;  %v6516_v5 = vld [vmem:[%s8564_s5 + $0xd4] ss:$8 sps:$4 sm:$0xff]  }
 0x1ad   :  { %v948_v15 = vadd.f32 %v7289_v56, %v865_v11  ;;  %v867_v16 = vpop.f32.mrb[25].mxu0  ;;  %1607 = vmatprep.subr.bf16.mxu1 %v6498_v4  ;;  %v1036_v18 = vunpack.c.l.b16 %v7400_v9  ;;  %v1038_v60 = vunpack.c.h.b16 %v7400_v9  ;;  %v6514_v6 = vld [vmem:[%s8564_s5 + $0xd0] ss:$8 sps:$4 sm:$0xff]   ;;  %v6519_v11 = vld [vmem:[%s8564_s5 + $0xe4] ss:$8 sps:$4 sm:$0xff]  }
 0x1ae   :  { %v949_v19 = vadd.f32 %v7292_v57, %v867_v16  ;;  %v869_v20 = vpop.f32.mrb[26].mxu0  ;;  %v1037_v24 = vunpack.c.l.b16 %v7402_v10  ;;  %v1039_v52 = vunpack.c.h.b16 %v7402_v10  ;;  %v6525_v16 = vld [vmem:[%s8564_s5 + $0x1f4] ss:$8 sps:$4 sm:$0xff]  }
 0x1af   :  { %v950_v25 = vadd.f32 %v7289_v56, %v869_v20  ;;  %v871_v26 = vpop.f32.mrb[27].mxu0  ;;  %v7421_v31 = vmax.f32 %v948_v15, 0.0  ;;  %v1115_v33 = vpack.c.b16 %v1036_v18, %v1034_v27  ;;  %v6522_v15 = vld [vmem:[%s8564_s5 + $0x1e4] ss:$8 sps:$4 sm:$0xff]   ;;  %v6529_v20 = vld [vmem:[%s8564_s5 + $0x210] ss:$8 sps:$4 sm:$0xff]  }
 0x1b0   :  { %v951_v28 = vadd.f32 %v7292_v57, %v871_v26  ;;  %1608 = vmatpush1.bf16.msra.mxu1 %v6496_v14  ;;  %v1116_v29 = vpack.c.b16 %v1037_v24, %v1035_v23  ;;  %v7426_v35 = vmax.f32 %v949_v19, 0.0  ;;  %v6517_v14 = vld [vmem:[%s8564_s5 + $0xe0] ss:$8 sps:$4 sm:$0xff]   ;;  %v6528_v18 = vld [vmem:[%s8564_s5 + $0x204] ss:$8 sps:$4 sm:$0xff]  }
 0x1b1   :  { %v980_v32 = vmax.f32 %v950_v25, 0.0  ;;  %1609 = vmatprep.subr.bf16.mxu1 %v6501_v17  ;;  %v6523_v17 = vld [vmem:[%s8564_s5 + $0x1f0] ss:$8 sps:$4 sm:$0xff]   ;;  %v6526_v19 = vld [vmem:[%s8564_s5 + $0x200] ss:$8 sps:$4 sm:$0xff]  }
 0x1b2   :  { %v981_v36 = vmax.f32 %v951_v28, 0.0  ;;  %5268 = vmatprep.mubr.msk.bf16.mxu1 %vm1278_vm0, %v1116_v29  ;;  %v6534_v23 = vld [vmem:[%s8564_s5 + $0x224] ss:$8 sps:$4 sm:$0xff]   ;;  %v6532_v24 = vld [vmem:[%s8564_s5 + $0x220] ss:$8 sps:$4 sm:$0xff]  }
 0x1b3   :  { %v7430_v37 = vpack.c.bf16 %v980_v32, %v7421_v31  ;;  %1373 = vmatmul.mubr.bf16.gmra.mrb[16].mxu1 %v1115_v33  ;;  %v5913_v4 = vpack.c.bf16 %v980_v32, %v980_v32  ;;  %v6537_v25 = vld [vmem:[%s8564_s5 + $0x234] ss:$8 sps:$4 sm:$0xff]   ;;  %v6535_v26 = vld [vmem:[%s8564_s5 + $0x230] ss:$8 sps:$4 sm:$0xff]   ;;  %v6540_v27 = vld [vmem:[%s8564_s5 + $0x244] ss:$8 sps:$4 sm:$0xff]  }
 0x1b4   :  { %v7433_v40 = vpack.c.bf16 %v981_v36, %v7426_v35  ;;  %1610 = vmatpush1.bf16.msra.mxu1 %v6499_v30  ;;  %v875_v41 = vpop.f32.mrb[36].mxu0  ;;  %v6538_v28 = vld [vmem:[%s8564_s5 + $0x240] ss:$8 sps:$4 sm:$0xff]   ;;  %v6543_v29 = vld [vmem:[%s8564_s5 + $0x254] ss:$8 sps:$4 sm:$0xff]  }
 0x1b5   :  { %v1040_v45 = vunpack.c.l.b16 %v7430_v37  ;;  %v910_v46 = vadd.f32 %v875_v41, %v7277_v48  ;;  %v877_v47 = vpop.f32.mrb[37].mxu0  ;;  %1611 = vmatprep.subr.bf16.mxu1 %v6504_v34  ;;  %v6541_v30 = vld [vmem:[%s8564_s5 + $0x250] ss:$8 sps:$4 sm:$0xff]   ;;  %v6546_v32 = vld [vmem:[%s8564_s5 + $0x264] ss:$8 sps:$4 sm:$0xff]  }
 0x1b6   :  { %v1041_v53 = vunpack.c.l.b16 %v7433_v40  ;;  %v911_v55 = vadd.f32 %v877_v47, %v7281_v51  ;;  %v879_v58 = vpop.f32.mrb[38].mxu0  ;;  %v6510_v51 = vld [vmem:[%s8564_s5 + $0xb4] ss:$8 sps:$4 sm:$0xff]   ;;  %v6544_v33 = vld [vmem:[%s8564_s5 + $0x260] ss:$8 sps:$4 sm:$0xff]  }
 0x1b7   :  { %v7447_v59 = vadd.f32 %v7289_v56, %v910_v46  ;;  %v880_v61 = vpop.f32.mrb[39].mxu0  ;;  %v1117_v0 = vpack.c.b16 %v1040_v45, %v1038_v60  ;;  %v5914_v56 = vpack.c.bf16 %v981_v36, %v981_v36  ;;  %v6549_v34 = vld [vmem:[%s8564_s5 + $0x274] ss:$8 sps:$4 sm:$0xff]   ;;  %v6547_v36 = vld [vmem:[%s8564_s5 + $0x270] ss:$8 sps:$4 sm:$0xff]   ;;  %v5916_v46 = vpack.c.bf16 %v7426_v35, %v7426_v35 }
 0x1b8   :  { %v1118_v48 = vpack.c.b16 %v1041_v53, %v1039_v52  ;;  %v7451_v62 = vadd.f32 %v7292_v57, %v911_v55  ;;  %1612 = vmatpush1.bf16.msra.mxu1 %v6502_v42  ;;  %v6508_v57 = vld [vmem:[%s8564_s5 + $0xb0] ss:$8 sps:$4 sm:$0xff]   ;;  %v6552_v41 = vld [vmem:[%s8564_s5 + $0x284] ss:$8 sps:$4 sm:$0xff]   ;;  %v6550_v42 = vld [vmem:[%s8564_s5 + $0x280] ss:$8 sps:$4 sm:$0xff]   ;;  %v5915_v35 = vpack.c.bf16 %v7421_v31, %v7421_v31 }
 0x1b9   :  { %1613 = vmatprep.subr.bf16.mxu1 %v6507_v49  ;;  %v6555_v45 = vld [vmem:[%s8564_s5 + $0x294] ss:$8 sps:$4 sm:$0xff]   ;;  %v6553_v47 = vld [vmem:[%s8564_s5 + $0x290] ss:$8 sps:$4 sm:$0xff]   ;;  %v6558_v49 = vld [vmem:[%s8564_s5 + $0x2a4] ss:$8 sps:$4 sm:$0xff]  }
 0x1ba   :  { %5269 = vmatprep.mubr.msk.bf16.mxu1 %vm1278_vm0, %v1118_v48  ;;  %v6556_v52 = vld [vmem:[%s8564_s5 + $0x2a0] ss:$8 sps:$4 sm:$0xff]   ;;  %v6561_v53 = vld [vmem:[%s8564_s5 + $0x2b4] ss:$8 sps:$4 sm:$0xff]   ;;  %v6559_v55 = vld [vmem:[%s8564_s5 + $0x2b0] ss:$8 sps:$4 sm:$0xff]  }
 0x1bb   :  { %1383 = vmatmul.mubr.bf16.gmra.mrb[20].mxu1 %v1117_v0  ;;  %v6564_v58 = vld [vmem:[%s8564_s5 + $0x2c4] ss:$8 sps:$4 sm:$0xff]   ;;  %v6562_v31 = vld [vmem:[%s8564_s5 + $0x2c0] ss:$8 sps:$4 sm:$0xff]   ;;  %v6567_v60 = vld [vmem:[%s8566_s0 + $0xd4] ss:$8 sps:$4 sm:$0xff]  }
 0x1bc   :  { %1614 = vmatpush1.bf16.msra.mxu1 %v6505_v63  ;;  %5270 = vmatprep.mubr.msk.bf16.mxu1 %vm1278_vm0, %v5914_v56  ;;  %v6579_v61 = vld [vmem:[%s8566_s0 + $0x114] ss:$8 sps:$4 sm:$0xff]   ;;  %v6582_v48 = vld [vmem:[%s8566_s0 + $0x124] ss:$8 sps:$4 sm:$0xff]   ;;  %v983_v0 = vmax.f32 %v7451_v62, 0.0 }
 0x1bd   :  { %1615 = vmatprep.subr.bf16.mxu1 %v6510_v51  ;;  %2334 = vmatprep.subr.bf16.mxu0 %v6567_v60  ;;  %v6585_v63 = vld [vmem:[%s8566_s0 + $0x134] ss:$8 sps:$4 sm:$0xff]   ;;  %v6586_v62 = vld [vmem:[%s8566_s0 + $0x140] ss:$8 sps:$4 sm:$0xff]  }
 0x1be   :  { %v5918_v51 = vpack.c.bf16 %v983_v0, %v983_v0  ;;  %v6609_v0 = vld [vmem:[%s8566_s0 + $0x14] ss:$8 sps:$4 sm:$0xff]  }
 0x1c0   :  { %1616 = vmatpush1.bf16.msra.mxu1 %v6508_v57  ;;  %v6588_v57 = vld [vmem:[%s8566_s0 + $0x144] ss:$8 sps:$4 sm:$0xff]  }
 0x1c1   :  { %1617 = vmatprep.subr.bf16.mxu1 %v6513_v2  ;;  %v6594_v2 = vld [vmem:[%s8566_s0 + $0x164] ss:$8 sps:$4 sm:$0xff]  }
 0x1c3   :  { %1393 = vmatmul.mubr.bf16.gmra.mrb[24].mxu1 %v5913_v4  ;;  %v6597_v4 = vld [vmem:[%s8566_s0 + $0x174] ss:$8 sps:$4 sm:$0xff]  }
 0x1c4   :  { %1618 = vmatpush1.bf16.msra.mxu1 %v6511_v3  ;;  %5303 = vmatprep.mubr.msk.bf16.mxu1 %vm1278_vm0, %v7300_v8  ;;  %v6520_v8 = vld [vmem:[%s8564_s5 + $0x1e0] ss:$8 sps:$4 sm:$0xff]  }
 0x1c5   :  { %1619 = vmatprep.subr.bf16.mxu1 %v6516_v5  ;;  %v6592_v3 = vld [vmem:[%s8566_s0 + $0x160] ss:$8 sps:$4 sm:$0xff]   ;;  %v6595_v5 = vld [vmem:[%s8566_s0 + $0x170] ss:$8 sps:$4 sm:$0xff]  }
 0x1c8   :  { %1620 = vmatpush1.bf16.msra.mxu1 %v6514_v6  ;;  %v6600_v6 = vld [vmem:[%s8566_s0 + $0x184] ss:$8 sps:$4 sm:$0xff]  }
 0x1c9   :  { %1621 = vmatprep.subr.bf16.mxu1 %v6519_v11  ;;  %v6598_v11 = vld [vmem:[%s8566_s0 + $0x180] ss:$8 sps:$4 sm:$0xff]  }
 0x1cc   :  { %1622 = vmatpush1.bf16.msra.mxu1 %v6517_v14  ;;  %v6603_v14 = vld [vmem:[%s8566_s0 + $0x194] ss:$8 sps:$4 sm:$0xff]  }
 0x1cd   :  { %1887 = vmatprep.subr.bf16.mxu1 %v6522_v15  ;;  %v6601_v15 = vld [vmem:[%s8566_s0 + $0x190] ss:$8 sps:$4 sm:$0xff]  }
 0x1cf   :  { %1626 = vmatmul.mubr.bf16.vlgmr.msra.gmra.mrb[0].mxu1 %v7298_v7  ;;  %v6531_v7 = vld [vmem:[%s8564_s5 + $0x214] ss:$8 sps:$4 sm:$0xff]  }
 0x1d0   :  { %5304 = vmatprep.mubr.msk.bf16.mxu1 %vm1278_vm0, %v7308_v22  ;;  %1888 = vmatpush1.bf16.msra.mxu1 %v6520_v8  ;;  %v6606_v8 = vld [vmem:[%s8566_s0 + $0x4] ss:$8 sps:$4 sm:$0xff]  }
 0x1d1   :  { %1889 = vmatprep.subr.bf16.mxu1 %v6525_v16 }
 0x1d4   :  { %1890 = vmatpush1.bf16.msra.mxu1 %v6523_v17 }
 0x1d5   :  { %1891 = vmatprep.subr.bf16.mxu1 %v6528_v18 }
 0x1d7   :  { %1636 = vmatmul.mubr.bf16.gmra.mrb[4].mxu1 %v7306_v21 }
 0x1d8   :  { %5305 = vmatprep.mubr.msk.bf16.mxu1 %vm1278_vm0, %v7327_v44  ;;  %1892 = vmatpush1.bf16.msra.mxu1 %v6526_v19 }
 0x1d9   :  { %1893 = vmatprep.subr.bf16.mxu1 %v6531_v7 }
 0x1dc   :  { %1894 = vmatpush1.bf16.msra.mxu1 %v6529_v20 }
 0x1dd   :  { %1895 = vmatprep.subr.bf16.mxu1 %v6534_v23 }
 0x1df   :  { %1646 = vmatmul.mubr.bf16.gmra.mrb[8].mxu1 %v7325_v43 }
 0x1e0   :  { %5306 = vmatprep.mubr.msk.bf16.mxu1 %vm1278_vm0, %v7352_v13  ;;  %1896 = vmatpush1.bf16.msra.mxu1 %v6532_v24 }
 0x1e1   :  { %1897 = vmatprep.subr.bf16.mxu1 %v6537_v25 }
 0x1e4   :  { %1898 = vmatpush1.bf16.msra.mxu1 %v6535_v26 }
 0x1e5   :  { %1899 = vmatprep.subr.bf16.mxu1 %v6540_v27  ;;  %v2014_v27 = vld [vmem:[%s8567_s30] sm:$0x3] }
 0x1e7   :  { %1656 = vmatmul.mubr.bf16.gmra.mrb[12].mxu1 %v7350_v12 }
 0x1e8   :  { %5307 = vmatprep.mubr.msk.bf16.mxu1 %vm1278_vm0, %v7377_v39  ;;  %1900 = vmatpush1.bf16.msra.mxu1 %v6538_v28 }
 0x1e9   :  { %1901 = vmatprep.subr.bf16.mxu1 %v6543_v29 }
 0x1ec   :  { %1902 = vmatpush1.bf16.msra.mxu1 %v6541_v30  ;;  %v7706_v30 = vrot.slane %v2014_v27, %v7279_v50 }
 0x1ed   :  { %1903 = vmatprep.subr.bf16.mxu1 %v6546_v32 }
 0x1ef   :  { %1666 = vmatmul.mubr.bf16.gmra.mrb[16].mxu1 %v7375_v38 }
 0x1f0   :  { %5308 = vmatprep.mubr.msk.bf16.mxu1 %vm1278_vm0, %v7402_v10  ;;  %1904 = vmatpush1.bf16.msra.mxu1 %v6544_v33  ;;  %v7709_v33 = vrot.slane %v2014_v27, %v7286_v54  ;;  %v6687_v27 = vld [vmem:[%s8568_s26 + $0x80] sm:$0xff]  }
 0x1f1   :  { %1905 = vmatprep.subr.bf16.mxu1 %v6549_v34 }
 0x1f4   :  { %1906 = vmatpush1.bf16.msra.mxu1 %v6547_v36 }
 0x1f5   :  { %1907 = vmatprep.subr.bf16.mxu1 %v6552_v41 }
 0x1f7   :  { %1676 = vmatmul.mubr.bf16.gmra.mrb[20].mxu1 %v7400_v9 }
 0x1f8   :  { %5309 = vmatprep.mubr.msk.bf16.mxu1 %vm1278_vm0, %v5916_v46  ;;  %1908 = vmatpush1.bf16.msra.mxu1 %v6550_v42 }
 0x1f9   :  { %1909 = vmatprep.subr.bf16.mxu1 %v6555_v45 }
 0x1fc   :  { %1910 = vmatpush1.bf16.msra.mxu1 %v6553_v47 }
 0x1fd   :  { %1911 = vmatprep.subr.bf16.mxu1 %v6558_v49 }
 0x1ff   :  { %1686 = vmatmul.mubr.bf16.gmra.mrb[28].mxu1 %v5915_v35 }
 0x200   :  { %1912 = vmatpush1.bf16.msra.mxu1 %v6556_v52  ;;  %5372 = vmatprep.mubr.msk.bf16.mxu1 %vm1278_vm0, %v7308_v22  ;;  %v6565_v22 = vld [vmem:[%s8566_s0 + $0xd0] ss:$8 sps:$4 sm:$0xff]  }
 0x201   :  { %1913 = vmatprep.subr.bf16.mxu1 %v6561_v53  ;;  %2335 = vmatpush1.bf16.msra.mxu0 %v6565_v22 }
 0x204   :  { %1914 = vmatpush1.bf16.msra.mxu1 %v6559_v55 }
 0x205   :  { %1915 = vmatprep.subr.bf16.mxu1 %v6564_v58 }
 0x208   :  { %1916 = vmatpush1.bf16.msra.mxu1 %v6562_v31 }
 0x209   :  { %3046 = vmatprep.subr.bf16.mxu1 %v6821_v1 }
 0x20b   :  { %1920 = vmatmul.mubr.bf16.vlgmr.msra.gmra.mrb[0].mxu1 %v7306_v21  ;;  %v6570_v21 = vld [vmem:[%s8566_s0 + $0xe4] ss:$8 sps:$4 sm:$0xff]  }
 0x20c   :  { %5373 = vmatprep.mubr.msk.bf16.mxu1 %vm1278_vm0, %v7327_v44  ;;  %2336 = vmatprep.subr.bf16.mxu0 %v6570_v21  ;;  %v6573_v44 = vld [vmem:[%s8566_s0 + $0xf4] ss:$8 sps:$4 sm:$0xff]  }
 0x213   :  { %1930 = vmatmul.mubr.bf16.gmra.mrb[4].mxu1 %v7325_v43  ;;  %v6568_v43 = vld [vmem:[%s8566_s0 + $0xe0] ss:$8 sps:$4 sm:$0xff]  }
 0x214   :  { %5374 = vmatprep.mubr.msk.bf16.mxu1 %vm1278_vm0, %v7352_v13  ;;  %2337 = vmatpush1.bf16.msra.mxu0 %v6568_v43  ;;  %v6576_v13 = vld [vmem:[%s8566_s0 + $0x104] ss:$8 sps:$4 sm:$0xff]  }
 0x215   :  { %2338 = vmatprep.subr.bf16.mxu0 %v6573_v44  ;;  %v6682_v44 = vld [vmem:[%s8568_s26 + $0x60] sm:$0xff]  }
 0x216   :  { %3047 = vmatpush1.bf16.msra.mxu1 %v6682_v44 }
 0x217   :  { %3048 = vmatprep.subr.bf16.mxu1 %v6821_v1 }
 0x21b   :  { %1940 = vmatmul.mubr.bf16.gmra.mrb[8].mxu1 %v7350_v12  ;;  %v6571_v12 = vld [vmem:[%s8566_s0 + $0xf0] ss:$8 sps:$4 sm:$0xff]  }
 0x21c   :  { %5375 = vmatprep.mubr.msk.bf16.mxu1 %vm1278_vm0, %v7377_v39  ;;  %v6574_v39 = vld [vmem:[%s8566_s0 + $0x100] ss:$8 sps:$4 sm:$0xff]   ;;  %2339 = vmatpush1.bf16.msra.mxu0 %v6571_v12 }
 0x21d   :  { %2340 = vmatprep.subr.bf16.mxu0 %v6576_v13 }
 0x220   :  { %2341 = vmatpush1.bf16.msra.mxu0 %v6574_v39 }
 0x221   :  { %2342 = vmatprep.subr.bf16.mxu0 %v6579_v61 }
 0x223   :  { %1950 = vmatmul.mubr.bf16.gmra.mrb[12].mxu1 %v7375_v38  ;;  %v6577_v38 = vld [vmem:[%s8566_s0 + $0x110] ss:$8 sps:$4 sm:$0xff]  }
 0x224   :  { %5376 = vmatprep.mubr.msk.bf16.mxu1 %vm1278_vm0, %v7402_v10  ;;  %v6580_v10 = vld [vmem:[%s8566_s0 + $0x120] ss:$8 sps:$4 sm:$0xff]   ;;  %2343 = vmatpush1.bf16.msra.mxu0 %v6577_v38 }
 0x225   :  { %2344 = vmatprep.subr.bf16.mxu0 %v6582_v48  ;;  %v6604_v48 = vld [vmem:[%s8566_s0] ss:$8 sps:$4 sm:$0xff]  }
 0x228   :  { %2345 = vmatpush1.bf16.msra.mxu0 %v6580_v10  ;;  %v6683_v10 = vld [vmem:[%s8568_s26 + $0x68] sm:$0xff]  }
 0x229   :  { %2346 = vmatprep.subr.bf16.mxu0 %v6585_v63  ;;  %3049 = vmatpush1.bf16.msra.mxu1 %v6683_v10 }
 0x22a   :  { %3050 = vmatprep.subr.bf16.mxu1 %v6821_v1 }
 0x22b   :  { %1960 = vmatmul.mubr.bf16.gmra.mrb[16].mxu1 %v7400_v9  ;;  %v6583_v9 = vld [vmem:[%s8566_s0 + $0x130] ss:$8 sps:$4 sm:$0xff]  }
 0x22c   :  { %5377 = vmatprep.mubr.msk.bf16.mxu1 %vm1278_vm0, %v7433_v40  ;;  %v982_v40 = vmax.f32 %v7447_v59, 0.0  ;;  %2347 = vmatpush1.bf16.msra.mxu0 %v6583_v9  ;;  %v6589_v59 = vld [vmem:[%s8566_s0 + $0x150] ss:$8 sps:$4 sm:$0xff]  }
 0x22d   :  { %2348 = vmatprep.subr.bf16.mxu0 %v6588_v57 }
 0x22e   :  { %v5917_v56 = vpack.c.bf16 %v982_v40, %v982_v40 }
 0x230   :  { %2349 = vmatpush1.bf16.msra.mxu0 %v6586_v62 }
 0x233   :  { %1970 = vmatmul.mubr.bf16.gmra.mrb[20].mxu1 %v7430_v37  ;;  %v6591_v37 = vld [vmem:[%s8566_s0 + $0x154] ss:$8 sps:$4 sm:$0xff]  }
 0x234   :  { %5378 = vmatprep.mubr.msk.bf16.mxu1 %vm1278_vm0, %v5918_v51  ;;  %2350 = vmatprep.subr.bf16.mxu0 %v6591_v37  ;;  %v6607_v37 = vld [vmem:[%s8566_s0 + $0x10] ss:$8 sps:$4 sm:$0xff]  }
 0x235   :  { %2351 = vmatpush1.bf16.msra.mxu0 %v6589_v59  ;;  %v6684_v59 = vld [vmem:[%s8568_s26 + $0x70] sm:$0xff]  }
 0x236   :  { %2352 = vmatprep.subr.bf16.mxu0 %v6594_v2  ;;  %3051 = vmatpush1.bf16.msra.mxu1 %v6684_v59 }
 0x237   :  { %3052 = vmatprep.subr.bf16.mxu1 %v6821_v1 }
 0x239   :  { %2353 = vmatpush1.bf16.msra.mxu0 %v6592_v3 }
 0x23a   :  { %2354 = vmatprep.subr.bf16.mxu0 %v6597_v4 }
 0x23b   :  { %1980 = vmatmul.mubr.bf16.gmra.mrb[32].mxu1 %v5917_v56 }
 0x23d   :  { %2355 = vmatpush1.bf16.msra.mxu0 %v6595_v5 }
 0x23e   :  { %2356 = vmatprep.subr.bf16.mxu0 %v6600_v6  ;;  %v6612_v6 = vld [vmem:[%s8566_s0 + $0x24] ss:$8 sps:$4 sm:$0xff]  }
 0x241   :  { %2357 = vmatpush1.bf16.msra.mxu0 %v6598_v11 }
 0x242   :  { %2358 = vmatprep.subr.bf16.mxu0 %v6603_v14  ;;  %v6610_v14 = vld [vmem:[%s8566_s0 + $0x20] ss:$8 sps:$4 sm:$0xff]  }
 0x245   :  { %2359 = vmatpush1.bf16.msra.mxu0 %v6601_v15  ;;  %v6685_v15 = vld [vmem:[%s8568_s26 + $0x78] sm:$0xff]  }
 0x246   :  { %2545 = vmatprep.subr.bf16.mxu0 %v6606_v8  ;;  %v6615_v8 = vld [vmem:[%s8566_s0 + $0x34] ss:$8 sps:$4 sm:$0xff]   ;;  %3053 = vmatpush1.bf16.msra.mxu1 %v6685_v15 }
 0x247   :  { %3054 = vmatprep.subr.bf16.mxu1 %v6821_v1 }
 0x24a   :  { %3055 = vmatpush1.bf16.msra.mxu1 %v6687_v27 }
 0x24b   :  { %3056 = vmatprep.subr.bf16.mxu1 %v6821_v1 }
 0x296   :  { %v1394_v16 = vpop.f32.mrb[24].mxu1 }
 0x297   :  { %v1396_v17 = vpop.f32.mrb[25].mxu1 }
 0x298   :  { %v1398_v18 = vpop.f32.mrb[26].mxu1 }
 0x299   :  { %v1399_v19 = vpop.f32.mrb[27].mxu1 }
 0x2d2   :  { %v1687_v7 = vpop.f32.mrb[28].mxu1 }
 0x2d3   :  { %v7698_v20 = vadd.f32 %v1687_v7, %v1394_v16  ;;  %v1689_v23 = vpop.f32.mrb[29].mxu1 }
 0x2d4   :  { %v7700_v24 = vadd.f32 %v1689_v23, %v1396_v17  ;;  %v1691_v25 = vpop.f32.mrb[30].mxu1 }
 0x2d5   :  { %v1692_v26 = vpop.f32.mrb[31].mxu1 }
 0x2d6   :  { %v6613_v26 = vld [vmem:[%s8566_s0 + $0x30] ss:$8 sps:$4 sm:$0xff]  }
 0x2de   :  { %v1921_v28 = vpop.f32.mrb[0].mxu1 }
 0x2df   :  { %v1923_v29 = vpop.f32.mrb[1].mxu1  ;;  %v2026_v36 = vadd.f32 %v7706_v30, %v1921_v28 }
 0x2e0   :  { %v1925_v32 = vpop.f32.mrb[2].mxu1  ;;  %v2027_v41 = vadd.f32 %v7709_v33, %v1923_v29 }
 0x2e1   :  { %v1927_v34 = vpop.f32.mrb[3].mxu1  ;;  %v2028_v42 = vadd.f32 %v7706_v30, %v1925_v32  ;;  %v2052_v52 = vmax.f32 %v2026_v36, 0.0 }
 0x2e2   :  { %v2029_v46 = vadd.f32 %v7709_v33, %v1927_v34  ;;  %v2053_v55 = vmax.f32 %v2027_v41, 0.0  ;;  %v6618_v34 = vld [vmem:[%s8566_s0 + $0x44] ss:$8 sps:$4 sm:$0xff]  }
 0x2e3   :  { %v2054_v58 = vmax.f32 %v2028_v42, 0.0 }
 0x2e4   :  { %v2055_v12 = vmax.f32 %v2029_v46, 0.0 }
 0x2e6   :  { %v1931_v45 = vpop.f32.mrb[4].mxu1 }
 0x2e7   :  { %v2030_v47 = vadd.f32 %v7706_v30, %v1931_v45  ;;  %v1933_v49 = vpop.f32.mrb[5].mxu1 }
 0x2e8   :  { %v2031_v35 = vadd.f32 %v7709_v33, %v1933_v49  ;;  %v1935_v53 = vpop.f32.mrb[6].mxu1 }
 0x2e9   :  { %v2056_v31 = vmax.f32 %v2030_v47, 0.0  ;;  %v2032_v22 = vadd.f32 %v7706_v30, %v1935_v53  ;;  %v1937_v60 = vpop.f32.mrb[7].mxu1  ;;  %v6690_v47 = vld [vmem:[%s8568_s26 + $0x88] sm:$0xff]  }
 0x2ea   :  { %v2057_v21 = vmax.f32 %v2031_v35, 0.0  ;;  %v2033_v43 = vadd.f32 %v7709_v33, %v1937_v60  ;;  %v6616_v53 = vld [vmem:[%s8566_s0 + $0x40] ss:$8 sps:$4 sm:$0xff]   ;;  %3057 = vmatpush1.bf16.msra.mxu1 %v6690_v47 }
 0x2eb   :  { %v7722_v13 = vpack.c.bf16 %v2056_v31, %v2052_v52  ;;  %v2058_v39 = vmax.f32 %v2032_v22, 0.0  ;;  %3058 = vmatprep.subr.bf16.mxu1 %v6821_v1 }
 0x2ec   :  { %v7724_v61 = vpack.c.bf16 %v2057_v21, %v2053_v55  ;;  %v2059_v38 = vmax.f32 %v2033_v43, 0.0 }
 0x2ed   :  { %v5919_v63 = vpack.c.bf16 %v2058_v39, %v2054_v58  ;;  %v6621_v58 = vld [vmem:[%s8566_s0 + $0x54] ss:$8 sps:$4 sm:$0xff]  }
 0x2ee   :  { %v5920_v9 = vpack.c.bf16 %v2059_v38, %v2055_v12  ;;  %v1941_v51 = vpop.f32.mrb[8].mxu1  ;;  %v6619_v12 = vld [vmem:[%s8566_s0 + $0x50] ss:$8 sps:$4 sm:$0xff]  }
 0x2ef   :  { %v2034_v40 = vadd.f32 %v7706_v30, %v1941_v51  ;;  %v1943_v56 = vpop.f32.mrb[9].mxu1  ;;  %v6692_v39 = vld [vmem:[%s8568_s26 + $0x90] sm:$0xff]   ;;  %v6622_v51 = vld [vmem:[%s8566_s0 + $0x60] ss:$8 sps:$4 sm:$0xff]  }
 0x2f0   :  { %v2035_v62 = vadd.f32 %v7709_v33, %v1943_v56  ;;  %v1945_v57 = vpop.f32.mrb[10].mxu1  ;;  %5437 = vmatprep.mubr.msk.bf16.mxu0 %vm2324_vm1, %v5920_v9  ;;  %3059 = vmatpush1.bf16.msra.mxu1 %v6692_v39  ;;  %v6627_v56 = vld [vmem:[%s8566_s0 + $0x74] ss:$8 sps:$4 sm:$0xff]   ;;  %v6643_v39 = vld [vmem:[%s8566_s0 + $0x1a0] ss:$8 sps:$4 sm:$0xff]  }
 0x2f1   :  { %v2060_v2 = vmax.f32 %v2034_v40, 0.0  ;;  %v1947_v3 = vpop.f32.mrb[11].mxu1  ;;  %2367 = vmatmul.mubr.bf16.vlgmr.msra.gmra.mrb[40].mxu0 %v5919_v63  ;;  %v2036_v16 = vadd.f32 %v7706_v30, %v1945_v57  ;;  %v6694_v40 = vld [vmem:[%s8568_s26 + $0x98] sm:$0xff]   ;;  %3060 = vmatprep.subr.bf16.mxu1 %v6821_v1 }
 0x2f2   :  { %v2061_v4 = vmax.f32 %v2035_v62, 0.0  ;;  %2546 = vmatpush1.bf16.msra.mxu0 %v6604_v48  ;;  %v2037_v7 = vadd.f32 %v7709_v33, %v1947_v3 }
 0x2f3   :  { %v7746_v5 = vpack.c.bf16 %v2060_v2, %v2056_v31  ;;  %2547 = vmatprep.subr.bf16.mxu0 %v6609_v0  ;;  %v2062_v36 = vmax.f32 %v2036_v16, 0.0  ;;  %v6624_v0 = vld [vmem:[%s8566_s0 + $0x64] ss:$8 sps:$4 sm:$0xff]  }
 0x2f4   :  { %v7751_v11 = vpack.c.bf16 %v2061_v4, %v2057_v21  ;;  %v2063_v49 = vmax.f32 %v2037_v7, 0.0  ;;  %3061 = vmatpush1.bf16.msra.mxu1 %v6694_v40  ;;  %v6698_v7 = vld [vmem:[%s8568_s26 + $0xa8] sm:$0xff]  }
 0x2f5   :  { %3062 = vmatprep.subr.bf16.mxu1 %v6821_v1  ;;  %v6655_v40 = vld [vmem:[%s8566_s0 + $0x1e0] ss:$8 sps:$4 sm:$0xff]  }
 0x2f6   :  { %2548 = vmatpush1.bf16.msra.mxu0 %v6607_v37  ;;  %v1951_v17 = vpop.f32.mrb[12].mxu1 }
 0x2f7   :  { %v2038_v18 = vadd.f32 %v7706_v30, %v1951_v17  ;;  %v1953_v19 = vpop.f32.mrb[13].mxu1  ;;  %2549 = vmatprep.subr.bf16.mxu0 %v6612_v6  ;;  %v6625_v6 = vld [vmem:[%s8566_s0 + $0x70] ss:$8 sps:$4 sm:$0xff]   ;;  %v6630_v17 = vld [vmem:[%s8566_s0 + $0x84] ss:$8 sps:$4 sm:$0xff]  }
 0x2f8   :  { %v2039_v23 = vadd.f32 %v7709_v33, %v1953_v19  ;;  %v1955_v25 = vpop.f32.mrb[14].mxu1 }
 0x2f9   :  { %v2064_v28 = vmax.f32 %v2038_v18, 0.0  ;;  %v2040_v29 = vadd.f32 %v7706_v30, %v1955_v25  ;;  %v1957_v32 = vpop.f32.mrb[15].mxu1 }
 0x2fa   :  { %v2065_v41 = vmax.f32 %v2039_v23, 0.0  ;;  %v2041_v42 = vadd.f32 %v7709_v33, %v1957_v32  ;;  %2550 = vmatpush1.bf16.msra.mxu0 %v6610_v14  ;;  %v6696_v14 = vld [vmem:[%s8568_s26 + $0xa0] sm:$0xff]  }
 0x2fb   :  { %v7779_v45 = vpack.c.bf16 %v2064_v28, %v2060_v2  ;;  %v2066_v46 = vmax.f32 %v2040_v29, 0.0  ;;  %2551 = vmatprep.subr.bf16.mxu0 %v6615_v8  ;;  %v6628_v32 = vld [vmem:[%s8566_s0 + $0x80] ss:$8 sps:$4 sm:$0xff]   ;;  %3063 = vmatpush1.bf16.msra.mxu1 %v6696_v14 }
 0x2fc   :  { %v7784_v52 = vpack.c.bf16 %v2065_v41, %v2061_v4  ;;  %v2067_v35 = vmax.f32 %v2041_v42, 0.0  ;;  %3064 = vmatprep.subr.bf16.mxu1 %v6821_v1  ;;  %v6673_v14 = vld [vmem:[%s8566_s0 + $0x240] ss:$8 sps:$4 sm:$0xff]  }
 0x2fd   :  { %v5921_v55 = vpack.c.bf16 %v2066_v46, %v2062_v36  ;;  %v6633_v36 = vld [vmem:[%s8566_s0 + $0x94] ss:$8 sps:$4 sm:$0xff]  }
 0x2fe   :  { %v5922_v31 = vpack.c.bf16 %v2067_v35, %v2063_v49  ;;  %2552 = vmatpush1.bf16.msra.mxu0 %v6613_v26  ;;  %v1961_v22 = vpop.f32.mrb[16].mxu1 }
 0x2ff   :  { %v2042_v60 = vadd.f32 %v7706_v30, %v1961_v22  ;;  %v1963_v21 = vpop.f32.mrb[17].mxu1  ;;  %2553 = vmatprep.subr.bf16.mxu0 %v6618_v34  ;;  %3065 = vmatpush1.bf16.msra.mxu1 %v6698_v7  ;;  %v6689_v7 = vld [vmem:[%s8568_s26 + $0x130] sm:$0xff]  }
 0x300   :  { %v2043_v43 = vadd.f32 %v7709_v33, %v1963_v21  ;;  %v1965_v44 = vpop.f32.mrb[18].mxu1  ;;  %5438 = vmatprep.mubr.msk.bf16.mxu0 %vm2324_vm1, %v5922_v31  ;;  %3066 = vmatprep.subr.bf16.mxu1 %v6821_v1 }
 0x301   :  { %v2068_v38 = vmax.f32 %v2042_v60, 0.0  ;;  %v1967_v48 = vpop.f32.mrb[19].mxu1  ;;  %2377 = vmatmul.mubr.bf16.gmra.mrb[44].mxu0 %v5921_v55  ;;  %v2044_v57 = vadd.f32 %v7706_v30, %v1965_v44  ;;  %v6639_v60 = vld [vmem:[%s8566_s0 + $0xb4] ss:$8 sps:$4 sm:$0xff]   ;;  %v6640_v44 = vld [vmem:[%s8566_s0 + $0xc0] ss:$8 sps:$4 sm:$0xff]  }
 0x302   :  { %v2069_v10 = vmax.f32 %v2043_v43, 0.0  ;;  %2554 = vmatpush1.bf16.msra.mxu0 %v6616_v53  ;;  %v2045_v2 = vadd.f32 %v7709_v33, %v1967_v48  ;;  %v6631_v53 = vld [vmem:[%s8566_s0 + $0x90] ss:$8 sps:$4 sm:$0xff]  }
 0x303   :  { %v7803_v63 = vpack.c.bf16 %v2068_v38, %v2064_v28  ;;  %2555 = vmatprep.subr.bf16.mxu0 %v6621_v58  ;;  %v2070_v23 = vmax.f32 %v2044_v57, 0.0  ;;  %v6646_v48 = vld [vmem:[%s8566_s0 + $0x1b0] ss:$8 sps:$4 sm:$0xff]   ;;  %v6661_v57 = vld [vmem:[%s8566_s0 + $0x200] ss:$8 sps:$4 sm:$0xff]  }
 0x304   :  { %v7808_v9 = vpack.c.bf16 %v2069_v10, %v2065_v41  ;;  %v2071_v27 = vmax.f32 %v2045_v2, 0.0  ;;  %v6667_v2 = vld [vmem:[%s8566_s0 + $0x220] ss:$8 sps:$4 sm:$0xff]  }
 0x306   :  { %2556 = vmatpush1.bf16.msra.mxu0 %v6619_v12  ;;  %v1971_v62 = vpop.f32.mrb[20].mxu1  ;;  %v6645_v12 = vld [vmem:[%s8566_s0 + $0x1a4] ss:$8 sps:$4 sm:$0xff]  }
 0x307   :  { %v2046_v37 = vadd.f32 %v7706_v30, %v1971_v62  ;;  %v1973_v59 = vpop.f32.mrb[21].mxu1  ;;  %2557 = vmatprep.subr.bf16.mxu0 %v6624_v0  ;;  %v6649_v0 = vld [vmem:[%s8566_s0 + $0x1c0] ss:$8 sps:$4 sm:$0xff]   ;;  %v6663_v62 = vld [vmem:[%s8566_s0 + $0x204] ss:$8 sps:$4 sm:$0xff]  }
 0x308   :  { %v2047_v3 = vadd.f32 %v7709_v33, %v1973_v59  ;;  %v1975_v4 = vpop.f32.mrb[22].mxu1  ;;  %v6669_v59 = vld [vmem:[%s8566_s0 + $0x224] ss:$8 sps:$4 sm:$0xff]  }
 0x309   :  { %v2072_v15 = vmax.f32 %v2046_v37, 0.0  ;;  %v2048_v8 = vadd.f32 %v7706_v30, %v1975_v4  ;;  %v1977_v16 = vpop.f32.mrb[23].mxu1  ;;  %v6666_v37 = vld [vmem:[%s8566_s0 + $0x214] ss:$8 sps:$4 sm:$0xff]   ;;  %v6670_v4 = vld [vmem:[%s8566_s0 + $0x230] ss:$8 sps:$4 sm:$0xff]  }
 0x30a   :  { %v2073_v18 = vmax.f32 %v2047_v3, 0.0  ;;  %v2049_v19 = vadd.f32 %v7709_v33, %v1977_v16  ;;  %2558 = vmatpush1.bf16.msra.mxu0 %v6622_v51  ;;  %v6654_v51 = vld [vmem:[%s8566_s0 + $0x1d4] ss:$8 sps:$4 sm:$0xff]   ;;  %v6681_v16 = vld [vmem:[%s8566_s0 + $0x264] ss:$8 sps:$4 sm:$0xff]  }
 0x30b   :  { %v7839_v25 = vpack.c.bf16 %v2072_v15, %v2068_v38  ;;  %v2074_v26 = vmax.f32 %v2048_v8, 0.0  ;;  %2559 = vmatprep.subr.bf16.mxu0 %v6627_v56  ;;  %v6648_v38 = vld [vmem:[%s8566_s0 + $0x1b4] ss:$8 sps:$4 sm:$0xff]   ;;  %v6658_v56 = vld [vmem:[%s8566_s0 + $0x1f0] ss:$8 sps:$4 sm:$0xff]  }
 0x30c   :  { %v5930_v28 = vpack.c.bf16 %v2073_v18, %v2069_v10  ;;  %v2075_v29 = vmax.f32 %v2049_v19, 0.0  ;;  %v6651_v10 = vld [vmem:[%s8566_s0 + $0x1c4] ss:$8 sps:$4 sm:$0xff]   ;;  %v6672_v3 = vld [vmem:[%s8566_s0 + $0x234] ss:$8 sps:$4 sm:$0xff]  }
 0x30d   :  { %v5923_v34 = vpack.c.bf16 %v2074_v26, %v2070_v23  ;;  %v6676_v8 = vld [vmem:[%s8566_s0 + $0x250] ss:$8 sps:$4 sm:$0xff]   ;;  %v6688_v19 = vld [vmem:[%s8568_s26 + $0x128] sm:$0xff]  }
 0x30e   :  { %v5924_v41 = vpack.c.bf16 %v2075_v29, %v2071_v27  ;;  %2560 = vmatpush1.bf16.msra.mxu0 %v6625_v6  ;;  %v1981_v42 = vpop.f32.mrb[32].mxu1  ;;  %v6675_v6 = vld [vmem:[%s8566_s0 + $0x244] ss:$8 sps:$4 sm:$0xff]   ;;  %v6697_v23 = vld [vmem:[%s8568_s26 + $0x150] sm:$0xff]  }
 0x30f   :  { %v2012_v46 = vadd.f32 %v1981_v42, %v7698_v20  ;;  %v1983_v47 = vpop.f32.mrb[33].mxu1  ;;  %2561 = vmatprep.subr.bf16.mxu0 %v6630_v17  ;;  %v6636_v20 = vld [vmem:[%s8566_s0 + $0xa4] ss:$8 sps:$4 sm:$0xff]   ;;  %v6679_v17 = vld [vmem:[%s8566_s0 + $0x260] ss:$8 sps:$4 sm:$0xff]   ;;  %v6700_v26 = vld [vmem:[%s8568_s26 + $0xb0] sm:$0xff]  }
 0x310   :  { %v2013_v49 = vadd.f32 %v1983_v47, %v7700_v24  ;;  %v1985_v35 = vpop.f32.mrb[34].mxu1  ;;  %5439 = vmatprep.mubr.msk.bf16.mxu0 %vm2324_vm1, %v5924_v41  ;;  %v6701_v27 = vld [vmem:[%s8568_s26 + $0x160] sm:$0xff]   ;;  %3067 = vmatpush1.bf16.msra.mxu1 %v6700_v26  ;;  %v6703_v29 = vld [vmem:[%s8568_s26 + $0x168] sm:$0xff]  }
 0x311   :  { %v2050_v55 = vadd.f32 %v7706_v30, %v2012_v46  ;;  %v1986_v58 = vpop.f32.mrb[35].mxu1  ;;  %2387 = vmatmul.mubr.bf16.gmra.mrb[48].mxu0 %v5923_v34  ;;  %v6634_v30 = vld [vmem:[%s8566_s0 + $0xa0] ss:$8 sps:$4 sm:$0xff]   ;;  %3068 = vmatprep.subr.bf16.mxu1 %v6821_v1  ;;  %v6707_v34 = vld [vmem:[%s8568_s26 + $0x178] sm:$0xff]  }
 0x312   :  { %v2051_v24 = vadd.f32 %v7709_v33, %v2013_v49  ;;  %2562 = vmatpush1.bf16.msra.mxu0 %v6628_v32  ;;  %5472 = vmatprep.mubr.msk.bf16.mxu0 %vm2324_vm1, %v7724_v61  ;;  %v6637_v33 = vld [vmem:[%s8566_s0 + $0xb0] ss:$8 sps:$4 sm:$0xff]   ;;  %v6642_v61 = vld [vmem:[%s8566_s0 + $0xc4] ss:$8 sps:$4 sm:$0xff]  }
 0x313   :  { %v2076_v31 = vmax.f32 %v2050_v55, 0.0  ;;  %2563 = vmatprep.subr.bf16.mxu0 %v6633_v36  ;;  %v6705_v32 = vld [vmem:[%s8568_s26 + $0x170] sm:$0xff]   ;;  %v2858_v36 = vld [vmem:[%s8569_s29] sm:$0x3] }
 0x314   :  { %v2077_v22 = vmax.f32 %v2051_v24, 0.0  ;;  %v8035_v41 = vrot.slane %v2858_v36, %v7286_v54  ;;  %v8040_v46 = vrot.slane %v2858_v36, %v7279_v50  ;;  %v6704_v50 = vld [vmem:[%s8568_s26] sm:$0xff]  }
 0x315   :  { %v7868_v21 = vpack.c.bf16 %v2076_v31, %v2072_v15  ;;  %v6678_v15 = vld [vmem:[%s8566_s0 + $0x254] ss:$8 sps:$4 sm:$0xff]  }
 0x316   :  { %v7870_v43 = vpack.c.bf16 %v2077_v22, %v2073_v18  ;;  %2564 = vmatpush1.bf16.msra.mxu0 %v6631_v53  ;;  %v6686_v18 = vld [vmem:[%s8568_s26 + $0x120] sm:$0xff]  }
 0x317   :  { %2565 = vmatprep.subr.bf16.mxu0 %v6636_v20 }
 0x31a   :  { %2566 = vmatpush1.bf16.msra.mxu0 %v6634_v30 }
 0x31b   :  { %2567 = vmatprep.subr.bf16.mxu0 %v6639_v60 }
 0x31e   :  { %2568 = vmatpush1.bf16.msra.mxu0 %v6637_v33 }
 0x31f   :  { %2569 = vmatprep.subr.bf16.mxu0 %v6642_v61 }
 0x322   :  { %2570 = vmatpush1.bf16.msra.mxu0 %v6640_v44 }
 0x323   :  { %2783 = vmatprep.subr.bf16.mxu0 %v6645_v12 }
 0x325   :  { %2578 = vmatmul.mubr.bf16.vlgmr.msra.gmra.mrb[40].mxu0 %v7722_v13  ;;  %v6652_v13 = vld [vmem:[%s8566_s0 + $0x1d0] ss:$8 sps:$4 sm:$0xff]  }
 0x326   :  { %5473 = vmatprep.mubr.msk.bf16.mxu0 %vm2324_vm1, %v7784_v52  ;;  %2784 = vmatpush1.bf16.msra.mxu0 %v6643_v39  ;;  %v6657_v52 = vld [vmem:[%s8566_s0 + $0x1e4] ss:$8 sps:$4 sm:$0xff]  }
 0x327   :  { %2785 = vmatprep.subr.bf16.mxu0 %v6648_v38  ;;  %v6706_v39 = vld [vmem:[%s8568_s26 + $0x8] sm:$0xff]  }
 0x32a   :  { %2786 = vmatpush1.bf16.msra.mxu0 %v6646_v48 }
 0x32b   :  { %2787 = vmatprep.subr.bf16.mxu0 %v6651_v10 }
 0x32d   :  { %2588 = vmatmul.mubr.bf16.gmra.mrb[44].mxu0 %v7779_v45  ;;  %v6660_v45 = vld [vmem:[%s8566_s0 + $0x1f4] ss:$8 sps:$4 sm:$0xff]  }
 0x32e   :  { %5474 = vmatprep.mubr.msk.bf16.mxu0 %vm2324_vm1, %v5930_v28  ;;  %2788 = vmatpush1.bf16.msra.mxu0 %v6649_v0  ;;  %v6702_v28 = vld [vmem:[%s8568_s26 + $0xb8] sm:$0xff]  }
 0x32f   :  { %2789 = vmatprep.subr.bf16.mxu0 %v6654_v51  ;;  %3069 = vmatpush1.bf16.msra.mxu1 %v6702_v28  ;;  %v6708_v51 = vld [vmem:[%s8568_s26 + $0x10] sm:$0xff]   ;;  %v6727_v28 = vld [vmem:[%s8568_s26 + $0x228] sm:$0xff]  }
 0x330   :  { %3164 = vmatprep.subr.bf16.mxu1 %v6821_v1 }
 0x332   :  { %2790 = vmatpush1.bf16.msra.mxu0 %v6652_v13  ;;  %v6709_v13 = vld [vmem:[%s8568_s26 + $0x1e0] sm:$0xff]  }
 0x333   :  { %2791 = vmatprep.subr.bf16.mxu0 %v6657_v52 }
 0x335   :  { %2598 = vmatmul.mubr.bf16.gmra.mrb[48].mxu0 %v7839_v25  ;;  %v6699_v25 = vld [vmem:[%s8568_s26 + $0x158] sm:$0xff]  }
 0x336   :  { %2792 = vmatpush1.bf16.msra.mxu0 %v6655_v40  ;;  %5533 = vmatprep.mubr.msk.bf16.mxu0 %vm2324_vm1, %v7751_v11  ;;  %v6664_v11 = vld [vmem:[%s8566_s0 + $0x210] ss:$8 sps:$4 sm:$0xff]  }
 0x337   :  { %2793 = vmatprep.subr.bf16.mxu0 %v6660_v45 }
 0x33a   :  { %2794 = vmatpush1.bf16.msra.mxu0 %v6658_v56 }
 0x33b   :  { %2795 = vmatprep.subr.bf16.mxu0 %v6663_v62 }
 0x33e   :  { %2796 = vmatpush1.bf16.msra.mxu0 %v6661_v57 }
 0x33f   :  { %2797 = vmatprep.subr.bf16.mxu0 %v6666_v37 }
 0x342   :  { %2798 = vmatpush1.bf16.msra.mxu0 %v6664_v11  ;;  %v6710_v11 = vld [vmem:[%s8568_s26 + $0x18] sm:$0xff]  }
 0x343   :  { %2799 = vmatprep.subr.bf16.mxu0 %v6669_v59  ;;  %v6711_v59 = vld [vmem:[%s8568_s26 + $0x1e8] sm:$0xff]  }
 0x346   :  { %2800 = vmatpush1.bf16.msra.mxu0 %v6667_v2 }
 0x347   :  { %2801 = vmatprep.subr.bf16.mxu0 %v6672_v3 }
 0x34a   :  { %2802 = vmatpush1.bf16.msra.mxu0 %v6670_v4  ;;  %v6712_v4 = vld [vmem:[%s8568_s26 + $0x20] sm:$0xff]  }
 0x34b   :  { %2803 = vmatprep.subr.bf16.mxu0 %v6675_v6  ;;  %v6713_v6 = vld [vmem:[%s8568_s26 + $0x1f0] sm:$0xff]  }
 0x34e   :  { %2804 = vmatpush1.bf16.msra.mxu0 %v6673_v14  ;;  %v6714_v14 = vld [vmem:[%s8568_s26 + $0x28] sm:$0xff]  }
 0x34f   :  { %2805 = vmatprep.subr.bf16.mxu0 %v6678_v15  ;;  %v6715_v15 = vld [vmem:[%s8568_s26 + $0x1f8] sm:$0xff]  }
 0x352   :  { %2806 = vmatpush1.bf16.msra.mxu0 %v6676_v8  ;;  %v6716_v8 = vld [vmem:[%s8568_s26 + $0x30] sm:$0xff]  }
 0x353   :  { %2807 = vmatprep.subr.bf16.mxu0 %v6681_v16  ;;  %v6717_v16 = vld [vmem:[%s8568_s26 + $0x200] sm:$0xff]  }
 0x356   :  { %2808 = vmatpush1.bf16.msra.mxu0 %v6679_v17  ;;  %v6718_v17 = vld [vmem:[%s8568_s26 + $0x38] sm:$0xff]  }
 0x357   :  { %3451 = vmatprep.subr.bf16.mxu0 %v6821_v1 }
 0x359   :  { %2816 = vmatmul.mubr.bf16.vlgmr.msra.gmra.mrb[40].mxu0 %v7746_v5  ;;  %v6691_v5 = vld [vmem:[%s8568_s26 + $0x138] sm:$0xff]  }
 0x35a   :  { %5534 = vmatprep.mubr.msk.bf16.mxu0 %vm2324_vm1, %v7808_v9  ;;  %3452 = vmatpush1.bf16.msra.mxu0 %v6686_v18  ;;  %v6693_v9 = vld [vmem:[%s8568_s26 + $0x140] sm:$0xff]   ;;  %v6719_v18 = vld [vmem:[%s8568_s26 + $0x208] sm:$0xff]  }
 0x35b   :  { %3453 = vmatprep.subr.bf16.mxu0 %v6821_v1 }
 0x35e   :  { %3454 = vmatpush1.bf16.msra.mxu0 %v6688_v19  ;;  %v6720_v19 = vld [vmem:[%s8568_s26 + $0x40] sm:$0xff]  }
 0x35f   :  { %3455 = vmatprep.subr.bf16.mxu0 %v6821_v1 }
 0x361   :  { %2826 = vmatmul.mubr.bf16.gmra.mrb[44].mxu0 %v7803_v63  ;;  %v6695_v63 = vld [vmem:[%s8568_s26 + $0x148] sm:$0xff]  }
 0x362   :  { %5535 = vmatprep.mubr.msk.bf16.mxu0 %vm2324_vm1, %v7870_v43  ;;  %3456 = vmatpush1.bf16.msra.mxu0 %v6689_v7  ;;  %v6721_v7 = vld [vmem:[%s8568_s26 + $0x210] sm:$0xff]  }
 0x363   :  { %3457 = vmatprep.subr.bf16.mxu0 %v6821_v1 }
 0x366   :  { %3458 = vmatpush1.bf16.msra.mxu0 %v6691_v5  ;;  %v6722_v5 = vld [vmem:[%s8568_s26 + $0x48] sm:$0xff]  }
 0x367   :  { %3459 = vmatprep.subr.bf16.mxu0 %v6821_v1 }
 0x369   :  { %2836 = vmatmul.mubr.bf16.gmra.mrb[48].mxu0 %v7868_v21 }
 0x36a   :  { %3460 = vmatpush1.bf16.msra.mxu0 %v6693_v9  ;;  %v6723_v9 = vld [vmem:[%s8568_s26 + $0x218] sm:$0xff]  }
 0x36b   :  { %3461 = vmatprep.subr.bf16.mxu0 %v6821_v1 }
 0x36e   :  { %3462 = vmatpush1.bf16.msra.mxu0 %v6695_v63  ;;  %v6724_v63 = vld [vmem:[%s8568_s26 + $0x50] sm:$0xff]  }
 0x36f   :  { %3463 = vmatprep.subr.bf16.mxu0 %v6821_v1 }
 0x372   :  { %3464 = vmatpush1.bf16.msra.mxu0 %v6697_v23  ;;  %v6725_v23 = vld [vmem:[%s8568_s26 + $0x220] sm:$0xff]  }
 0x373   :  { %3465 = vmatprep.subr.bf16.mxu0 %v6821_v1 }
 0x376   :  { %3466 = vmatpush1.bf16.msra.mxu0 %v6699_v25 }
 0x377   :  { %3467 = vmatprep.subr.bf16.mxu0 %v6821_v1 }
 0x37a   :  { %3468 = vmatpush1.bf16.msra.mxu0 %v6701_v27  ;;  %v6726_v27 = vld [vmem:[%s8568_s26 + $0x58] sm:$0xff]  }
 0x37b   :  { %3469 = vmatprep.subr.bf16.mxu0 %v6821_v1 }
 0x37e   :  { %3470 = vmatpush1.bf16.msra.mxu0 %v6703_v29 }
 0x37f   :  { %3471 = vmatprep.subr.bf16.mxu0 %v6821_v1 }
 0x382   :  { %3472 = vmatpush1.bf16.msra.mxu0 %v6705_v32 }
 0x383   :  { %3473 = vmatprep.subr.bf16.mxu0 %v6821_v1 }
 0x386   :  { %3474 = vmatpush1.bf16.msra.mxu0 %v6707_v34  ;;  %v6728_v34 = vld [vmem:[%s8568_s26 + $0xc0] sm:$0xff]  }
 0x387   :  { %3739 = vmatprep.subr.bf16.mxu0 %v6821_v1 }
 0x42c   :  { %v8037_v42 = vpop.f32.mrb[40].mxu0 }
 0x42d   :  { %v2819_v47 = vpop.f32.mrb[41].mxu0  ;;  %v2870_v25 = vadd.f32 %v8040_v46, %v8037_v42 }
 0x42e   :  { %v2871_v49 = vadd.f32 %v8035_v41, %v2819_v47  ;;  %v2821_v35 = vpop.f32.mrb[42].mxu0 }
 0x42f   :  { %v2872_v53 = vadd.f32 %v8040_v46, %v2821_v35  ;;  %v2823_v55 = vpop.f32.mrb[43].mxu0  ;;  %v2882_v29 = vmax.f32 %v2870_v25, 0.0  ;;  %v6731_v35 = vld [vmem:[%s8568_s26 + $0x238] sm:$0xff]  }
 0x430   :  { %v2873_v58 = vadd.f32 %v8035_v41, %v2823_v55  ;;  %v2883_v24 = vmax.f32 %v2871_v49, 0.0  ;;  %v6730_v49 = vld [vmem:[%s8568_s26 + $0xc8] sm:$0xff]  }
 0x431   :  { %v2884_v20 = vmax.f32 %v2872_v53, 0.0  ;;  %v5939_v36 = vpack.c.bf16 %v2882_v29, %v2882_v29 }
 0x432   :  { %v2885_v31 = vmax.f32 %v2873_v58, 0.0  ;;  %v5940_v43 = vpack.c.bf16 %v2883_v24, %v2883_v24  ;;  %v6733_v58 = vld [vmem:[%s8568_s26 + $0xd8] sm:$0xff]   ;;  %v6735_v24 = vld [vmem:[%s8568_s26 + $0xe8] sm:$0xff]  }
 0x433   :  { %v5937_v30 = vpack.c.bf16 %v2884_v20, %v2884_v20  ;;  %v6734_v20 = vld [vmem:[%s8568_s26 + $0xe0] sm:$0xff]  }
 0x434   :  { %v5938_v54 = vpack.c.bf16 %v2885_v31, %v2885_v31  ;;  %v2827_v22 = vpop.f32.mrb[44].mxu0  ;;  %v6736_v31 = vld [vmem:[%s8568_s26 + $0xf0] sm:$0xff]  }
 0x435   :  { %v8049_v60 = vadd.f32 %v8040_v46, %v2827_v22  ;;  %v8051_v21 = vpop.f32.mrb[45].mxu0  ;;  %v6738_v22 = vld [vmem:[%s8568_s26 + $0x100] sm:$0xff]  }
 0x436   :  { %v2831_v33 = vpop.f32.mrb[46].mxu0  ;;  %5574 = vmatprep.mubr.msk.bf16.mxu1 %vm3042_vm2, %v5938_v54  ;;  %v2875_v26 = vadd.f32 %v8035_v41, %v8051_v21  ;;  %v6737_v54 = vld [vmem:[%s8568_s26 + $0xf8] sm:$0xff]  }
 0x437   :  { %v2876_v61 = vadd.f32 %v8040_v46, %v2831_v33  ;;  %v2833_v44 = vpop.f32.mrb[47].mxu0  ;;  %3079 = vmatmul.mubr.bf16.vlgmr.msra.gmra.mrb[36].mxu1 %v5937_v30  ;;  %v6740_v30 = vld [vmem:[%s8568_s26 + $0x110] sm:$0xff]   ;;  %v6741_v21 = vld [vmem:[%s8568_s26 + $0x118] sm:$0xff]  }
 0x438   :  { %v2877_v12 = vadd.f32 %v8035_v41, %v2833_v44  ;;  %3165 = vmatpush1.bf16.msra.mxu1 %v6704_v50  ;;  %5589 = vmatprep.mubr.msk.bf16.mxu1 %vm3042_vm2, %v5940_v43  ;;  %v2887_v32 = vmax.f32 %v2875_v26, 0.0  ;;  %v6739_v50 = vld [vmem:[%s8568_s26 + $0x108] sm:$0xff]   ;;  %v2886_v43 = vmax.f32 %v8049_v60, 0.0 }
 0x439   :  { %v2888_v38 = vmax.f32 %v2876_v61, 0.0  ;;  %3166 = vmatprep.subr.bf16.mxu1 %v6821_v1  ;;  %v6742_v61 = vld [vmem:[%s8568_s26 + $0x180] sm:$0xff]   ;;  %v6743_v60 = vld [vmem:[%s8568_s26 + $0x188] sm:$0xff]  }
 0x43a   :  { %v2889_v48 = vmax.f32 %v2877_v12, 0.0  ;;  %v5942_v42 = vpack.c.bf16 %v2887_v32, %v2887_v32  ;;  %v5941_v44 = vpack.c.bf16 %v2886_v43, %v2886_v43 }
 0x43b   :  { %v5943_v52 = vpack.c.bf16 %v2888_v38, %v2888_v38  ;;  %v6745_v38 = vld [vmem:[%s8568_s26 + $0x198] sm:$0xff]  }
 0x43c   :  { %v5944_v10 = vpack.c.bf16 %v2889_v48, %v2889_v48  ;;  %3167 = vmatpush1.bf16.msra.mxu1 %v6706_v39  ;;  %v2837_v0 = vpop.f32.mrb[48].mxu0  ;;  %v6744_v39 = vld [vmem:[%s8568_s26 + $0x190] sm:$0xff]   ;;  %v6746_v48 = vld [vmem:[%s8568_s26 + $0x1a0] sm:$0xff]  }
 0x43d   :  { %v8068_v40 = vadd.f32 %v8040_v46, %v2837_v0  ;;  %v2839_v45 = vpop.f32.mrb[49].mxu0  ;;  %3168 = vmatprep.subr.bf16.mxu1 %v6821_v1  ;;  %v6748_v0 = vld [vmem:[%s8568_s26 + $0x1b0] sm:$0xff]  }
 0x43e   :  { %v8072_v56 = vadd.f32 %v8035_v41, %v2839_v45  ;;  %v8074_v62 = vpop.f32.mrb[50].mxu0  ;;  %5667 = vmatprep.mubr.msk.bf16.mxu0 %vm3042_vm2, %v5944_v10  ;;  %v6747_v10 = vld [vmem:[%s8568_s26 + $0x1a8] sm:$0xff]   ;;  %v6752_v45 = vld [vmem:[%s8568_s26 + $0x1d0] sm:$0xff]  }
 0x43f   :  { %v2843_v57 = vpop.f32.mrb[51].mxu0  ;;  %3484 = vmatmul.mubr.bf16.vlgmr.msra.gmra.mrb[52].mxu0 %v5943_v52  ;;  %v2880_v47 = vadd.f32 %v8040_v46, %v8074_v62  ;;  %v6732_v46 = vld [vmem:[%s8568_s26 + $0xd0] sm:$0xff]   ;;  %v6751_v52 = vld [vmem:[%s8568_s26 + $0x1c8] sm:$0xff]   ;;  %v2890_v62 = vmax.f32 %v8068_v40, 0.0 }
 0x440   :  { %v2881_v37 = vadd.f32 %v8035_v41, %v2843_v57  ;;  %3169 = vmatpush1.bf16.msra.mxu1 %v6708_v51  ;;  %3740 = vmatpush1.bf16.msra.mxu0 %v6709_v13  ;;  %v6729_v41 = vld [vmem:[%s8568_s26 + $0x230] sm:$0xff]   ;;  %v2891_v33 = vmax.f32 %v8072_v56, 0.0  ;;  %v6749_v51 = vld [vmem:[%s8568_s26 + $0x1b8] sm:$0xff]   ;;  %v6750_v13 = vld [vmem:[%s8568_s26 + $0x1c0] sm:$0xff]  }
 0x441   :  { %3170 = vmatprep.subr.bf16.mxu1 %v6821_v1  ;;  %3741 = vmatprep.subr.bf16.mxu0 %v6821_v1  ;;  %v2892_v53 = vmax.f32 %v2880_v47, 0.0  ;;  %v6753_v56 = vld [vmem:[%s8568_s26 + $0x1d8] sm:$0xff]   ;;  %v5945_v57 = vpack.c.bf16 %v2890_v62, %v2890_v62  ;;  %v6776_v62 = vld [vmem:[%s8536_s1] ss:$16 sps:$4 sm:$0xff]  }
 0x442   :  { %v2893_v2 = vmax.f32 %v2881_v37, 0.0  ;;  %v5946_v12 = vpack.c.bf16 %v2891_v33, %v2891_v33  ;;  %v6764_v33 = vld [vmem:[%s8536_s1 + $0x4] ss:$16 sps:$4 sm:$0xff]  }
 0x443   :  { %v5947_v55 = vpack.c.bf16 %v2892_v53, %v2892_v53 }
 0x444   :  { %v5948_v3 = vpack.c.bf16 %v2893_v2, %v2893_v2  ;;  %3171 = vmatpush1.bf16.msra.mxu1 %v6710_v11  ;;  %3742 = vmatpush1.bf16.msra.mxu0 %v6711_v59 }
 0x445   :  { %3172 = vmatprep.subr.bf16.mxu1 %v6821_v1  ;;  %3743 = vmatprep.subr.bf16.mxu0 %v6821_v1 }
 0x446   :  { %5745 = vmatprep.mubr.msk.bf16.mxu0 %vm3042_vm2, %v5948_v3 }
 0x448   :  { %3173 = vmatpush1.bf16.msra.mxu1 %v6712_v4  ;;  %3744 = vmatpush1.bf16.msra.mxu0 %v6713_v6 }
 0x449   :  { %3174 = vmatprep.subr.bf16.mxu1 %v6821_v1  ;;  %3745 = vmatprep.subr.bf16.mxu0 %v6821_v1 }
 0x44c   :  { %3175 = vmatpush1.bf16.msra.mxu1 %v6714_v14  ;;  %3746 = vmatpush1.bf16.msra.mxu0 %v6715_v15 }
 0x44d   :  { %3176 = vmatprep.subr.bf16.mxu1 %v6821_v1  ;;  %3747 = vmatprep.subr.bf16.mxu0 %v6821_v1 }
 0x450   :  { %3177 = vmatpush1.bf16.msra.mxu1 %v6716_v8  ;;  %3748 = vmatpush1.bf16.msra.mxu0 %v6717_v16 }
 0x451   :  { %3178 = vmatprep.subr.bf16.mxu1 %v6821_v1  ;;  %3749 = vmatprep.subr.bf16.mxu0 %v6821_v1 }
 0x454   :  { %3179 = vmatpush1.bf16.msra.mxu1 %v6718_v17  ;;  %3750 = vmatpush1.bf16.msra.mxu0 %v6719_v18 }
 0x455   :  { %3180 = vmatprep.subr.bf16.mxu1 %v6821_v1  ;;  %3751 = vmatprep.subr.bf16.mxu0 %v6821_v1 }
 0x458   :  { %3181 = vmatpush1.bf16.msra.mxu1 %v6720_v19  ;;  %3752 = vmatpush1.bf16.msra.mxu0 %v6721_v7 }
 0x459   :  { %3182 = vmatprep.subr.bf16.mxu1 %v6821_v1  ;;  %3753 = vmatprep.subr.bf16.mxu0 %v6821_v1 }
 0x45c   :  { %3183 = vmatpush1.bf16.msra.mxu1 %v6722_v5  ;;  %3754 = vmatpush1.bf16.msra.mxu0 %v6723_v9 }
 0x45d   :  { %3184 = vmatprep.subr.bf16.mxu1 %v6821_v1  ;;  %3755 = vmatprep.subr.bf16.mxu0 %v6821_v1 }
 0x460   :  { %3185 = vmatpush1.bf16.msra.mxu1 %v6724_v63  ;;  %3756 = vmatpush1.bf16.msra.mxu0 %v6725_v23 }
 0x461   :  { %3186 = vmatprep.subr.bf16.mxu1 %v6821_v1  ;;  %3757 = vmatprep.subr.bf16.mxu0 %v6821_v1 }
 0x464   :  { %3187 = vmatpush1.bf16.msra.mxu1 %v6726_v27  ;;  %3758 = vmatpush1.bf16.msra.mxu0 %v6727_v28 }
 0x465   :  { %3307 = vmatprep.subr.bf16.mxu1 %v6821_v1  ;;  %3759 = vmatprep.subr.bf16.mxu0 %v6821_v1 }
 0x467   :  { %3197 = vmatmul.mubr.bf16.vlgmr.msra.gmra.mrb[40].mxu1 %v5939_v36 }
 0x468   :  { %3308 = vmatpush1.bf16.msra.mxu1 %v6728_v34  ;;  %5628 = vmatprep.mubr.msk.bf16.mxu1 %vm3042_vm2, %v5942_v42  ;;  %v5746_v34 = vld [vmem:[%s8533_s9] ss:$0 sm:$0xff] }
 0x469   :  { %3760 = vmatpush1.bf16.msra.mxu0 %v6729_v41  ;;  %3309 = vmatprep.subr.bf16.mxu1 %v6821_v1 }
 0x46a   :  { %3761 = vmatprep.subr.bf16.mxu0 %v6821_v1 }
 0x46c   :  { %3310 = vmatpush1.bf16.msra.mxu1 %v6730_v49 }
 0x46d   :  { %3762 = vmatpush1.bf16.msra.mxu0 %v6731_v35  ;;  %3311 = vmatprep.subr.bf16.mxu1 %v6821_v1 }
 0x470   :  { %3772 = vmatmul.mubr.bf16.vlgmr.msra.gmra.mrb[56].mxu0 %v5947_v55  ;;  %3312 = vmatpush1.bf16.msra.mxu1 %v6732_v46 }
 0x471   :  { %3313 = vmatprep.subr.bf16.mxu1 %v6821_v1 }
 0x474   :  { %3314 = vmatpush1.bf16.msra.mxu1 %v6733_v58  ;;  %v6754_v58 = vld [vmem:[%s8534_s10] sm:$0xff]  }
 0x475   :  { %3315 = vmatprep.subr.bf16.mxu1 %v6821_v1 }
 0x478   :  { %3316 = vmatpush1.bf16.msra.mxu1 %v6734_v20  ;;  %v6822_v20 = vmov 0.0  }
 0x479   :  { %3317 = vmatprep.subr.bf16.mxu1 %v6821_v1 }
 0x47c   :  { %3318 = vmatpush1.bf16.msra.mxu1 %v6735_v24  ;;  %v6755_v24 = vld [vmem:[%s8534_s10 + $0x8] sm:$0xff]  }
 0x47d   :  { %3319 = vmatprep.subr.bf16.mxu1 %v6821_v1 }
 0x480   :  { %3320 = vmatpush1.bf16.msra.mxu1 %v6736_v31  ;;  %v6756_v31 = vld [vmem:[%s8535_s12 + $0x40] sm:$0xff]  }
 0x481   :  { %3321 = vmatprep.subr.bf16.mxu1 %v6821_v1 }
 0x484   :  { %3322 = vmatpush1.bf16.msra.mxu1 %v6737_v54 }
 0x485   :  { %3323 = vmatprep.subr.bf16.mxu1 %v6821_v1 }
 0x488   :  { %3324 = vmatpush1.bf16.msra.mxu1 %v6738_v22 }
 0x489   :  { %3325 = vmatprep.subr.bf16.mxu1 %v6821_v1 }
 0x48c   :  { %3326 = vmatpush1.bf16.msra.mxu1 %v6739_v50 }
 0x48d   :  { %3327 = vmatprep.subr.bf16.mxu1 %v6821_v1 }
 0x490   :  { %3328 = vmatpush1.bf16.msra.mxu1 %v6740_v30 }
 0x491   :  { %3329 = vmatprep.subr.bf16.mxu1 %v6821_v1 }
 0x494   :  { %3330 = vmatpush1.bf16.msra.mxu1 %v6741_v21 }
 0x495   :  { %3595 = vmatprep.subr.bf16.mxu1 %v6821_v1 }
 0x497   :  { %3340 = vmatmul.mubr.bf16.vlgmr.msra.gmra.mrb[44].mxu1 %v5941_v44  ;;  %v6757_v44 = vld [vmem:[%s8535_s12 + $0x48] sm:$0xff]  }
 0x498   :  { %3596 = vmatpush1.bf16.msra.mxu1 %v6742_v61  ;;  %5706 = vmatprep.mubr.msk.bf16.mxu1 %vm3042_vm2, %v5946_v12  ;;  %v6758_v12 = vld [vmem:[%s8535_s12 + $0x50] sm:$0xff]  }
 0x499   :  { %3597 = vmatprep.subr.bf16.mxu1 %v6821_v1 }
 0x49c   :  { %3598 = vmatpush1.bf16.msra.mxu1 %v6743_v60  ;;  %v6759_v60 = vld [vmem:[%s8535_s12 + $0x58] sm:$0xff]  }
 0x49d   :  { %3599 = vmatprep.subr.bf16.mxu1 %v6821_v1 }
 0x4a0   :  { %3600 = vmatpush1.bf16.msra.mxu1 %v6744_v39  ;;  %v6760_v39 = vld [vmem:[%s8535_s12 + $0x60] sm:$0xff]  }
 0x4a1   :  { %3601 = vmatprep.subr.bf16.mxu1 %v6821_v1 }
 0x4a4   :  { %3602 = vmatpush1.bf16.msra.mxu1 %v6745_v38  ;;  %v6761_v38 = vld [vmem:[%s8535_s12 + $0x68] sm:$0xff]  }
 0x4a5   :  { %3603 = vmatprep.subr.bf16.mxu1 %v6821_v1 }
 0x4a8   :  { %3604 = vmatpush1.bf16.msra.mxu1 %v6746_v48  ;;  %v6762_v48 = vld [vmem:[%s8535_s12 + $0x70] sm:$0xff]  }
 0x4a9   :  { %3605 = vmatprep.subr.bf16.mxu1 %v6821_v1 }
 0x4ac   :  { %3606 = vmatpush1.bf16.msra.mxu1 %v6747_v10  ;;  %v6763_v10 = vld [vmem:[%s8535_s12 + $0x78] sm:$0xff]  }
 0x4ad   :  { %3607 = vmatprep.subr.bf16.mxu1 %v6821_v1 }
 0x4b0   :  { %3608 = vmatpush1.bf16.msra.mxu1 %v6748_v0  ;;  %v6765_v0 = vld [vmem:[%s8535_s12] sm:$0xff]  }
 0x4b1   :  { %3609 = vmatprep.subr.bf16.mxu1 %v6821_v1 }
 0x4b4   :  { %3610 = vmatpush1.bf16.msra.mxu1 %v6749_v51  ;;  %v6766_v51 = vld [vmem:[%s8536_s1 + $0x24] ss:$16 sps:$4 sm:$0xff]  }
 0x4b5   :  { %3611 = vmatprep.subr.bf16.mxu1 %v6821_v1 }
 0x4b8   :  { %3612 = vmatpush1.bf16.msra.mxu1 %v6750_v13  ;;  %v6772_v13 = vld [vmem:[%s8536_s1 + $0x44] ss:$16 sps:$4 sm:$0xff]  }
 0x4b9   :  { %3613 = vmatprep.subr.bf16.mxu1 %v6821_v1 }
 0x4bc   :  { %3614 = vmatpush1.bf16.msra.mxu1 %v6751_v52  ;;  %v6767_v52 = vld [vmem:[%s8535_s12 + $0x8] sm:$0xff]  }
 0x4bd   :  { %3615 = vmatprep.subr.bf16.mxu1 %v6821_v1 }
 0x4c0   :  { %3616 = vmatpush1.bf16.msra.mxu1 %v6752_v45  ;;  %v6768_v45 = vld [vmem:[%s8535_s12 + $0x10] sm:$0xff]  }
 0x4c1   :  { %3617 = vmatprep.subr.bf16.mxu1 %v6821_v1 }
 0x4c4   :  { %3618 = vmatpush1.bf16.msra.mxu1 %v6753_v56  ;;  %v6773_v56 = vld [vmem:[%s8536_s1 + $0x64] ss:$16 sps:$4 sm:$0xff]  }
 0x4c5   :  { %6033 = vmatprep.subr.bf16.mxu1 %v6822_v20 }
 0x4c7   :  { %3628 = vmatmul.mubr.bf16.vlgmr.msra.gmra.mrb[48].mxu1 %v5945_v57  ;;  %v6769_v57 = vld [vmem:[%s8535_s12 + $0x18] sm:$0xff]  }
 0x4c8   :  { %6034 = vmatpush3.bf16.msra.mxu1 %v6754_v58  ;;  %6037 = vmatprep.mubr.msk.bf16.mxu1 %vm6823_vm4, %v6822_v20 }
 0x4c9   :  { %6035 = vmatprep.subr.bf16.mxu1 %v6822_v20 }
 0x4cc   :  { %6036 = vmatpush3.bf16.msra.mxu1 %v6755_v24 }
 0x4cd   :  { %6041 = vmatprep.subr.bf16.mxu1 %v6756_v31 }
 0x50a   :  { %v3080_v37 = vpop.f32.mrb[36].mxu1 }
 0x50b   :  { %v3082_v11 = vpop.f32.mrb[37].mxu1 }
 0x50c   :  { %v3083_v59 = vpop.f32.mrb[38].mxu1  ;;  %v6771_v11 = vld [vmem:[%s8535_s12 + $0x28] sm:$0xff]  }
 0x50d   :  { %v3084_v2 = vpop.f32.mrb[39].mxu1  ;;  %v6774_v59 = vld [vmem:[%s8535_s12 + $0x30] sm:$0xff]  }
 0x50e   :  { %v6775_v2 = vld [vmem:[%s8535_s12 + $0x38] sm:$0xff]  }
 0x512   :  { %v3485_v3 = vpop.f32.mrb[52].mxu0 }
 0x513   :  { %v3487_v4 = vpop.f32.mrb[53].mxu0 }
 0x514   :  { %v3488_v6 = vpop.f32.mrb[54].mxu0  ;;  %v6777_v4 = vld [vmem:[%s8536_s1 + $0x20] ss:$16 sps:$4 sm:$0xff]  }
 0x515   :  { %v3489_v14 = vpop.f32.mrb[55].mxu0  ;;  %v6780_v6 = vld [vmem:[%s8536_s1 + $0x40] ss:$16 sps:$4 sm:$0xff]  }
 0x516   :  { %v6779_v14 = vld [vmem:[%s8535_s12 + $0x88] sm:$0xff]  }
 0x53a   :  { %v3198_v15 = vpop.f32.mrb[40].mxu1 }
 0x53b   :  { %v3199_v8 = vadd.f32 %v3198_v15, %v3080_v37  ;;  %v3200_v16 = vpop.f32.mrb[41].mxu1  ;;  %v6770_v37 = vld [vmem:[%s8535_s12 + $0x20] sm:$0xff]   ;;  %v6782_v15 = vld [vmem:[%s8535_s12 + $0x90] sm:$0xff]  }
 0x53c   :  { %v3201_v17 = vpop.f32.mrb[42].mxu1  ;;  %v6788_v16 = vld [vmem:[%s8536_s1 + $0x8] ss:$16 sps:$4 sm:$0xff]  }
 0x53d   :  { %v3202_v18 = vpop.f32.mrb[43].mxu1  ;;  %v6783_v17 = vld [vmem:[%s8535_s12 + $0x98] sm:$0xff]  }
 0x53e   :  { %v6784_v18 = vld [vmem:[%s8535_s12 + $0xa0] sm:$0xff]  }
 0x543   :  { %v3773_v19 = vpop.f32.mrb[56].mxu0 }
 0x544   :  { %v3775_v40 = vpop.f32.mrb[57].mxu0 }
 0x545   :  { %v3776_v7 = vpop.f32.mrb[58].mxu0  ;;  %v6786_v40 = vld [vmem:[%s8535_s12 + $0xb0] sm:$0xff]  }
 0x546   :  { %v3777_v1 = vpop.f32.mrb[59].mxu0  ;;  %v6787_v7 = vld [vmem:[%s8535_s12 + $0xb8] sm:$0xff]  }
 0x547   :  { %v6789_v1 = vld [vmem:[%s8536_s1 + $0x28] ss:$16 sps:$4 sm:$0xff]  }
 0x56a   :  { %v3341_v5 = vpop.f32.mrb[44].mxu1 }
 0x56b   :  { %v3347_v9 = vadd.f32 %v3341_v5, %v3199_v8  ;;  %v3343_v63 = vpop.f32.mrb[45].mxu1  ;;  %v6781_v8 = vld [vmem:[%s8536_s1 + $0x60] ss:$16 sps:$4 sm:$0xff]   ;;  %v6790_v5 = vld [vmem:[%s8536_s1 + $0x48] ss:$16 sps:$4 sm:$0xff]  }
 0x56c   :  { %v3344_v23 = vpop.f32.mrb[46].mxu1  ;;  %v6792_v63 = vld [vmem:[%s8537_s14 + $0x20] sm:$0xff]  }
 0x56d   :  { %v3345_v25 = vpop.f32.mrb[47].mxu1  ;;  %v3491_v26 = vadd.f32 %v3485_v3, %v3347_v9  ;;  %v6778_v3 = vld [vmem:[%s8535_s12 + $0x80] sm:$0xff]   ;;  %v6791_v9 = vld [vmem:[%s8536_s1 + $0x68] ss:$16 sps:$4 sm:$0xff]   ;;  %6113 = vmatprep.subr.bf16.mxu0 %v6792_v63 }
 0x56e   :  { %6114 = vmatpush3.bf16.msra.mxu0 %v6792_v63  ;;  %v6793_v23 = vld [vmem:[%s8537_s14 + $0x28] sm:$0xff]   ;;  %v6794_v25 = vld [vmem:[%s8537_s14 + $0x30] sm:$0xff]   ;;  %v6806_v63 = vld [vmem:[%s8541_s16 + $0x38] sm:$0xff]  }
 0x56f   :  { %6115 = vmatprep.subr.bf16.mxu0 %v6793_v23 }
 0x572   :  { %6116 = vmatpush3.bf16.msra.mxu0 %v6793_v23  ;;  %v6807_v23 = vld [vmem:[%s8541_s16 + $0x20] sm:$0xff]  }
 0x573   :  { %6117 = vmatprep.subr.bf16.mxu0 %v6794_v25 }
 0x576   :  { %6118 = vmatpush3.bf16.msra.mxu0 %v6794_v25  ;;  %v6808_v25 = vld [vmem:[%s8541_s16 + $0x40] sm:$0xff]  }
 0x59a   :  { %v3629_v27 = vpop.f32.mrb[48].mxu1 }
 0x59b   :  { %v3635_v28 = vadd.f32 %v3629_v27, %v3491_v26  ;;  %v3631_v29 = vpop.f32.mrb[49].mxu1  ;;  %v6795_v26 = vld [vmem:[%s8537_s14 + $0x38] sm:$0xff]   ;;  %v6796_v27 = vld [vmem:[%s8537_s14] sm:$0xff]  }
 0x59c   :  { %v3632_v32 = vpop.f32.mrb[50].mxu1  ;;  %6119 = vmatprep.subr.bf16.mxu0 %v6795_v26 }
 0x59d   :  { %v3779_v36 = vadd.f32 %v3773_v19, %v3635_v28  ;;  %v3633_v41 = vpop.f32.mrb[51].mxu1  ;;  %v6785_v19 = vld [vmem:[%s8535_s12 + $0xa8] sm:$0xff]   ;;  %6120 = vmatpush3.bf16.msra.mxu0 %v6795_v26  ;;  %v5747_v28 = vld [vmem:[%s8538_s11] ss:$0 sm:$0xff] }
 0x59e   :  { %6125 = vmatprep.subr.bf16.mxu0 %v6796_v27  ;;  %v6809_v26 = vld [vmem:[%s8541_s16 + $0x28] sm:$0xff]  }
 0x59f   :  { %v3787_v42 = vadd.f32 %v5746_v34, %v3779_v36 }
 0x5a1   :  { %v3789_v47 = vsel %vm3788_vm3, %v3787_v42, 0.0 }
 0x5a2   :  { %3790 = vadd.xlane.f32.xlu0 %v3789_v47 }
 0x62f   :  { %v3791_v49 = vpop.xlane.xlu0 %3790 }
 0x630   :  { %v3793_v35 = vmul.f32 0.03125, %v3791_v49 }
 0x632   :  { %v3794_v53 = vsub.f32 %v3787_v42, %v3793_v35 }
 0x634   :  { %v3795_v46 = vmul.f32 %v3794_v53, %v3794_v53 }
 0x636   :  { %v3796_v55 = vsel %vm3788_vm3, %v3795_v46, 0.0 }
 0x637   :  { %3797 = vadd.xlane.f32.xlu0 %v3796_v55 }
 0x6c4   :  { %v3798_v54 = vpop.xlane.xlu0 %3797 }
 0x6c5   :  { %v3799_v22 = vmul.f32 0.03125, %v3798_v54 }
 0x6c7   :  { %v3800_v50 = vadd.f32 1e-05, %v3799_v22  ;;  %v5835_v22 = vld [vmem:[%s8540_s13] ss:$0 sm:$0xff] }
 0x6c9   :  { %6817 = vrsqrt.f32 %v3800_v50 }
 0x6d3   :  { %v6818_v30 = vpop.eup %6817 }
 0x6d4   :  { %v3802_v21 = vmul.f32 %v6818_v30, %v3794_v53 }
 0x6d6   :  { %v3803_v43 = vmax.f32 %v3802_v21, 0.0 }
 0x6d8   :  { %v3804_v61 = vpack.c.bf16 %v3803_v43, %v3803_v43 }
 0x6da   :  { %6038 = vmatmul.mubr.msk.bf16.vlgmr.msra.gmra.mrb[52].mxu1 %vm3788_vm3, %v3804_v61 }
 0x6db   :  { %6042 = vmatpush3.bf16.msra.mxu1 %v6756_v31  ;;  %6057 = vmatprep.mubr.bf16.mxu1 %v6764_v33 }
 0x6dc   :  { %6043 = vmatprep.subr.bf16.mxu1 %v6757_v44 }
 0x6df   :  { %6044 = vmatpush3.bf16.msra.mxu1 %v6757_v44 }
 0x6e0   :  { %6045 = vmatprep.subr.bf16.mxu1 %v6758_v12 }
 0x6e3   :  { %6046 = vmatpush3.bf16.msra.mxu1 %v6758_v12 }
 0x6e4   :  { %6047 = vmatprep.subr.bf16.mxu1 %v6759_v60 }
 0x6e7   :  { %6048 = vmatpush3.bf16.msra.mxu1 %v6759_v60 }
 0x6e8   :  { %6049 = vmatprep.subr.bf16.mxu1 %v6760_v39 }
 0x6eb   :  { %6050 = vmatpush3.bf16.msra.mxu1 %v6760_v39 }
 0x6ec   :  { %6051 = vmatprep.subr.bf16.mxu1 %v6761_v38 }
 0x6ef   :  { %6052 = vmatpush3.bf16.msra.mxu1 %v6761_v38 }
 0x6f0   :  { %6053 = vmatprep.subr.bf16.mxu1 %v6762_v48 }
 0x6f3   :  { %6054 = vmatpush3.bf16.msra.mxu1 %v6762_v48 }
 0x6f4   :  { %6055 = vmatprep.subr.bf16.mxu1 %v6763_v10 }
 0x6f7   :  { %6056 = vmatpush3.bf16.msra.mxu1 %v6763_v10 }
 0x6f8   :  { %6065 = vmatprep.subr.bf16.mxu1 %v6765_v0 }
 0x6fa   :  { %6058 = vmatmul.mubr.bf16.vlgmr.msra.gmra.mrb[56].mxu1 %v6766_v51 }
 0x6fb   :  { %6066 = vmatpush3.bf16.msra.mxu1 %v6765_v0  ;;  %6061 = vmatprep.mubr.bf16.mxu1 %v6772_v13 }
 0x6fc   :  { %6067 = vmatprep.subr.bf16.mxu1 %v6767_v52 }
 0x6ff   :  { %6068 = vmatpush3.bf16.msra.mxu1 %v6767_v52 }
 0x700   :  { %6069 = vmatprep.subr.bf16.mxu1 %v6768_v45 }
 0x702   :  { %6062 = vmatmul.mubr.bf16.gmra.mrb[60].mxu1 %v6773_v56 }
 0x703   :  { %6070 = vmatpush3.bf16.msra.mxu1 %v6768_v45  ;;  %6081 = vmatprep.mubr.bf16.mxu1 %v6776_v62 }
 0x704   :  { %6071 = vmatprep.subr.bf16.mxu1 %v6769_v57 }
 0x707   :  { %6072 = vmatpush3.bf16.msra.mxu1 %v6769_v57 }
 0x708   :  { %6073 = vmatprep.subr.bf16.mxu1 %v6770_v37 }
 0x70b   :  { %6074 = vmatpush3.bf16.msra.mxu1 %v6770_v37 }
 0x70c   :  { %6075 = vmatprep.subr.bf16.mxu1 %v6771_v11 }
 0x70f   :  { %6076 = vmatpush3.bf16.msra.mxu1 %v6771_v11 }
 0x710   :  { %6077 = vmatprep.subr.bf16.mxu1 %v6774_v59 }
 0x713   :  { %6078 = vmatpush3.bf16.msra.mxu1 %v6774_v59 }
 0x714   :  { %6079 = vmatprep.subr.bf16.mxu1 %v6775_v2 }
 0x717   :  { %6080 = vmatpush3.bf16.msra.mxu1 %v6775_v2 }
 0x718   :  { %6089 = vmatprep.subr.bf16.mxu1 %v6778_v3 }
 0x71a   :  { %6082 = vmatmul.mubr.bf16.vlgmr.msra.gmra.mrb[56].mxu1 %v6777_v4 }
 0x71b   :  { %6090 = vmatpush3.bf16.msra.mxu1 %v6778_v3  ;;  %6085 = vmatprep.mubr.bf16.mxu1 %v6780_v6  ;;  %v6797_v6 = vld [vmem:[%s8537_s14 + $0x8] sm:$0xff]  }
 0x71c   :  { %6091 = vmatprep.subr.bf16.mxu1 %v6779_v14 }
 0x71f   :  { %6092 = vmatpush3.bf16.msra.mxu1 %v6779_v14  ;;  %v6798_v14 = vld [vmem:[%s8537_s14 + $0x10] sm:$0xff]  }
 0x720   :  { %6093 = vmatprep.subr.bf16.mxu1 %v6782_v15 }
 0x722   :  { %6086 = vmatmul.mubr.bf16.gmra.mrb[64].mxu1 %v6781_v8  ;;  %v6800_v8 = vld [vmem:[%s8537_s14 + $0x40] sm:$0xff]  }
 0x723   :  { %6094 = vmatpush3.bf16.msra.mxu1 %v6782_v15  ;;  %6105 = vmatprep.mubr.bf16.mxu1 %v6788_v16  ;;  %v6799_v15 = vld [vmem:[%s8537_s14 + $0x18] sm:$0xff]  }
 0x724   :  { %6095 = vmatprep.subr.bf16.mxu1 %v6783_v17 }
 0x727   :  { %6096 = vmatpush3.bf16.msra.mxu1 %v6783_v17  ;;  %v6801_v17 = vld [vmem:[%s8537_s14 + $0x48] sm:$0xff]  }
 0x728   :  { %6097 = vmatprep.subr.bf16.mxu1 %v6784_v18 }
 0x72b   :  { %6098 = vmatpush3.bf16.msra.mxu1 %v6784_v18  ;;  %v6802_v18 = vld [vmem:[%s8537_s14 + $0x50] sm:$0xff]  }
 0x72c   :  { %6099 = vmatprep.subr.bf16.mxu1 %v6785_v19 }
 0x72f   :  { %6100 = vmatpush3.bf16.msra.mxu1 %v6785_v19 }
 0x730   :  { %6101 = vmatprep.subr.bf16.mxu1 %v6786_v40 }
 0x733   :  { %6102 = vmatpush3.bf16.msra.mxu1 %v6786_v40  ;;  %v6803_v40 = vld [vmem:[%s8537_s14 + $0x58] sm:$0xff]  }
 0x734   :  { %6103 = vmatprep.subr.bf16.mxu1 %v6787_v7 }
 0x737   :  { %6104 = vmatpush3.bf16.msra.mxu1 %v6787_v7 }
 0x738   :  { %6169 = vmatprep.subr.bf16.mxu1 %v6822_v20 }
 0x73a   :  { %6106 = vmatmul.mubr.bf16.vlgmr.msra.gmra.mrb[56].mxu1 %v6789_v1 }
 0x73b   :  { %6109 = vmatprep.mubr.bf16.mxu1 %v6790_v5  ;;  %v6804_v5 = vld [vmem:[%s8541_s16 + $0x30] sm:$0xff]  }
 0x73c   :  { %6170 = vmatpush3.bf16.msra.mxu1 %v6804_v5 }
 0x73d   :  { %6171 = vmatprep.subr.bf16.mxu1 %v6822_v20 }
 0x740   :  { %6172 = vmatpush3.bf16.msra.mxu1 %v6806_v63 }
 0x741   :  { %6173 = vmatprep.subr.bf16.mxu1 %v6822_v20 }
 0x742   :  { %6110 = vmatmul.mubr.bf16.gmra.mrb[68].mxu1 %v6791_v9  ;;  %v6805_v9 = vld [vmem:[%s8541_s16 + $0x18] sm:$0xff]  }
 0x743   :  { %6175 = vmatprep.mubr.msk.bf16.mxu1 %vm6823_vm4, %v6822_v20 }
 0x744   :  { %6174 = vmatpush3.bf16.msra.mxu1 %v6808_v25 }
 0x745   :  { %6187 = vmatprep.subr.bf16.mxu1 %v6822_v20 }
 0x7ad   :  { %v3865_v29 = vpop.f32.mrb[52].mxu1 }
 0x7ae   :  { %v3866_v32 = vadd.f32 %v5747_v28, %v3865_v29  ;;  %v6039_v34 = vpop.f32.mrb[53].mxu1 }
 0x7af   :  { %v3868_v36 = vpop.f32.mrb[54].mxu1 }
 0x7b0   :  { %3871 = vst [vmem:[%s8539_s22] sm:$0xff] %v3866_v32  ;;  %v6040_v41 = vpop.f32.mrb[55].mxu1 }
 0x7d5   :  { %v6063_v42 = vpop.f32.mrb[60].mxu1 }
 0x7d6   :  { %v4044_v47 = vpop.f32.mrb[61].mxu1 }
 0x7d7   :  { %v6064_v49 = vpop.f32.mrb[62].mxu1 }
 0x7d8   :  { %v4047_v35 = vpop.f32.mrb[63].mxu1 }
 0x7f5   :  { %v6087_v53 = vpop.f32.mrb[64].mxu1 }
 0x7f6   :  { %v4190_v46 = vadd.f32 %v6087_v53, %v6063_v42  ;;  %v4181_v55 = vpop.f32.mrb[65].mxu1 }
 0x7f7   :  { %v4182_v58 = vadd.f32 %v4181_v55, %v4044_v47  ;;  %v6088_v24 = vpop.f32.mrb[66].mxu1 }
 0x7f8   :  { %v4184_v31 = vpop.f32.mrb[67].mxu1 }
 0x7f9   :  { %v4185_v54 = vadd.f32 %v4184_v31, %v4047_v35 }
 0x80d   :  { %v6107_v50 = vpop.f32.mrb[56].mxu1 }
 0x80e   :  { %v4376_v30 = vadd.f32 %v6107_v50, %v5835_v22  ;;  %v4328_v21 = vpop.f32.mrb[57].mxu1 }
 0x80f   :  { %v4374_v43 = vadd.f32 %v5835_v22, %v4328_v21  ;;  %v6108_v33 = vpop.f32.mrb[58].mxu1 }
 0x810   :  { %v4384_v61 = vmax.f32 %v4376_v30, 0.0  ;;  %v4377_v44 = vadd.f32 %v6108_v33, %v5835_v22  ;;  %v4331_v12 = vpop.f32.mrb[59].mxu1 }
 0x811   :  { %v4382_v60 = vmax.f32 %v4374_v43, 0.0  ;;  %v4375_v39 = vadd.f32 %v5835_v22, %v4331_v12  ;;  %v6811_v12 = vld [vmem:[%s8541_s16 + $0x8] sm:$0xff]  }
 0x812   :  { %v4385_v38 = vmax.f32 %v4377_v44, 0.0 }
 0x813   :  { %v5951_v48 = vpack.c.bf16 %v4384_v61, %v4382_v60  ;;  %v4383_v10 = vmax.f32 %v4375_v39, 0.0  ;;  %v6812_v39 = vld [vmem:[%s8541_s16 + $0x10] sm:$0xff]  }
 0x815   :  { %v5949_v0 = vpack.c.bf16 %v4385_v38, %v4383_v10  ;;  %v6111_v51 = vpop.f32.mrb[68].mxu1  ;;  %v6813_v10 = vld [vmem:[%s8543_s18] sm:$0xff]  }
 0x816   :  { %v4365_v13 = vadd.f32 %v6111_v51, %v4190_v46  ;;  %v4344_v52 = vpop.f32.mrb[69].mxu1  ;;  %v5876_v46 = vld [vmem:[%s8542_s15] ss:$0 sm:$0xff] }
 0x817   :  { %v4363_v45 = vadd.f32 %v4344_v52, %v4182_v58  ;;  %v6112_v56 = vpop.f32.mrb[70].mxu1  ;;  %6121 = vmatprep.mubr.msk.bf16.mxu0 %vm3042_vm2, %v5949_v0  ;;  %v6814_v0 = vld [vmem:[%s8543_s18 + $0x8] sm:$0xff]  }
 0x818   :  { %v4347_v62 = vpop.f32.mrb[71].mxu1  ;;  %v4380_v19 = vadd.f32 %v5835_v22, %v4365_v13 }
 0x819   :  { %v4378_v57 = vadd.f32 %v5835_v22, %v4363_v45  ;;  %v4364_v37 = vadd.f32 %v4347_v62, %v4185_v54 }
 0x81a   :  { %v4388_v7 = vmax.f32 %v4380_v19, 0.0 }
 0x81b   :  { %v4386_v11 = vmax.f32 %v4378_v57, 0.0  ;;  %v4379_v59 = vadd.f32 %v5835_v22, %v4364_v37 }
 0x81c   :  { %v5954_v1 = vpack.c.bf16 %v4388_v7, %v4388_v7 }
 0x81d   :  { %v5953_v2 = vpack.c.bf16 %v4386_v11, %v4384_v61  ;;  %v4387_v3 = vmax.f32 %v4379_v59, 0.0  ;;  %v5952_v16 = vpack.c.bf16 %v4386_v11, %v4386_v11  ;;  %v6810_v61 = vld [vmem:[%s8541_s16] sm:$0xff]  }
 0x81f   :  { %v5950_v4 = vpack.c.bf16 %v4387_v3, %v4387_v3  ;;  %v5904_v3 = vld [vmem:[%s8544_s17] ss:$0 sm:$0xff] }
 0x821   :  { %6122 = vmatmul.mubr.msk.bf16.vlgmr.msra.gmra.mrb[60].mxu0 %vm3042_vm2, %v5950_v4 }
 0x822   :  { %6126 = vmatpush3.bf16.msra.mxu0 %v6796_v27  ;;  %6133 = vmatprep.mubr.msk.bf16.mxu0 %vm3042_vm2, %v5951_v48 }
 0x823   :  { %6127 = vmatprep.subr.bf16.mxu0 %v6797_v6 }
 0x826   :  { %6128 = vmatpush3.bf16.msra.mxu0 %v6797_v6 }
 0x827   :  { %6129 = vmatprep.subr.bf16.mxu0 %v6798_v14 }
 0x82a   :  { %6130 = vmatpush3.bf16.msra.mxu0 %v6798_v14 }
 0x82b   :  { %6131 = vmatprep.subr.bf16.mxu0 %v6799_v15 }
 0x82e   :  { %6132 = vmatpush3.bf16.msra.mxu0 %v6799_v15 }
 0x82f   :  { %6137 = vmatprep.subr.bf16.mxu0 %v6800_v8 }
 0x831   :  { %6134 = vmatmul.mubr.msk.bf16.vlgmr.msra.gmra.mrb[64].mxu0 %vm3042_vm2, %v5952_v16 }
 0x832   :  { %6138 = vmatpush3.bf16.msra.mxu0 %v6800_v8  ;;  %6145 = vmatprep.mubr.msk.bf16.mxu0 %vm3042_vm2, %v5953_v2 }
 0x833   :  { %6139 = vmatprep.subr.bf16.mxu0 %v6801_v17 }
 0x836   :  { %6140 = vmatpush3.bf16.msra.mxu0 %v6801_v17  ;;  %v5905_v17 = vld [vmem:[%s8545_s19] ss:$0 sm:$0xff] }
 0x837   :  { %6141 = vmatprep.subr.bf16.mxu0 %v6802_v18 }
 0x83a   :  { %6142 = vmatpush3.bf16.msra.mxu0 %v6802_v18 }
 0x83b   :  { %6143 = vmatprep.subr.bf16.mxu0 %v6803_v40 }
 0x83e   :  { %6144 = vmatpush3.bf16.msra.mxu0 %v6803_v40 }
 0x83f   :  { %6149 = vmatprep.subr.bf16.mxu0 %v6822_v20 }
 0x841   :  { %6146 = vmatmul.mubr.msk.bf16.vlgmr.msra.gmra.mrb[68].mxu0 %vm3042_vm2, %v5954_v1 }
 0x842   :  { %6155 = vmatprep.mubr.msk.bf16.mxu0 %vm6823_vm4, %v6822_v20  ;;  %6150 = vmatpush3.bf16.msra.mxu0 %v6805_v9 }
 0x843   :  { %6151 = vmatprep.subr.bf16.mxu0 %v6822_v20 }
 0x846   :  { %6152 = vmatpush3.bf16.msra.mxu0 %v6807_v23 }
 0x847   :  { %6153 = vmatprep.subr.bf16.mxu0 %v6822_v20 }
 0x84a   :  { %6154 = vmatpush3.bf16.msra.mxu0 %v6809_v26 }
 0x84b   :  { %6159 = vmatprep.subr.bf16.mxu0 %v6822_v20 }
 0x8f4   :  { %v6123_v27 = vpop.f32.mrb[60].mxu0 }
 0x8f5   :  { %v4488_v28 = vpop.f32.mrb[61].mxu0 }
 0x8f6   :  { %v6124_v29 = vpop.f32.mrb[62].mxu0 }
 0x8f7   :  { %v4491_v32 = vpop.f32.mrb[63].mxu0 }
 0x904   :  { %v6135_v34 = vpop.f32.mrb[64].mxu0 }
 0x905   :  { %v4577_v36 = vadd.f32 %v6135_v34, %v6123_v27  ;;  %v4568_v41 = vpop.f32.mrb[65].mxu0  ;;  %v6815_v27 = vld [vmem:[%s8546_s20] sm:$0xff]  }
 0x906   :  { %v4569_v42 = vadd.f32 %v4568_v41, %v4488_v28  ;;  %v6136_v47 = vpop.f32.mrb[66].mxu0  ;;  %v6816_v28 = vld [vmem:[%s8546_s20 + $0x8] sm:$0xff]  }
 0x907   :  { %v4571_v49 = vpop.f32.mrb[67].mxu0 }
 0x908   :  { %v4572_v35 = vadd.f32 %v4571_v49, %v4491_v32  ;;  %v5909_v49 = vld [vmem:[%s8547_s21] ss:$0 sm:$0xff] }
 0x914   :  { %v6147_v53 = vpop.f32.mrb[68].mxu0 }
 0x915   :  { %v4673_v55 = vadd.f32 %v6147_v53, %v4577_v36  ;;  %v4657_v58 = vpop.f32.mrb[69].mxu0 }
 0x916   :  { %v4671_v24 = vadd.f32 %v4657_v58, %v4569_v42  ;;  %v6148_v31 = vpop.f32.mrb[70].mxu0 }
 0x917   :  { %v4683_v54 = vadd.f32 %v5876_v46, %v4673_v55  ;;  %v4660_v22 = vpop.f32.mrb[71].mxu0 }
 0x918   :  { %v4672_v50 = vadd.f32 %v4660_v22, %v4572_v35  ;;  %v4681_v60 = vadd.f32 %v5876_v46, %v4671_v24 }
 0x919   :  { %v4686_v30 = vmax.f32 %v4683_v54, 0.0 }
 0x91a   :  { %v4682_v21 = vadd.f32 %v5876_v46, %v4672_v50  ;;  %v4684_v38 = vmax.f32 %v4681_v60, 0.0 }
 0x91b   :  { %v5957_v43 = vpack.c.bf16 %v4686_v30, %v4686_v30 }
 0x91c   :  { %v4685_v33 = vmax.f32 %v4682_v21, 0.0  ;;  %v5955_v48 = vpack.c.bf16 %v4684_v38, %v4684_v38 }
 0x91d   :  { %6176 = vmatmul.mubr.msk.bf16.vlgmr.msra.gmra.mrb[72].mxu1 %vm4728_vm5, %v5957_v43 }
 0x91e   :  { %v5956_v44 = vpack.c.bf16 %v4685_v33, %v4685_v33  ;;  %6191 = vmatprep.mubr.msk.bf16.mxu1 %vm6823_vm4, %v6822_v20  ;;  %6188 = vmatpush3.bf16.msra.mxu1 %v6815_v27 }
 0x91f   :  { %6189 = vmatprep.subr.bf16.mxu1 %v6822_v20 }
 0x920   :  { %6156 = vmatmul.mubr.msk.bf16.vlgmr.msra.gmra.mrb[72].mxu0 %vm4728_vm5, %v5956_v44 }
 0x921   :  { %6160 = vmatpush3.bf16.msra.mxu0 %v6810_v61  ;;  %6165 = vmatprep.mubr.msk.bf16.mxu0 %vm6823_vm4, %v6822_v20 }
 0x922   :  { %6161 = vmatprep.subr.bf16.mxu0 %v6822_v20  ;;  %6190 = vmatpush3.bf16.msra.mxu1 %v6816_v28 }
 0x925   :  { %6162 = vmatpush3.bf16.msra.mxu0 %v6811_v12 }
 0x926   :  { %6163 = vmatprep.subr.bf16.mxu0 %v6822_v20 }
 0x929   :  { %6164 = vmatpush3.bf16.msra.mxu0 %v6812_v39 }
 0x92a   :  { %6179 = vmatprep.subr.bf16.mxu0 %v6822_v20 }
 0x92c   :  { %6166 = vmatmul.mubr.msk.bf16.vlgmr.msra.gmra.mrb[76].mxu0 %vm4728_vm5, %v5955_v48 }
 0x92d   :  { %6183 = vmatprep.mubr.msk.bf16.mxu0 %vm6823_vm4, %v6822_v20  ;;  %6180 = vmatpush3.bf16.msra.mxu0 %v6813_v10 }
 0x92e   :  { %6181 = vmatprep.subr.bf16.mxu0 %v6822_v20 }
 0x931   :  { %6182 = vmatpush3.bf16.msra.mxu0 %v6814_v0 }
 0x9f0   :  { %v4895_v51 = vpop.f32.mrb[72].mxu1 }
 0x9f1   :  { %v6177_v13 = vpop.f32.mrb[73].mxu1 }
 0x9f2   :  { %v4898_v52 = vpop.f32.mrb[74].mxu1 }
 0x9f3   :  { %v4766_v45 = vpop.f32.mrb[72].mxu0  ;;  %v6178_v56 = vpop.f32.mrb[75].mxu1 }
 0x9f4   :  { %v6157_v62 = vpop.f32.mrb[73].mxu0 }
 0x9f5   :  { %v4769_v57 = vpop.f32.mrb[74].mxu0 }
 0x9f6   :  { %v6158_v37 = vpop.f32.mrb[75].mxu0 }
 0x9ff   :  { %v4827_v11 = vpop.f32.mrb[76].mxu0 }
 0xa00   :  { %v4828_v59 = vadd.f32 %v4827_v11, %v4766_v45  ;;  %v6167_v2 = vpop.f32.mrb[77].mxu0 }
 0xa01   :  { %v4830_v4 = vpop.f32.mrb[78].mxu0 }
 0xa02   :  { %v4901_v6 = vadd.f32 %v4895_v51, %v4828_v59  ;;  %v6168_v14 = vpop.f32.mrb[79].mxu0 }
 0xa04   :  { %v4909_v15 = vadd.f32 %v5904_v3, %v4901_v6 }
 0xa06   :  { %v4910_v8 = vmax.f32 %v4909_v15, 0.0 }
 0xa08   :  { %v4911_v16 = vpack.c.bf16 %v4910_v8, %v4910_v8 }
 0xa0a   :  { %6184 = vmatmul.mubr.msk.bf16.vlgmr.msra.gmra.mrb[80].mxu0 %vm3788_vm3, %v4911_v16 }
 0xadd   :  { %v4972_v18 = vpop.f32.mrb[80].mxu0 }
 0xade   :  { %v4973_v19 = vadd.f32 %v5905_v17, %v4972_v18  ;;  %v6185_v40 = vpop.f32.mrb[81].mxu0 }
 0xadf   :  { %v4975_v7 = vpop.f32.mrb[82].mxu0 }
 0xae0   :  { %v6186_v1 = vpop.f32.mrb[83].mxu0  ;;  %v4978_v5 = vsel %vm3788_vm3, %v4973_v19, 0.0 }
 0xae1   :  { %4979 = vadd.xlane.f32.xlu1 %v4978_v5 }
 0xb6e   :  { %v4980_v9 = vpop.xlane.xlu1 %4979 }
 0xb6f   :  { %v4981_v63 = vmul.f32 0.03125, %v4980_v9 }
 0xb71   :  { %v4982_v23 = vsub.f32 %v4973_v19, %v4981_v63 }
 0xb73   :  { %v4983_v25 = vmul.f32 %v4982_v23, %v4982_v23 }
 0xb75   :  { %v4984_v26 = vsel %vm3788_vm3, %v4983_v25, 0.0 }
 0xb76   :  { %4985 = vadd.xlane.f32.xlu1 %v4984_v26 }
 0xc03   :  { %v4986_v29 = vpop.xlane.xlu1 %4985 }
 0xc04   :  { %v4987_v32 = vmul.f32 0.03125, %v4986_v29 }
 0xc06   :  { %v4988_v34 = vadd.f32 1e-05, %v4987_v32 }
 0xc08   :  { %6819 = vrsqrt.f32 %v4988_v34 }
 0xc12   :  { %v6820_v36 = vpop.eup %6819 }
 0xc13   :  { %v4990_v41 = vmul.f32 %v6820_v36, %v4982_v23 }
 0xc15   :  { %v4991_v42 = vmax.f32 %v4990_v41, 0.0 }
 0xc17   :  { %v4992_v47 = vpack.c.bf16 %v4991_v42, %v4991_v42 }
 0xc19   :  { %6192 = vmatmul.mubr.msk.bf16.vlgmr.msra.gmra.mrb[76].mxu1 %vm3788_vm3, %v4992_v47 }
 0xcec   :  { %v5053_v20 = vpop.f32.mrb[76].mxu1 }
 0xced   :  { %v5054_v35 = vadd.f32 %v5909_v49, %v5053_v20  ;;  %v6193_v53 = vpop.f32.mrb[77].mxu1 }
 0xcee   :  { %v5056_v46 = vpop.f32.mrb[78].mxu1 }
 0xcef   :  { %5059 = vst [vmem:[%s8548_s23] sm:$0xff] %v5054_v35  ;;  %v6194_v55 = vpop.f32.mrb[79].mxu1 }

</bundles_post_ra>
